<compile_context>
chip_gen: v7x
topology: tpu7x:2x2x1
jax: 0.10.0
libtpu: 0.0.40
codegen_flags: <defaults>
</compile_context>

<pallas_src>
import functools

import jax
import jax.numpy as jnp
from jax import lax
from jax.experimental import pallas as pl
from jax.experimental.pallas import tpu as pltpu

EPS = 1e-5
LANES = 128


def _round_up(v, m):
    return ((v + m - 1) // m) * m


def _prep_weight(w_oihw, cin_pad, cout_pad):
    """(Cout, Cin, 3, 3) -> (9, cin_pad, cout_pad) bf16, tap-major (kh*3+kw)."""
    cout, cin, kh, kw = w_oihw.shape
    wm = jnp.transpose(w_oihw, (2, 3, 1, 0)).reshape(kh * kw, cin, cout)
    wm = jnp.pad(wm, ((0, 0), (0, cin_pad - cin), (0, cout_pad - cout)))
    return wm.astype(jnp.bfloat16)


# --------------------------------------------------------------------------- #
# Fused kernel.
#   grid = (2, N): axis 0 is the phase (0: conv1 + BN partials, 1: BN+ReLU+conv2),
#   axis 1 is the batch image.  y1 is held for the whole batch in a VMEM scratch,
#   laid out as 2x2 parity phase images of the zero-padded activation so that
#   conv2's stride-2 taps become contiguous slices.
# --------------------------------------------------------------------------- #
def _fused_block_kernel(n_img, xp_ref, w1_ref, w2_ref, gamma_ref, beta_ref,
                        y2_ref, y1s_ref, ssum_ref, ssq_ref):
    ph = pl.program_id(0)          # 0: conv1 + stats, 1: BN + ReLU + conv2
    ni = pl.program_id(1)          # batch image index

    hq = xp_ref.shape[1]           # phase-image rows (= H//2 + 1)
    wq = xp_ref.shape[2]
    cin_p = xp_ref.shape[3]
    cpad = w1_ref.shape[2]
    nr = hq - 1                    # rows per output phase (= H//2 = ho2)
    nc = wq - 1                    # cols per output phase (= W//2 = wo2)
    m_tot = float(n_img) * (2 * nr) * (2 * nc)   # BN pixel count = N*H*W

    # ----------------------- phase 0: conv1 + BN partial stats ------------------
    @pl.when(ph == 0)
    def _conv1_and_stats():
        @pl.when(ni == 0)
        def _init_stats():
            ssum_ref[...] = jnp.zeros(ssum_ref.shape, jnp.float32)
            ssq_ref[...] = jnp.zeros(ssq_ref.shape, jnp.float32)

        # Zero this image's y1 phase blocks first: establishes the exact-zero 1-pixel
        # padding ring that conv2's halo taps rely on post-ReLU.
        for t_r in range(2):
            for t_c in range(2):
                y1s_ref[ni * 4 + t_r * 2 + t_c] = jnp.zeros(
                    (hq, wq, cpad), jnp.float32)

        # conv1 per output-parity phase (t_r, t_c): 9 shifted stride-1 reads of the
        # input phase images, accumulated on the MXU into a small f32 accumulator
        # (nr*nc x cpad = 64x128 f32 = 8 vregs -> no spills).
        for t_r in range(2):
            u0 = 1 - t_r
            for t_c in range(2):
                v0 = 1 - t_c
                acc = jnp.zeros((nr * nc, cpad), jnp.float32)
                for kh in range(3):
                    e = t_r - 1 + kh
                    tpr, qh = e % 2, e // 2       # python floor div: (-1)//2 == -1
                    for kw in range(3):
                        f = t_c - 1 + kw
                        tpc, qw = f % 2, f // 2
                        win = xp_ref[tpr * 2 + tpc,
                                     pl.ds(u0 + qh, nr),
                                     pl.ds(v0 + qw, nc), :]
                        acc = acc + jnp.dot(win.reshape(nr * nc, cin_p),
                                            w1_ref[kh * 3 + kw],
                                            preferred_element_type=jnp.float32)
                idx = ni * 4 + t_r * 2 + t_c
                y1s_ref[idx, pl.ds(u0, nr), pl.ds(v0, nc), :] = (
                    acc.reshape(nr, nc, cpad))
                # BN partial statistics in f32, over the real pixels only.
                ssum_ref[...] += jnp.sum(acc, axis=0, keepdims=True)
                ssq_ref[...] += jnp.sum(acc * acc, axis=0, keepdims=True)

    # ------------------- phase 1: BN finalize + ReLU + conv2 --------------------
    @pl.when(ph == 1)
    def _bn_relu_conv2():
        mean = ssum_ref[...] / m_tot                                   # (1, cpad)
        # NOTE: E[x^2]-E[x]^2 in f32; clamped.  A centered second pass over the
        # VMEM-resident y1 would be exact for large-mean activations.
        var = jnp.maximum(ssq_ref[...] / m_tot - mean * mean, 0.0)
        scale = gamma_ref[...] * lax.rsqrt(var + EPS)
        shift = beta_ref[...] - mean * scale

        # In-place BN affine + ReLU on the real region of this image's phase blocks.
        # The padding ring (zeroed in phase 0) is left untouched -> exact post-ReLU
        # zeros for conv2's halo taps.
        for t_r in range(2):
            u0 = 1 - t_r
            for t_c in range(2):
                v0 = 1 - t_c
                idx = ni * 4 + t_r * 2 + t_c
                blk = y1s_ref[idx, pl.ds(u0, nr), pl.ds(v0, nc), :]
                blk = blk.reshape(nr * nc, cpad)
                blk = jnp.maximum(blk * scale + shift, 0.0)
                y1s_ref[idx, pl.ds(u0, nr), pl.ds(v0, nc), :] = (
                    blk.reshape(nr, nc, cpad))

        # conv2 (stride 2): 9 taps, each a contiguous (nr, nc) window of one of the
        # four VMEM-resident y1 phase images -> no strided reads, no HBM round trip.
        acc = jnp.zeros((nr * nc, cpad), jnp.float32)
        for kh in range(3):
            for kw in range(3):
                idx = ni * 4 + (kh % 2) * 2 + (kw % 2)
                win = y1s_ref[idx, pl.ds(kh // 2, nr), pl.ds(kw // 2, nc), :]
                acc = acc + jnp.dot(
                    win.reshape(nr * nc, cpad).astype(jnp.bfloat16),
                    w2_ref[kh * 3 + kw],
                    preferred_element_type=jnp.float32)
        y2_ref[...] = acc.reshape(1, nr, nc, cpad).astype(y2_ref.dtype)


# --------------------------------------------------------------------------- #
# BasicBlock forward (training-mode BatchNorm: batch stats, biased var, eps=1e-5).
# --------------------------------------------------------------------------- #
def basic_block_forward(x_nchw, w1, gamma, beta, w2, stride=1):
    if stride != 1:
        # TODO(synk): general stride needs an s-phase decomposition of x in front of
        # conv1 (two-kernel path); only the stride=1 BasicBlock is fused here.
        raise NotImplementedError("fused BasicBlock kernel implements stride=1 only")
    n, cin, h, w = x_nchw.shape
    assert h % 2 == 0 and w % 2 == 0, "even spatial extents required"
    cout = w1.shape[0]
    cpad = _round_up(cout, LANES)   # matmul N dim only; intermediates never hit HBM
    cin_p = _round_up(cin, 8)
    hq, wq = h // 2 + 1, w // 2 + 1
    ho2, wo2 = h // 2, w // 2

    # NCHW -> NHWC, zero-pad (1-pixel ring for conv1 + input channels), and split into
    # the 2x2 parity phase images of the padded input in one fused XLA layout pass
    # (1x HBM traffic over the tiny input; no im2col anywhere).
    x = jnp.transpose(x_nchw, (0, 2, 3, 1)).astype(jnp.float32)
    x = jnp.pad(x, ((0, 0), (1, 1), (1, 1), (0, cin_p - cin)))
    xp = x.reshape(n, hq, 2, wq, 2, cin_p).transpose(0, 2, 4, 1, 3, 5)
    xp = xp.reshape(n * 4, hq, wq, cin_p).astype(jnp.bfloat16)

    w1m = _prep_weight(w1, cin_p, cpad)          # (9, cin_p, cpad) bf16
    w2m = _prep_weight(w2, cpad, cpad)           # (9, cpad,  cpad) bf16
    g2 = jnp.pad(gamma.astype(jnp.float32), (0, cpad - cout)).reshape(1, cpad)
    b2 = jnp.pad(beta.astype(jnp.float32), (0, cpad - cout)).reshape(1, cpad)

    kernel = functools.partial(_fused_block_kernel, n)

    # VMEM footprint: y1 scratch n*4*hq*wq*cpad f32 (~330 KiB here) + weights (~0.3 MiB)
    # + I/O blocks -> ~1.3 MiB, far under v7x's 64 MiB; default scoped limit is fine.
    y2 = pl.pallas_call(
        kernel,
        out_shape=jax.ShapeDtypeStruct((n, ho2, wo2, cpad), jnp.bfloat16),
        grid_spec=pltpu.PrefetchScalarGridSpec(
            num_scalar_prefetch=0,
            grid=(2, n),                          # (phase, batch), phase-major
            in_specs=[
                # per-image input phase block; parked on the last image during phase 1
                pl.BlockSpec((4, hq, wq, cin_p),
                             lambda ph, ni: (ni * (1 - ph) + (n - 1) * ph, 0, 0, 0)),
                # weights / BN params: constant index maps -> resident across the grid
                pl.BlockSpec((9, cin_p, cpad), lambda ph, ni: (0, 0, 0)),
                pl.BlockSpec((9, cpad, cpad), lambda ph, ni: (0, 0, 0)),
                pl.BlockSpec((1, cpad), lambda ph, ni: (0, 0)),
                pl.BlockSpec((1, cpad), lambda ph, ni: (0, 0)),
            ],
            # block 0 during phase 0 (never written, never flushed); image ni in phase 1
            out_specs=pl.BlockSpec((1, ho2, wo2, cpad),
                                   lambda ph, ni: (ni * ph, 0, 0, 0)),
            scratch_shapes=[
                pltpu.VMEM((n * 4, hq, wq, cpad), jnp.float32),   # y1 phase images
                pltpu.VMEM((1, cpad), jnp.float32),               # BN sum
                pltpu.VMEM((1, cpad), jnp.float32),               # BN sum of squares
            ],
        ),
        # Both axes sequential: phase 1 needs all of phase 0's batch statistics and the
        # batch axis accumulates into shared scratch (no megacore sharding here).
        compiler_params=pltpu.CompilerParams(
            dimension_semantics=("arbitrary", "arbitrary")),
    )(xp, w1m, w2m, g2, b2)

    # Drop channel padding, upcast, NHWC -> NCHW (tiny epilogue; conv2 stored as bf16).
    return jnp.transpose(y2[:, :, :, :cout].astype(jnp.float32), (0, 3, 1, 2))


# --------------------------- pure-XLA reference ------------------------------ #
def _reference_forward(x, w1, gamma, beta, w2, stride):
    dn = ("NCHW", "OIHW", "NCHW")
    y = lax.conv_general_dilated(x, w1, (stride, stride), ((1, 1), (1, 1)),
                                 dimension_numbers=dn)
    mean = y.mean(axis=(0, 2, 3), keepdims=True)
    var = ((y - mean) ** 2).mean(axis=(0, 2, 3), keepdims=True)
    y = (y - mean) * lax.rsqrt(var + EPS)
    y = y * gamma.reshape(1, -1, 1, 1) + beta.reshape(1, -1, 1, 1)
    y = jnp.maximum(y, 0.0)
    return lax.conv_general_dilated(y, w2, (2 * stride, 2 * stride),
                                    ((1, 1), (1, 1)), dimension_numbers=dn)


# ----------------------------------- main ------------------------------------ #
if __name__ == "__main__":
    N, CIN, COUT, H, W = 2, 4, 8, 16, 16
    key = jax.random.PRNGKey(0)
    kx, k1, k2, kg, kb = jax.random.split(key, 5)

    x = jax.random.normal(kx, (N, CIN, H, W), dtype=jnp.float32)
    w_conv1 = jax.random.normal(k1, (COUT, CIN, 3, 3), dtype=jnp.float32) * 0.1
    w_conv2 = jax.random.normal(k2, (COUT, COUT, 3, 3), dtype=jnp.float32) * 0.1
    bn_gamma = 1.0 + 0.1 * jax.random.normal(kg, (COUT,), dtype=jnp.float32)
    bn_beta = 0.1 * jax.random.normal(kb, (COUT,), dtype=jnp.float32)

    fwd = jax.jit(basic_block_forward, static_argnames=("stride",))
    out = jax.block_until_ready(fwd(x, w_conv1, bn_gamma, bn_beta, w_conv2, stride=1))
    assert out.shape == (N, COUT, H // 2, W // 2), out.shape

    # Sanity check vs. pure-XLA reference (loose tolerance: bf16 MXU inputs + bf16 out).
    ref = jax.block_until_ready(
        _reference_forward(x, w_conv1, bn_gamma, bn_beta, w_conv2, 1))
    err = float(jnp.max(jnp.abs(out - ref)))
    assert err < 0.15, f"max abs err {err}"

    print("KERNEL_OK")
</pallas_src>

<mosaic_0001>
module attributes {stable_mosaic.version = 11 : i64} {
  func.func @_fused_block_kernel(%arg0: i32, %arg1: i32, %arg2: memref<4x9x9x8xbf16, #tpu.memory_space<vmem>>, %arg3: memref<9x8x128xbf16, #tpu.memory_space<vmem>>, %arg4: memref<9x128x128xbf16, #tpu.memory_space<vmem>>, %arg5: memref<1x128xf32, #tpu.memory_space<vmem>>, %arg6: memref<1x128xf32, #tpu.memory_space<vmem>>, %arg7: memref<1x8x8x128xbf16, #tpu.memory_space<vmem>>, %arg8: memref<8x9x9x128xf32, #tpu.memory_space<vmem>>, %arg9: memref<1x128xf32, #tpu.memory_space<vmem>>, %arg10: memref<1x128xf32, #tpu.memory_space<vmem>>) attributes {dimension_semantics = [#tpu.dimension_semantics<arbitrary>, #tpu.dimension_semantics<arbitrary>], iteration_bounds = array<i64: 2, 2>, scalar_prefetch = 0 : i64, scratch_operands = 3 : i64, tpu.core_type = #tpu.core_type<tc>, window_params = [{transform_indices = @transform_0, window_bounds = array<i64: 4, 9, 9, 8>}, {pipeline_mode = #tpu.pipeline_mode<synchronous>, transform_indices = @transform_1, window_bounds = array<i64: 9, 8, 128>}, {pipeline_mode = #tpu.pipeline_mode<synchronous>, transform_indices = @transform_2, window_bounds = array<i64: 9, 128, 128>}, {pipeline_mode = #tpu.pipeline_mode<synchronous>, transform_indices = @transform_3, window_bounds = array<i64: 1, 128>}, {pipeline_mode = #tpu.pipeline_mode<synchronous>, transform_indices = @transform_4, window_bounds = array<i64: 1, 128>}, {transform_indices = @transform_5, window_bounds = array<i64: 1, 8, 8, 128>}]} {
    %c0_i32 = arith.constant 0 : i32
    %0 = arith.cmpi eq, %arg0, %c0_i32 : i32
    %1 = arith.extui %0 : i1 to i32
    %c0_i32_0 = arith.constant 0 : i32
    %2 = arith.cmpi ne, %1, %c0_i32_0 : i32
    scf.if %2 {
      %c0_i32_2 = arith.constant 0 : i32
      %6 = arith.cmpi eq, %arg1, %c0_i32_2 : i32
      %7 = arith.extui %6 : i1 to i32
      %c0_i32_3 = arith.constant 0 : i32
      %8 = arith.cmpi ne, %7, %c0_i32_3 : i32
      scf.if %8 {
        %cst_376 = arith.constant 0.000000e+00 : f32
        %373 = vector.broadcast %cst_376 : f32 to vector<1x128xf32>
        %c0_377 = arith.constant 0 : index
        %c0_378 = arith.constant 0 : index
        %374 = vector.load %arg9[%c0_377, %c0_378] : memref<1x128xf32, #tpu.memory_space<vmem>>, vector<1x128xf32>
        tpu.vector_store %arg9[%c0_377, %c0_378], %373 {strides = array<i32>} : memref<1x128xf32, #tpu.memory_space<vmem>>, vector<1x128xf32>,
        %cst_379 = arith.constant 0.000000e+00 : f32
        %375 = vector.broadcast %cst_379 : f32 to vector<1x128xf32>
        %c0_380 = arith.constant 0 : index
        %c0_381 = arith.constant 0 : index
        %376 = vector.load %arg10[%c0_380, %c0_381] : memref<1x128xf32, #tpu.memory_space<vmem>>, vector<1x128xf32>
        tpu.vector_store %arg10[%c0_380, %c0_381], %375 {strides = array<i32>} : memref<1x128xf32, #tpu.memory_space<vmem>>, vector<1x128xf32>,
      } else {
      }
      %cst = arith.constant 0.000000e+00 : f32
      %9 = vector.broadcast %cst : f32 to vector<9x9x128xf32>
      %c4_i32 = arith.constant 4 : i32
      %10 = arith.muli %arg1, %c4_i32 : i32
      %c0_i32_4 = arith.constant 0 : i32
      %11 = arith.addi %10, %c0_i32_4 : i32
      %c0_i32_5 = arith.constant 0 : i32
      %12 = arith.addi %11, %c0_i32_5 : i32
      %13 = arith.index_cast %12 : i32 to index
      %c0 = arith.constant 0 : index
      %c0_6 = arith.constant 0 : index
      %c0_7 = arith.constant 0 : index
      %14 = vector.load %arg8[%13, %c0, %c0_6, %c0_7] : memref<8x9x9x128xf32, #tpu.memory_space<vmem>>, vector<1x9x9x128xf32>
      %15 = vector.shape_cast %14 : vector<1x9x9x128xf32> to vector<9x9x128xf32>
      %16 = vector.shape_cast %9 : vector<9x9x128xf32> to vector<1x9x9x128xf32>
      tpu.vector_store %arg8[%13, %c0, %c0_6, %c0_7], %16 {strides = array<i32>} : memref<8x9x9x128xf32, #tpu.memory_space<vmem>>, vector<1x9x9x128xf32>,
      %cst_8 = arith.constant 0.000000e+00 : f32
      %17 = vector.broadcast %cst_8 : f32 to vector<9x9x128xf32>
      %c4_i32_9 = arith.constant 4 : i32
      %18 = arith.muli %arg1, %c4_i32_9 : i32
      %c0_i32_10 = arith.constant 0 : i32
      %19 = arith.addi %18, %c0_i32_10 : i32
      %c1_i32_11 = arith.constant 1 : i32
      %20 = arith.addi %19, %c1_i32_11 : i32
      %21 = arith.index_cast %20 : i32 to index
      %c0_12 = arith.constant 0 : index
      %c0_13 = arith.constant 0 : index
      %c0_14 = arith.constant 0 : index
      %22 = vector.load %arg8[%21, %c0_12, %c0_13, %c0_14] : memref<8x9x9x128xf32, #tpu.memory_space<vmem>>, vector<1x9x9x128xf32>
      %23 = vector.shape_cast %22 : vector<1x9x9x128xf32> to vector<9x9x128xf32>
      %24 = vector.shape_cast %17 : vector<9x9x128xf32> to vector<1x9x9x128xf32>
      tpu.vector_store %arg8[%21, %c0_12, %c0_13, %c0_14], %24 {strides = array<i32>} : memref<8x9x9x128xf32, #tpu.memory_space<vmem>>, vector<1x9x9x128xf32>,
      %cst_15 = arith.constant 0.000000e+00 : f32
      %25 = vector.broadcast %cst_15 : f32 to vector<9x9x128xf32>
      %c4_i32_16 = arith.constant 4 : i32
      %26 = arith.muli %arg1, %c4_i32_16 : i32
      %c2_i32 = arith.constant 2 : i32
      %27 = arith.addi %26, %c2_i32 : i32
      %c0_i32_17 = arith.constant 0 : i32
      %28 = arith.addi %27, %c0_i32_17 : i32
      %29 = arith.index_cast %28 : i32 to index
      %c0_18 = arith.constant 0 : index
      %c0_19 = arith.constant 0 : index
      %c0_20 = arith.constant 0 : index
      %30 = vector.load %arg8[%29, %c0_18, %c0_19, %c0_20] : memref<8x9x9x128xf32, #tpu.memory_space<vmem>>, vector<1x9x9x128xf32>
      %31 = vector.shape_cast %30 : vector<1x9x9x128xf32> to vector<9x9x128xf32>
      %32 = vector.shape_cast %25 : vector<9x9x128xf32> to vector<1x9x9x128xf32>
      tpu.vector_store %arg8[%29, %c0_18, %c0_19, %c0_20], %32 {strides = array<i32>} : memref<8x9x9x128xf32, #tpu.memory_space<vmem>>, vector<1x9x9x128xf32>,
      %cst_21 = arith.constant 0.000000e+00 : f32
      %33 = vector.broadcast %cst_21 : f32 to vector<9x9x128xf32>
      %c4_i32_22 = arith.constant 4 : i32
      %34 = arith.muli %arg1, %c4_i32_22 : i32
      %c2_i32_23 = arith.constant 2 : i32
      %35 = arith.addi %34, %c2_i32_23 : i32
      %c1_i32_24 = arith.constant 1 : i32
      %36 = arith.addi %35, %c1_i32_24 : i32
      %37 = arith.index_cast %36 : i32 to index
      %c0_25 = arith.constant 0 : index
      %c0_26 = arith.constant 0 : index
      %c0_27 = arith.constant 0 : index
      %38 = vector.load %arg8[%37, %c0_25, %c0_26, %c0_27] : memref<8x9x9x128xf32, #tpu.memory_space<vmem>>, vector<1x9x9x128xf32>
      %39 = vector.shape_cast %38 : vector<1x9x9x128xf32> to vector<9x9x128xf32>
      %40 = vector.shape_cast %33 : vector<9x9x128xf32> to vector<1x9x9x128xf32>
      tpu.vector_store %arg8[%37, %c0_25, %c0_26, %c0_27], %40 {strides = array<i32>} : memref<8x9x9x128xf32, #tpu.memory_space<vmem>>, vector<1x9x9x128xf32>,
      %cst_28 = arith.constant 0.000000e+00 : f32
      %41 = vector.broadcast %cst_28 : f32 to vector<64x128xf32>
      %c3 = arith.constant 3 : index
      %c0_29 = arith.constant 0 : index
      %c0_30 = arith.constant 0 : index
      %c0_31 = arith.constant 0 : index
      %42 = vector.load %arg2[%c3, %c0_29, %c0_30, %c0_31] : memref<4x9x9x8xbf16, #tpu.memory_space<vmem>>, vector<1x8x8x8xbf16>
      %43 = vector.shape_cast %42 : vector<1x8x8x8xbf16> to vector<8x8x8xbf16>
      %44 = vector.shape_cast %43 : vector<8x8x8xbf16> to vector<64x8xbf16>
      %c0_32 = arith.constant 0 : index
      %c0_33 = arith.constant 0 : index
      %c0_34 = arith.constant 0 : index
      %45 = vector.load %arg3[%c0_32, %c0_33, %c0_34] : memref<9x8x128xbf16, #tpu.memory_space<vmem>>, vector<1x8x128xbf16>
      %46 = vector.shape_cast %45 : vector<1x8x128xbf16> to vector<8x128xbf16>
      %cst_35 = arith.constant dense<0.000000e+00> : vector<64x128xf32>
      %47 = tpu.matmul %44, %46, %cst_35 {dimension_numbers = #tpu.dot_dimension_numbers<[1], [0], [0], [1], [0, 0, 1, 1], [], []>} : vector<64x8xbf16>, vector<8x128xbf16>, vector<64x128xf32> -> vector<64x128xf32>
      %48 = arith.addf %41, %47 : vector<64x128xf32>
      %c2 = arith.constant 2 : index
      %c0_36 = arith.constant 0 : index
      %c1 = arith.constant 1 : index
      %c0_37 = arith.constant 0 : index
      %49 = vector.load %arg2[%c2, %c0_36, %c1, %c0_37] : memref<4x9x9x8xbf16, #tpu.memory_space<vmem>>, vector<1x8x8x8xbf16>
      %50 = vector.shape_cast %49 : vector<1x8x8x8xbf16> to vector<8x8x8xbf16>
      %51 = vector.shape_cast %50 : vector<8x8x8xbf16> to vector<64x8xbf16>
      %c1_38 = arith.constant 1 : index
      %c0_39 = arith.constant 0 : index
      %c0_40 = arith.constant 0 : index
      %52 = vector.load %arg3[%c1_38, %c0_39, %c0_40] : memref<9x8x128xbf16, #tpu.memory_space<vmem>>, vector<1x8x128xbf16>
      %53 = vector.shape_cast %52 : vector<1x8x128xbf16> to vector<8x128xbf16>
      %cst_41 = arith.constant dense<0.000000e+00> : vector<64x128xf32>
      %54 = tpu.matmul %51, %53, %cst_41 {dimension_numbers = #tpu.dot_dimension_numbers<[1], [0], [0], [1], [0, 0, 1, 1], [], []>} : vector<64x8xbf16>, vector<8x128xbf16>, vector<64x128xf32> -> vector<64x128xf32>
      %55 = arith.addf %48, %54 : vector<64x128xf32>
      %c3_42 = arith.constant 3 : index
      %c0_43 = arith.constant 0 : index
      %c1_44 = arith.constant 1 : index
      %c0_45 = arith.constant 0 : index
      %56 = vector.load %arg2[%c3_42, %c0_43, %c1_44, %c0_45] : memref<4x9x9x8xbf16, #tpu.memory_space<vmem>>, vector<1x8x8x8xbf16>
      %57 = vector.shape_cast %56 : vector<1x8x8x8xbf16> to vector<8x8x8xbf16>
      %58 = vector.shape_cast %57 : vector<8x8x8xbf16> to vector<64x8xbf16>
      %c2_46 = arith.constant 2 : index
      %c0_47 = arith.constant 0 : index
      %c0_48 = arith.constant 0 : index
      %59 = vector.load %arg3[%c2_46, %c0_47, %c0_48] : memref<9x8x128xbf16, #tpu.memory_space<vmem>>, vector<1x8x128xbf16>
      %60 = vector.shape_cast %59 : vector<1x8x128xbf16> to vector<8x128xbf16>
      %cst_49 = arith.constant dense<0.000000e+00> : vector<64x128xf32>
      %61 = tpu.matmul %58, %60, %cst_49 {dimension_numbers = #tpu.dot_dimension_numbers<[1], [0], [0], [1], [0, 0, 1, 1], [], []>} : vector<64x8xbf16>, vector<8x128xbf16>, vector<64x128xf32> -> vector<64x128xf32>
      %62 = arith.addf %55, %61 : vector<64x128xf32>
      %c1_50 = arith.constant 1 : index
      %c1_51 = arith.constant 1 : index
      %c0_52 = arith.constant 0 : index
      %c0_53 = arith.constant 0 : index
      %63 = vector.load %arg2[%c1_50, %c1_51, %c0_52, %c0_53] : memref<4x9x9x8xbf16, #tpu.memory_space<vmem>>, vector<1x8x8x8xbf16>
      %64 = vector.shape_cast %63 : vector<1x8x8x8xbf16> to vector<8x8x8xbf16>
      %65 = vector.shape_cast %64 : vector<8x8x8xbf16> to vector<64x8xbf16>
      %c3_54 = arith.constant 3 : index
      %c0_55 = arith.constant 0 : index
      %c0_56 = arith.constant 0 : index
      %66 = vector.load %arg3[%c3_54, %c0_55, %c0_56] : memref<9x8x128xbf16, #tpu.memory_space<vmem>>, vector<1x8x128xbf16>
      %67 = vector.shape_cast %66 : vector<1x8x128xbf16> to vector<8x128xbf16>
      %cst_57 = arith.constant dense<0.000000e+00> : vector<64x128xf32>
      %68 = tpu.matmul %65, %67, %cst_57 {dimension_numbers = #tpu.dot_dimension_numbers<[1], [0], [0], [1], [0, 0, 1, 1], [], []>} : vector<64x8xbf16>, vector<8x128xbf16>, vector<64x128xf32> -> vector<64x128xf32>
      %69 = arith.addf %62, %68 : vector<64x128xf32>
      %c0_58 = arith.constant 0 : index
      %c1_59 = arith.constant 1 : index
      %c1_60 = arith.constant 1 : index
      %c0_61 = arith.constant 0 : index
      %70 = vector.load %arg2[%c0_58, %c1_59, %c1_60, %c0_61] : memref<4x9x9x8xbf16, #tpu.memory_space<vmem>>, vector<1x8x8x8xbf16>
      %71 = vector.shape_cast %70 : vector<1x8x8x8xbf16> to vector<8x8x8xbf16>
      %72 = vector.shape_cast %71 : vector<8x8x8xbf16> to vector<64x8xbf16>
      %c4 = arith.constant 4 : index
      %c0_62 = arith.constant 0 : index
      %c0_63 = arith.constant 0 : index
      %73 = vector.load %arg3[%c4, %c0_62, %c0_63] : memref<9x8x128xbf16, #tpu.memory_space<vmem>>, vector<1x8x128xbf16>
      %74 = vector.shape_cast %73 : vector<1x8x128xbf16> to vector<8x128xbf16>
      %cst_64 = arith.constant dense<0.000000e+00> : vector<64x128xf32>
      %75 = tpu.matmul %72, %74, %cst_64 {dimension_numbers = #tpu.dot_dimension_numbers<[1], [0], [0], [1], [0, 0, 1, 1], [], []>} : vector<64x8xbf16>, vector<8x128xbf16>, vector<64x128xf32> -> vector<64x128xf32>
      %76 = arith.addf %69, %75 : vector<64x128xf32>
      %c1_65 = arith.constant 1 : index
      %c1_66 = arith.constant 1 : index
      %c1_67 = arith.constant 1 : index
      %c0_68 = arith.constant 0 : index
      %77 = vector.load %arg2[%c1_65, %c1_66, %c1_67, %c0_68] : memref<4x9x9x8xbf16, #tpu.memory_space<vmem>>, vector<1x8x8x8xbf16>
      %78 = vector.shape_cast %77 : vector<1x8x8x8xbf16> to vector<8x8x8xbf16>
      %79 = vector.shape_cast %78 : vector<8x8x8xbf16> to vector<64x8xbf16>
      %c5 = arith.constant 5 : index
      %c0_69 = arith.constant 0 : index
      %c0_70 = arith.constant 0 : index
      %80 = vector.load %arg3[%c5, %c0_69, %c0_70] : memref<9x8x128xbf16, #tpu.memory_space<vmem>>, vector<1x8x128xbf16>
      %81 = vector.shape_cast %80 : vector<1x8x128xbf16> to vector<8x128xbf16>
      %cst_71 = arith.constant dense<0.000000e+00> : vector<64x128xf32>
      %82 = tpu.matmul %79, %81, %cst_71 {dimension_numbers = #tpu.dot_dimension_numbers<[1], [0], [0], [1], [0, 0, 1, 1], [], []>} : vector<64x8xbf16>, vector<8x128xbf16>, vector<64x128xf32> -> vector<64x128xf32>
      %83 = arith.addf %76, %82 : vector<64x128xf32>
      %c3_72 = arith.constant 3 : index
      %c1_73 = arith.constant 1 : index
      %c0_74 = arith.constant 0 : index
      %c0_75 = arith.constant 0 : index
      %84 = vector.load %arg2[%c3_72, %c1_73, %c0_74, %c0_75] : memref<4x9x9x8xbf16, #tpu.memory_space<vmem>>, vector<1x8x8x8xbf16>
      %85 = vector.shape_cast %84 : vector<1x8x8x8xbf16> to vector<8x8x8xbf16>
      %86 = vector.shape_cast %85 : vector<8x8x8xbf16> to vector<64x8xbf16>
      %c6 = arith.constant 6 : index
      %c0_76 = arith.constant 0 : index
      %c0_77 = arith.constant 0 : index
      %87 = vector.load %arg3[%c6, %c0_76, %c0_77] : memref<9x8x128xbf16, #tpu.memory_space<vmem>>, vector<1x8x128xbf16>
      %88 = vector.shape_cast %87 : vector<1x8x128xbf16> to vector<8x128xbf16>
      %cst_78 = arith.constant dense<0.000000e+00> : vector<64x128xf32>
      %89 = tpu.matmul %86, %88, %cst_78 {dimension_numbers = #tpu.dot_dimension_numbers<[1], [0], [0], [1], [0, 0, 1, 1], [], []>} : vector<64x8xbf16>, vector<8x128xbf16>, vector<64x128xf32> -> vector<64x128xf32>
      %90 = arith.addf %83, %89 : vector<64x128xf32>
      %c2_79 = arith.constant 2 : index
      %c1_80 = arith.constant 1 : index
      %c1_81 = arith.constant 1 : index
      %c0_82 = arith.constant 0 : index
      %91 = vector.load %arg2[%c2_79, %c1_80, %c1_81, %c0_82] : memref<4x9x9x8xbf16, #tpu.memory_space<vmem>>, vector<1x8x8x8xbf16>
      %92 = vector.shape_cast %91 : vector<1x8x8x8xbf16> to vector<8x8x8xbf16>
      %93 = vector.shape_cast %92 : vector<8x8x8xbf16> to vector<64x8xbf16>
      %c7 = arith.constant 7 : index
      %c0_83 = arith.constant 0 : index
      %c0_84 = arith.constant 0 : index
      %94 = vector.load %arg3[%c7, %c0_83, %c0_84] : memref<9x8x128xbf16, #tpu.memory_space<vmem>>, vector<1x8x128xbf16>
      %95 = vector.shape_cast %94 : vector<1x8x128xbf16> to vector<8x128xbf16>
      %cst_85 = arith.constant dense<0.000000e+00> : vector<64x128xf32>
      %96 = tpu.matmul %93, %95, %cst_85 {dimension_numbers = #tpu.dot_dimension_numbers<[1], [0], [0], [1], [0, 0, 1, 1], [], []>} : vector<64x8xbf16>, vector<8x128xbf16>, vector<64x128xf32> -> vector<64x128xf32>
      %97 = arith.addf %90, %96 : vector<64x128xf32>
      %c3_86 = arith.constant 3 : index
      %c1_87 = arith.constant 1 : index
      %c1_88 = arith.constant 1 : index
      %c0_89 = arith.constant 0 : index
      %98 = vector.load %arg2[%c3_86, %c1_87, %c1_88, %c0_89] : memref<4x9x9x8xbf16, #tpu.memory_space<vmem>>, vector<1x8x8x8xbf16>
      %99 = vector.shape_cast %98 : vector<1x8x8x8xbf16> to vector<8x8x8xbf16>
      %100 = vector.shape_cast %99 : vector<8x8x8xbf16> to vector<64x8xbf16>
      %c8 = arith.constant 8 : index
      %c0_90 = arith.constant 0 : index
      %c0_91 = arith.constant 0 : index
      %101 = vector.load %arg3[%c8, %c0_90, %c0_91] : memref<9x8x128xbf16, #tpu.memory_space<vmem>>, vector<1x8x128xbf16>
      %102 = vector.shape_cast %101 : vector<1x8x128xbf16> to vector<8x128xbf16>
      %cst_92 = arith.constant dense<0.000000e+00> : vector<64x128xf32>
      %103 = tpu.matmul %100, %102, %cst_92 {dimension_numbers = #tpu.dot_dimension_numbers<[1], [0], [0], [1], [0, 0, 1, 1], [], []>} : vector<64x8xbf16>, vector<8x128xbf16>, vector<64x128xf32> -> vector<64x128xf32>
      %104 = arith.addf %97, %103 : vector<64x128xf32>
      %c4_i32_93 = arith.constant 4 : i32
      %105 = arith.muli %arg1, %c4_i32_93 : i32
      %c0_i32_94 = arith.constant 0 : i32
      %106 = arith.addi %105, %c0_i32_94 : i32
      %c0_i32_95 = arith.constant 0 : i32
      %107 = arith.addi %106, %c0_i32_95 : i32
      %108 = vector.shape_cast %104 : vector<64x128xf32> to vector<8x8x128xf32>
      %109 = arith.index_cast %107 : i32 to index
      %c1_96 = arith.constant 1 : index
      %c1_97 = arith.constant 1 : index
      %c0_98 = arith.constant 0 : index
      %110 = vector.load %arg8[%109, %c1_96, %c1_97, %c0_98] : memref<8x9x9x128xf32, #tpu.memory_space<vmem>>, vector<1x8x8x128xf32>
      %111 = vector.shape_cast %110 : vector<1x8x8x128xf32> to vector<8x8x128xf32>
      %112 = vector.shape_cast %108 : vector<8x8x128xf32> to vector<1x8x8x128xf32>
      tpu.vector_store %arg8[%109, %c1_96, %c1_97, %c0_98], %112 {strides = array<i32>} : memref<8x9x9x128xf32, #tpu.memory_space<vmem>>, vector<1x8x8x128xf32>,
      %c0_99 = arith.constant 0 : index
      %c0_100 = arith.constant 0 : index
      %113 = vector.load %arg9[%c0_99, %c0_100] : memref<1x128xf32, #tpu.memory_space<vmem>>, vector<1x128xf32>
      %cst_101 = arith.constant dense<0.000000e+00> : vector<128xf32>
      %114 = vector.multi_reduction <add>, %104, %cst_101 [0] : vector<64x128xf32> to vector<128xf32>
      %115 = vector.shape_cast %114 : vector<128xf32> to vector<1x128xf32>
      %116 = arith.addf %113, %115 : vector<1x128xf32>
      %c0_102 = arith.constant 0 : index
      %c0_103 = arith.constant 0 : index
      %117 = vector.load %arg9[%c0_102, %c0_103] : memref<1x128xf32, #tpu.memory_space<vmem>>, vector<1x128xf32>
      tpu.vector_store %arg9[%c0_102, %c0_103], %116 {strides = array<i32>} : memref<1x128xf32, #tpu.memory_space<vmem>>, vector<1x128xf32>,
      %c0_104 = arith.constant 0 : index
      %c0_105 = arith.constant 0 : index
      %118 = vector.load %arg10[%c0_104, %c0_105] : memref<1x128xf32, #tpu.memory_space<vmem>>, vector<1x128xf32>
      %119 = arith.mulf %104, %104 : vector<64x128xf32>
      %cst_106 = arith.constant dense<0.000000e+00> : vector<128xf32>
      %120 = vector.multi_reduction <add>, %119, %cst_106 [0] : vector<64x128xf32> to vector<128xf32>
      %121 = vector.shape_cast %120 : vector<128xf32> to vector<1x128xf32>
      %122 = arith.addf %118, %121 : vector<1x128xf32>
      %c0_107 = arith.constant 0 : index
      %c0_108 = arith.constant 0 : index
      %123 = vector.load %arg10[%c0_107, %c0_108] : memref<1x128xf32, #tpu.memory_space<vmem>>, vector<1x128xf32>
      tpu.vector_store %arg10[%c0_107, %c0_108], %122 {strides = array<i32>} : memref<1x128xf32, #tpu.memory_space<vmem>>, vector<1x128xf32>,
      %cst_109 = arith.constant 0.000000e+00 : f32
      %124 = vector.broadcast %cst_109 : f32 to vector<64x128xf32>
      %c2_110 = arith.constant 2 : index
      %c0_111 = arith.constant 0 : index
      %c0_112 = arith.constant 0 : index
      %c0_113 = arith.constant 0 : index
      %125 = vector.load %arg2[%c2_110, %c0_111, %c0_112, %c0_113] : memref<4x9x9x8xbf16, #tpu.memory_space<vmem>>, vector<1x8x8x8xbf16>
      %126 = vector.shape_cast %125 : vector<1x8x8x8xbf16> to vector<8x8x8xbf16>
      %127 = vector.shape_cast %126 : vector<8x8x8xbf16> to vector<64x8xbf16>
      %c0_114 = arith.constant 0 : index
      %c0_115 = arith.constant 0 : index
      %c0_116 = arith.constant 0 : index
      %128 = vector.load %arg3[%c0_114, %c0_115, %c0_116] : memref<9x8x128xbf16, #tpu.memory_space<vmem>>, vector<1x8x128xbf16>
      %129 = vector.shape_cast %128 : vector<1x8x128xbf16> to vector<8x128xbf16>
      %cst_117 = arith.constant dense<0.000000e+00> : vector<64x128xf32>
      %130 = tpu.matmul %127, %129, %cst_117 {dimension_numbers = #tpu.dot_dimension_numbers<[1], [0], [0], [1], [0, 0, 1, 1], [], []>} : vector<64x8xbf16>, vector<8x128xbf16>, vector<64x128xf32> -> vector<64x128xf32>
      %131 = arith.addf %124, %130 : vector<64x128xf32>
      %c3_118 = arith.constant 3 : index
      %c0_119 = arith.constant 0 : index
      %c0_120 = arith.constant 0 : index
      %c0_121 = arith.constant 0 : index
      %132 = vector.load %arg2[%c3_118, %c0_119, %c0_120, %c0_121] : memref<4x9x9x8xbf16, #tpu.memory_space<vmem>>, vector<1x8x8x8xbf16>
      %133 = vector.shape_cast %132 : vector<1x8x8x8xbf16> to vector<8x8x8xbf16>
      %134 = vector.shape_cast %133 : vector<8x8x8xbf16> to vector<64x8xbf16>
      %c1_122 = arith.constant 1 : index
      %c0_123 = arith.constant 0 : index
      %c0_124 = arith.constant 0 : index
      %135 = vector.load %arg3[%c1_122, %c0_123, %c0_124] : memref<9x8x128xbf16, #tpu.memory_space<vmem>>, vector<1x8x128xbf16>
      %136 = vector.shape_cast %135 : vector<1x8x128xbf16> to vector<8x128xbf16>
      %cst_125 = arith.constant dense<0.000000e+00> : vector<64x128xf32>
      %137 = tpu.matmul %134, %136, %cst_125 {dimension_numbers = #tpu.dot_dimension_numbers<[1], [0], [0], [1], [0, 0, 1, 1], [], []>} : vector<64x8xbf16>, vector<8x128xbf16>, vector<64x128xf32> -> vector<64x128xf32>
      %138 = arith.addf %131, %137 : vector<64x128xf32>
      %c2_126 = arith.constant 2 : index
      %c0_127 = arith.constant 0 : index
      %c1_128 = arith.constant 1 : index
      %c0_129 = arith.constant 0 : index
      %139 = vector.load %arg2[%c2_126, %c0_127, %c1_128, %c0_129] : memref<4x9x9x8xbf16, #tpu.memory_space<vmem>>, vector<1x8x8x8xbf16>
      %140 = vector.shape_cast %139 : vector<1x8x8x8xbf16> to vector<8x8x8xbf16>
      %141 = vector.shape_cast %140 : vector<8x8x8xbf16> to vector<64x8xbf16>
      %c2_130 = arith.constant 2 : index
      %c0_131 = arith.constant 0 : index
      %c0_132 = arith.constant 0 : index
      %142 = vector.load %arg3[%c2_130, %c0_131, %c0_132] : memref<9x8x128xbf16, #tpu.memory_space<vmem>>, vector<1x8x128xbf16>
      %143 = vector.shape_cast %142 : vector<1x8x128xbf16> to vector<8x128xbf16>
      %cst_133 = arith.constant dense<0.000000e+00> : vector<64x128xf32>
      %144 = tpu.matmul %141, %143, %cst_133 {dimension_numbers = #tpu.dot_dimension_numbers<[1], [0], [0], [1], [0, 0, 1, 1], [], []>} : vector<64x8xbf16>, vector<8x128xbf16>, vector<64x128xf32> -> vector<64x128xf32>
      %145 = arith.addf %138, %144 : vector<64x128xf32>
      %c0_134 = arith.constant 0 : index
      %c1_135 = arith.constant 1 : index
      %c0_136 = arith.constant 0 : index
      %c0_137 = arith.constant 0 : index
      %146 = vector.load %arg2[%c0_134, %c1_135, %c0_136, %c0_137] : memref<4x9x9x8xbf16, #tpu.memory_space<vmem>>, vector<1x8x8x8xbf16>
      %147 = vector.shape_cast %146 : vector<1x8x8x8xbf16> to vector<8x8x8xbf16>
      %148 = vector.shape_cast %147 : vector<8x8x8xbf16> to vector<64x8xbf16>
      %c3_138 = arith.constant 3 : index
      %c0_139 = arith.constant 0 : index
      %c0_140 = arith.constant 0 : index
      %149 = vector.load %arg3[%c3_138, %c0_139, %c0_140] : memref<9x8x128xbf16, #tpu.memory_space<vmem>>, vector<1x8x128xbf16>
      %150 = vector.shape_cast %149 : vector<1x8x128xbf16> to vector<8x128xbf16>
      %cst_141 = arith.constant dense<0.000000e+00> : vector<64x128xf32>
      %151 = tpu.matmul %148, %150, %cst_141 {dimension_numbers = #tpu.dot_dimension_numbers<[1], [0], [0], [1], [0, 0, 1, 1], [], []>} : vector<64x8xbf16>, vector<8x128xbf16>, vector<64x128xf32> -> vector<64x128xf32>
      %152 = arith.addf %145, %151 : vector<64x128xf32>
      %c1_142 = arith.constant 1 : index
      %c1_143 = arith.constant 1 : index
      %c0_144 = arith.constant 0 : index
      %c0_145 = arith.constant 0 : index
      %153 = vector.load %arg2[%c1_142, %c1_143, %c0_144, %c0_145] : memref<4x9x9x8xbf16, #tpu.memory_space<vmem>>, vector<1x8x8x8xbf16>
      %154 = vector.shape_cast %153 : vector<1x8x8x8xbf16> to vector<8x8x8xbf16>
      %155 = vector.shape_cast %154 : vector<8x8x8xbf16> to vector<64x8xbf16>
      %c4_146 = arith.constant 4 : index
      %c0_147 = arith.constant 0 : index
      %c0_148 = arith.constant 0 : index
      %156 = vector.load %arg3[%c4_146, %c0_147, %c0_148] : memref<9x8x128xbf16, #tpu.memory_space<vmem>>, vector<1x8x128xbf16>
      %157 = vector.shape_cast %156 : vector<1x8x128xbf16> to vector<8x128xbf16>
      %cst_149 = arith.constant dense<0.000000e+00> : vector<64x128xf32>
      %158 = tpu.matmul %155, %157, %cst_149 {dimension_numbers = #tpu.dot_dimension_numbers<[1], [0], [0], [1], [0, 0, 1, 1], [], []>} : vector<64x8xbf16>, vector<8x128xbf16>, vector<64x128xf32> -> vector<64x128xf32>
      %159 = arith.addf %152, %158 : vector<64x128xf32>
      %c0_150 = arith.constant 0 : index
      %c1_151 = arith.constant 1 : index
      %c1_152 = arith.constant 1 : index
      %c0_153 = arith.constant 0 : index
      %160 = vector.load %arg2[%c0_150, %c1_151, %c1_152, %c0_153] : memref<4x9x9x8xbf16, #tpu.memory_space<vmem>>, vector<1x8x8x8xbf16>
      %161 = vector.shape_cast %160 : vector<1x8x8x8xbf16> to vector<8x8x8xbf16>
      %162 = vector.shape_cast %161 : vector<8x8x8xbf16> to vector<64x8xbf16>
      %c5_154 = arith.constant 5 : index
      %c0_155 = arith.constant 0 : index
      %c0_156 = arith.constant 0 : index
      %163 = vector.load %arg3[%c5_154, %c0_155, %c0_156] : memref<9x8x128xbf16, #tpu.memory_space<vmem>>, vector<1x8x128xbf16>
      %164 = vector.shape_cast %163 : vector<1x8x128xbf16> to vector<8x128xbf16>
      %cst_157 = arith.constant dense<0.000000e+00> : vector<64x128xf32>
      %165 = tpu.matmul %162, %164, %cst_157 {dimension_numbers = #tpu.dot_dimension_numbers<[1], [0], [0], [1], [0, 0, 1, 1], [], []>} : vector<64x8xbf16>, vector<8x128xbf16>, vector<64x128xf32> -> vector<64x128xf32>
      %166 = arith.addf %159, %165 : vector<64x128xf32>
      %c2_158 = arith.constant 2 : index
      %c1_159 = arith.constant 1 : index
      %c0_160 = arith.constant 0 : index
      %c0_161 = arith.constant 0 : index
      %167 = vector.load %arg2[%c2_158, %c1_159, %c0_160, %c0_161] : memref<4x9x9x8xbf16, #tpu.memory_space<vmem>>, vector<1x8x8x8xbf16>
      %168 = vector.shape_cast %167 : vector<1x8x8x8xbf16> to vector<8x8x8xbf16>
      %169 = vector.shape_cast %168 : vector<8x8x8xbf16> to vector<64x8xbf16>
      %c6_162 = arith.constant 6 : index
      %c0_163 = arith.constant 0 : index
      %c0_164 = arith.constant 0 : index
      %170 = vector.load %arg3[%c6_162, %c0_163, %c0_164] : memref<9x8x128xbf16, #tpu.memory_space<vmem>>, vector<1x8x128xbf16>
      %171 = vector.shape_cast %170 : vector<1x8x128xbf16> to vector<8x128xbf16>
      %cst_165 = arith.constant dense<0.000000e+00> : vector<64x128xf32>
      %172 = tpu.matmul %169, %171, %cst_165 {dimension_numbers = #tpu.dot_dimension_numbers<[1], [0], [0], [1], [0, 0, 1, 1], [], []>} : vector<64x8xbf16>, vector<8x128xbf16>, vector<64x128xf32> -> vector<64x128xf32>
      %173 = arith.addf %166, %172 : vector<64x128xf32>
      %c3_166 = arith.constant 3 : index
      %c1_167 = arith.constant 1 : index
      %c0_168 = arith.constant 0 : index
      %c0_169 = arith.constant 0 : index
      %174 = vector.load %arg2[%c3_166, %c1_167, %c0_168, %c0_169] : memref<4x9x9x8xbf16, #tpu.memory_space<vmem>>, vector<1x8x8x8xbf16>
      %175 = vector.shape_cast %174 : vector<1x8x8x8xbf16> to vector<8x8x8xbf16>
      %176 = vector.shape_cast %175 : vector<8x8x8xbf16> to vector<64x8xbf16>
      %c7_170 = arith.constant 7 : index
      %c0_171 = arith.constant 0 : index
      %c0_172 = arith.constant 0 : index
      %177 = vector.load %arg3[%c7_170, %c0_171, %c0_172] : memref<9x8x128xbf16, #tpu.memory_space<vmem>>, vector<1x8x128xbf16>
      %178 = vector.shape_cast %177 : vector<1x8x128xbf16> to vector<8x128xbf16>
      %cst_173 = arith.constant dense<0.000000e+00> : vector<64x128xf32>
      %179 = tpu.matmul %176, %178, %cst_173 {dimension_numbers = #tpu.dot_dimension_numbers<[1], [0], [0], [1], [0, 0, 1, 1], [], []>} : vector<64x8xbf16>, vector<8x128xbf16>, vector<64x128xf32> -> vector<64x128xf32>
      %180 = arith.addf %173, %179 : vector<64x128xf32>
      %c2_174 = arith.constant 2 : index
      %c1_175 = arith.constant 1 : index
      %c1_176 = arith.constant 1 : index
      %c0_177 = arith.constant 0 : index
      %181 = vector.load %arg2[%c2_174, %c1_175, %c1_176, %c0_177] : memref<4x9x9x8xbf16, #tpu.memory_space<vmem>>, vector<1x8x8x8xbf16>
      %182 = vector.shape_cast %181 : vector<1x8x8x8xbf16> to vector<8x8x8xbf16>
      %183 = vector.shape_cast %182 : vector<8x8x8xbf16> to vector<64x8xbf16>
      %c8_178 = arith.constant 8 : index
      %c0_179 = arith.constant 0 : index
      %c0_180 = arith.constant 0 : index
      %184 = vector.load %arg3[%c8_178, %c0_179, %c0_180] : memref<9x8x128xbf16, #tpu.memory_space<vmem>>, vector<1x8x128xbf16>
      %185 = vector.shape_cast %184 : vector<1x8x128xbf16> to vector<8x128xbf16>
      %cst_181 = arith.constant dense<0.000000e+00> : vector<64x128xf32>
      %186 = tpu.matmul %183, %185, %cst_181 {dimension_numbers = #tpu.dot_dimension_numbers<[1], [0], [0], [1], [0, 0, 1, 1], [], []>} : vector<64x8xbf16>, vector<8x128xbf16>, vector<64x128xf32> -> vector<64x128xf32>
      %187 = arith.addf %180, %186 : vector<64x128xf32>
      %c4_i32_182 = arith.constant 4 : i32
      %188 = arith.muli %arg1, %c4_i32_182 : i32
      %c0_i32_183 = arith.constant 0 : i32
      %189 = arith.addi %188, %c0_i32_183 : i32
      %c1_i32_184 = arith.constant 1 : i32
      %190 = arith.addi %189, %c1_i32_184 : i32
      %191 = vector.shape_cast %187 : vector<64x128xf32> to vector<8x8x128xf32>
      %192 = arith.index_cast %190 : i32 to index
      %c1_185 = arith.constant 1 : index
      %c0_186 = arith.constant 0 : index
      %c0_187 = arith.constant 0 : index
      %193 = vector.load %arg8[%192, %c1_185, %c0_186, %c0_187] : memref<8x9x9x128xf32, #tpu.memory_space<vmem>>, vector<1x8x8x128xf32>
      %194 = vector.shape_cast %193 : vector<1x8x8x128xf32> to vector<8x8x128xf32>
      %195 = vector.shape_cast %191 : vector<8x8x128xf32> to vector<1x8x8x128xf32>
      tpu.vector_store %arg8[%192, %c1_185, %c0_186, %c0_187], %195 {strides = array<i32>} : memref<8x9x9x128xf32, #tpu.memory_space<vmem>>, vector<1x8x8x128xf32>,
      %c0_188 = arith.constant 0 : index
      %c0_189 = arith.constant 0 : index
      %196 = vector.load %arg9[%c0_188, %c0_189] : memref<1x128xf32, #tpu.memory_space<vmem>>, vector<1x128xf32>
      %cst_190 = arith.constant dense<0.000000e+00> : vector<128xf32>
      %197 = vector.multi_reduction <add>, %187, %cst_190 [0] : vector<64x128xf32> to vector<128xf32>
      %198 = vector.shape_cast %197 : vector<128xf32> to vector<1x128xf32>
      %199 = arith.addf %196, %198 : vector<1x128xf32>
      %c0_191 = arith.constant 0 : index
      %c0_192 = arith.constant 0 : index
      %200 = vector.load %arg9[%c0_191, %c0_192] : memref<1x128xf32, #tpu.memory_space<vmem>>, vector<1x128xf32>
      tpu.vector_store %arg9[%c0_191, %c0_192], %199 {strides = array<i32>} : memref<1x128xf32, #tpu.memory_space<vmem>>, vector<1x128xf32>,
      %c0_193 = arith.constant 0 : index
      %c0_194 = arith.constant 0 : index
      %201 = vector.load %arg10[%c0_193, %c0_194] : memref<1x128xf32, #tpu.memory_space<vmem>>, vector<1x128xf32>
      %202 = arith.mulf %187, %187 : vector<64x128xf32>
      %cst_195 = arith.constant dense<0.000000e+00> : vector<128xf32>
      %203 = vector.multi_reduction <add>, %202, %cst_195 [0] : vector<64x128xf32> to vector<128xf32>
      %204 = vector.shape_cast %203 : vector<128xf32> to vector<1x128xf32>
      %205 = arith.addf %201, %204 : vector<1x128xf32>
      %c0_196 = arith.constant 0 : index
      %c0_197 = arith.constant 0 : index
      %206 = vector.load %arg10[%c0_196, %c0_197] : memref<1x128xf32, #tpu.memory_space<vmem>>, vector<1x128xf32>
      tpu.vector_store %arg10[%c0_196, %c0_197], %205 {strides = array<i32>} : memref<1x128xf32, #tpu.memory_space<vmem>>, vector<1x128xf32>,
      %cst_198 = arith.constant 0.000000e+00 : f32
      %207 = vector.broadcast %cst_198 : f32 to vector<64x128xf32>
      %c1_199 = arith.constant 1 : index
      %c0_200 = arith.constant 0 : index
      %c0_201 = arith.constant 0 : index
      %c0_202 = arith.constant 0 : index
      %208 = vector.load %arg2[%c1_199, %c0_200, %c0_201, %c0_202] : memref<4x9x9x8xbf16, #tpu.memory_space<vmem>>, vector<1x8x8x8xbf16>
      %209 = vector.shape_cast %208 : vector<1x8x8x8xbf16> to vector<8x8x8xbf16>
      %210 = vector.shape_cast %209 : vector<8x8x8xbf16> to vector<64x8xbf16>
      %c0_203 = arith.constant 0 : index
      %c0_204 = arith.constant 0 : index
      %c0_205 = arith.constant 0 : index
      %211 = vector.load %arg3[%c0_203, %c0_204, %c0_205] : memref<9x8x128xbf16, #tpu.memory_space<vmem>>, vector<1x8x128xbf16>
      %212 = vector.shape_cast %211 : vector<1x8x128xbf16> to vector<8x128xbf16>
      %cst_206 = arith.constant dense<0.000000e+00> : vector<64x128xf32>
      %213 = tpu.matmul %210, %212, %cst_206 {dimension_numbers = #tpu.dot_dimension_numbers<[1], [0], [0], [1], [0, 0, 1, 1], [], []>} : vector<64x8xbf16>, vector<8x128xbf16>, vector<64x128xf32> -> vector<64x128xf32>
      %214 = arith.addf %207, %213 : vector<64x128xf32>
      %c0_207 = arith.constant 0 : index
      %c0_208 = arith.constant 0 : index
      %c1_209 = arith.constant 1 : index
      %c0_210 = arith.constant 0 : index
      %215 = vector.load %arg2[%c0_207, %c0_208, %c1_209, %c0_210] : memref<4x9x9x8xbf16, #tpu.memory_space<vmem>>, vector<1x8x8x8xbf16>
      %216 = vector.shape_cast %215 : vector<1x8x8x8xbf16> to vector<8x8x8xbf16>
      %217 = vector.shape_cast %216 : vector<8x8x8xbf16> to vector<64x8xbf16>
      %c1_211 = arith.constant 1 : index
      %c0_212 = arith.constant 0 : index
      %c0_213 = arith.constant 0 : index
      %218 = vector.load %arg3[%c1_211, %c0_212, %c0_213] : memref<9x8x128xbf16, #tpu.memory_space<vmem>>, vector<1x8x128xbf16>
      %219 = vector.shape_cast %218 : vector<1x8x128xbf16> to vector<8x128xbf16>
      %cst_214 = arith.constant dense<0.000000e+00> : vector<64x128xf32>
      %220 = tpu.matmul %217, %219, %cst_214 {dimension_numbers = #tpu.dot_dimension_numbers<[1], [0], [0], [1], [0, 0, 1, 1], [], []>} : vector<64x8xbf16>, vector<8x128xbf16>, vector<64x128xf32> -> vector<64x128xf32>
      %221 = arith.addf %214, %220 : vector<64x128xf32>
      %c1_215 = arith.constant 1 : index
      %c0_216 = arith.constant 0 : index
      %c1_217 = arith.constant 1 : index
      %c0_218 = arith.constant 0 : index
      %222 = vector.load %arg2[%c1_215, %c0_216, %c1_217, %c0_218] : memref<4x9x9x8xbf16, #tpu.memory_space<vmem>>, vector<1x8x8x8xbf16>
      %223 = vector.shape_cast %222 : vector<1x8x8x8xbf16> to vector<8x8x8xbf16>
      %224 = vector.shape_cast %223 : vector<8x8x8xbf16> to vector<64x8xbf16>
      %c2_219 = arith.constant 2 : index
      %c0_220 = arith.constant 0 : index
      %c0_221 = arith.constant 0 : index
      %225 = vector.load %arg3[%c2_219, %c0_220, %c0_221] : memref<9x8x128xbf16, #tpu.memory_space<vmem>>, vector<1x8x128xbf16>
      %226 = vector.shape_cast %225 : vector<1x8x128xbf16> to vector<8x128xbf16>
      %cst_222 = arith.constant dense<0.000000e+00> : vector<64x128xf32>
      %227 = tpu.matmul %224, %226, %cst_222 {dimension_numbers = #tpu.dot_dimension_numbers<[1], [0], [0], [1], [0, 0, 1, 1], [], []>} : vector<64x8xbf16>, vector<8x128xbf16>, vector<64x128xf32> -> vector<64x128xf32>
      %228 = arith.addf %221, %227 : vector<64x128xf32>
      %c3_223 = arith.constant 3 : index
      %c0_224 = arith.constant 0 : index
      %c0_225 = arith.constant 0 : index
      %c0_226 = arith.constant 0 : index
      %229 = vector.load %arg2[%c3_223, %c0_224, %c0_225, %c0_226] : memref<4x9x9x8xbf16, #tpu.memory_space<vmem>>, vector<1x8x8x8xbf16>
      %230 = vector.shape_cast %229 : vector<1x8x8x8xbf16> to vector<8x8x8xbf16>
      %231 = vector.shape_cast %230 : vector<8x8x8xbf16> to vector<64x8xbf16>
      %c3_227 = arith.constant 3 : index
      %c0_228 = arith.constant 0 : index
      %c0_229 = arith.constant 0 : index
      %232 = vector.load %arg3[%c3_227, %c0_228, %c0_229] : memref<9x8x128xbf16, #tpu.memory_space<vmem>>, vector<1x8x128xbf16>
      %233 = vector.shape_cast %232 : vector<1x8x128xbf16> to vector<8x128xbf16>
      %cst_230 = arith.constant dense<0.000000e+00> : vector<64x128xf32>
      %234 = tpu.matmul %231, %233, %cst_230 {dimension_numbers = #tpu.dot_dimension_numbers<[1], [0], [0], [1], [0, 0, 1, 1], [], []>} : vector<64x8xbf16>, vector<8x128xbf16>, vector<64x128xf32> -> vector<64x128xf32>
      %235 = arith.addf %228, %234 : vector<64x128xf32>
      %c2_231 = arith.constant 2 : index
      %c0_232 = arith.constant 0 : index
      %c1_233 = arith.constant 1 : index
      %c0_234 = arith.constant 0 : index
      %236 = vector.load %arg2[%c2_231, %c0_232, %c1_233, %c0_234] : memref<4x9x9x8xbf16, #tpu.memory_space<vmem>>, vector<1x8x8x8xbf16>
      %237 = vector.shape_cast %236 : vector<1x8x8x8xbf16> to vector<8x8x8xbf16>
      %238 = vector.shape_cast %237 : vector<8x8x8xbf16> to vector<64x8xbf16>
      %c4_235 = arith.constant 4 : index
      %c0_236 = arith.constant 0 : index
      %c0_237 = arith.constant 0 : index
      %239 = vector.load %arg3[%c4_235, %c0_236, %c0_237] : memref<9x8x128xbf16, #tpu.memory_space<vmem>>, vector<1x8x128xbf16>
      %240 = vector.shape_cast %239 : vector<1x8x128xbf16> to vector<8x128xbf16>
      %cst_238 = arith.constant dense<0.000000e+00> : vector<64x128xf32>
      %241 = tpu.matmul %238, %240, %cst_238 {dimension_numbers = #tpu.dot_dimension_numbers<[1], [0], [0], [1], [0, 0, 1, 1], [], []>} : vector<64x8xbf16>, vector<8x128xbf16>, vector<64x128xf32> -> vector<64x128xf32>
      %242 = arith.addf %235, %241 : vector<64x128xf32>
      %c3_239 = arith.constant 3 : index
      %c0_240 = arith.constant 0 : index
      %c1_241 = arith.constant 1 : index
      %c0_242 = arith.constant 0 : index
      %243 = vector.load %arg2[%c3_239, %c0_240, %c1_241, %c0_242] : memref<4x9x9x8xbf16, #tpu.memory_space<vmem>>, vector<1x8x8x8xbf16>
      %244 = vector.shape_cast %243 : vector<1x8x8x8xbf16> to vector<8x8x8xbf16>
      %245 = vector.shape_cast %244 : vector<8x8x8xbf16> to vector<64x8xbf16>
      %c5_243 = arith.constant 5 : index
      %c0_244 = arith.constant 0 : index
      %c0_245 = arith.constant 0 : index
      %246 = vector.load %arg3[%c5_243, %c0_244, %c0_245] : memref<9x8x128xbf16, #tpu.memory_space<vmem>>, vector<1x8x128xbf16>
      %247 = vector.shape_cast %246 : vector<1x8x128xbf16> to vector<8x128xbf16>
      %cst_246 = arith.constant dense<0.000000e+00> : vector<64x128xf32>
      %248 = tpu.matmul %245, %247, %cst_246 {dimension_numbers = #tpu.dot_dimension_numbers<[1], [0], [0], [1], [0, 0, 1, 1], [], []>} : vector<64x8xbf16>, vector<8x128xbf16>, vector<64x128xf32> -> vector<64x128xf32>
      %249 = arith.addf %242, %248 : vector<64x128xf32>
      %c1_247 = arith.constant 1 : index
      %c1_248 = arith.constant 1 : index
      %c0_249 = arith.constant 0 : index
      %c0_250 = arith.constant 0 : index
      %250 = vector.load %arg2[%c1_247, %c1_248, %c0_249, %c0_250] : memref<4x9x9x8xbf16, #tpu.memory_space<vmem>>, vector<1x8x8x8xbf16>
      %251 = vector.shape_cast %250 : vector<1x8x8x8xbf16> to vector<8x8x8xbf16>
      %252 = vector.shape_cast %251 : vector<8x8x8xbf16> to vector<64x8xbf16>
      %c6_251 = arith.constant 6 : index
      %c0_252 = arith.constant 0 : index
      %c0_253 = arith.constant 0 : index
      %253 = vector.load %arg3[%c6_251, %c0_252, %c0_253] : memref<9x8x128xbf16, #tpu.memory_space<vmem>>, vector<1x8x128xbf16>
      %254 = vector.shape_cast %253 : vector<1x8x128xbf16> to vector<8x128xbf16>
      %cst_254 = arith.constant dense<0.000000e+00> : vector<64x128xf32>
      %255 = tpu.matmul %252, %254, %cst_254 {dimension_numbers = #tpu.dot_dimension_numbers<[1], [0], [0], [1], [0, 0, 1, 1], [], []>} : vector<64x8xbf16>, vector<8x128xbf16>, vector<64x128xf32> -> vector<64x128xf32>
      %256 = arith.addf %249, %255 : vector<64x128xf32>
      %c0_255 = arith.constant 0 : index
      %c1_256 = arith.constant 1 : index
      %c1_257 = arith.constant 1 : index
      %c0_258 = arith.constant 0 : index
      %257 = vector.load %arg2[%c0_255, %c1_256, %c1_257, %c0_258] : memref<4x9x9x8xbf16, #tpu.memory_space<vmem>>, vector<1x8x8x8xbf16>
      %258 = vector.shape_cast %257 : vector<1x8x8x8xbf16> to vector<8x8x8xbf16>
      %259 = vector.shape_cast %258 : vector<8x8x8xbf16> to vector<64x8xbf16>
      %c7_259 = arith.constant 7 : index
      %c0_260 = arith.constant 0 : index
      %c0_261 = arith.constant 0 : index
      %260 = vector.load %arg3[%c7_259, %c0_260, %c0_261] : memref<9x8x128xbf16, #tpu.memory_space<vmem>>, vector<1x8x128xbf16>
      %261 = vector.shape_cast %260 : vector<1x8x128xbf16> to vector<8x128xbf16>
      %cst_262 = arith.constant dense<0.000000e+00> : vector<64x128xf32>
      %262 = tpu.matmul %259, %261, %cst_262 {dimension_numbers = #tpu.dot_dimension_numbers<[1], [0], [0], [1], [0, 0, 1, 1], [], []>} : vector<64x8xbf16>, vector<8x128xbf16>, vector<64x128xf32> -> vector<64x128xf32>
      %263 = arith.addf %256, %262 : vector<64x128xf32>
      %c1_263 = arith.constant 1 : index
      %c1_264 = arith.constant 1 : index
      %c1_265 = arith.constant 1 : index
      %c0_266 = arith.constant 0 : index
      %264 = vector.load %arg2[%c1_263, %c1_264, %c1_265, %c0_266] : memref<4x9x9x8xbf16, #tpu.memory_space<vmem>>, vector<1x8x8x8xbf16>
      %265 = vector.shape_cast %264 : vector<1x8x8x8xbf16> to vector<8x8x8xbf16>
      %266 = vector.shape_cast %265 : vector<8x8x8xbf16> to vector<64x8xbf16>
      %c8_267 = arith.constant 8 : index
      %c0_268 = arith.constant 0 : index
      %c0_269 = arith.constant 0 : index
      %267 = vector.load %arg3[%c8_267, %c0_268, %c0_269] : memref<9x8x128xbf16, #tpu.memory_space<vmem>>, vector<1x8x128xbf16>
      %268 = vector.shape_cast %267 : vector<1x8x128xbf16> to vector<8x128xbf16>
      %cst_270 = arith.constant dense<0.000000e+00> : vector<64x128xf32>
      %269 = tpu.matmul %266, %268, %cst_270 {dimension_numbers = #tpu.dot_dimension_numbers<[1], [0], [0], [1], [0, 0, 1, 1], [], []>} : vector<64x8xbf16>, vector<8x128xbf16>, vector<64x128xf32> -> vector<64x128xf32>
      %270 = arith.addf %263, %269 : vector<64x128xf32>
      %c4_i32_271 = arith.constant 4 : i32
      %271 = arith.muli %arg1, %c4_i32_271 : i32
      %c2_i32_272 = arith.constant 2 : i32
      %272 = arith.addi %271, %c2_i32_272 : i32
      %c0_i32_273 = arith.constant 0 : i32
      %273 = arith.addi %272, %c0_i32_273 : i32
      %274 = vector.shape_cast %270 : vector<64x128xf32> to vector<8x8x128xf32>
      %275 = arith.index_cast %273 : i32 to index
      %c0_274 = arith.constant 0 : index
      %c1_275 = arith.constant 1 : index
      %c0_276 = arith.constant 0 : index
      %276 = vector.load %arg8[%275, %c0_274, %c1_275, %c0_276] : memref<8x9x9x128xf32, #tpu.memory_space<vmem>>, vector<1x8x8x128xf32>
      %277 = vector.shape_cast %276 : vector<1x8x8x128xf32> to vector<8x8x128xf32>
      %278 = vector.shape_cast %274 : vector<8x8x128xf32> to vector<1x8x8x128xf32>
      tpu.vector_store %arg8[%275, %c0_274, %c1_275, %c0_276], %278 {strides = array<i32>} : memref<8x9x9x128xf32, #tpu.memory_space<vmem>>, vector<1x8x8x128xf32>,
      %c0_277 = arith.constant 0 : index
      %c0_278 = arith.constant 0 : index
      %279 = vector.load %arg9[%c0_277, %c0_278] : memref<1x128xf32, #tpu.memory_space<vmem>>, vector<1x128xf32>
      %cst_279 = arith.constant dense<0.000000e+00> : vector<128xf32>
      %280 = vector.multi_reduction <add>, %270, %cst_279 [0] : vector<64x128xf32> to vector<128xf32>
      %281 = vector.shape_cast %280 : vector<128xf32> to vector<1x128xf32>
      %282 = arith.addf %279, %281 : vector<1x128xf32>
      %c0_280 = arith.constant 0 : index
      %c0_281 = arith.constant 0 : index
      %283 = vector.load %arg9[%c0_280, %c0_281] : memref<1x128xf32, #tpu.memory_space<vmem>>, vector<1x128xf32>
      tpu.vector_store %arg9[%c0_280, %c0_281], %282 {strides = array<i32>} : memref<1x128xf32, #tpu.memory_space<vmem>>, vector<1x128xf32>,
      %c0_282 = arith.constant 0 : index
      %c0_283 = arith.constant 0 : index
      %284 = vector.load %arg10[%c0_282, %c0_283] : memref<1x128xf32, #tpu.memory_space<vmem>>, vector<1x128xf32>
      %285 = arith.mulf %270, %270 : vector<64x128xf32>
      %cst_284 = arith.constant dense<0.000000e+00> : vector<128xf32>
      %286 = vector.multi_reduction <add>, %285, %cst_284 [0] : vector<64x128xf32> to vector<128xf32>
      %287 = vector.shape_cast %286 : vector<128xf32> to vector<1x128xf32>
      %288 = arith.addf %284, %287 : vector<1x128xf32>
      %c0_285 = arith.constant 0 : index
      %c0_286 = arith.constant 0 : index
      %289 = vector.load %arg10[%c0_285, %c0_286] : memref<1x128xf32, #tpu.memory_space<vmem>>, vector<1x128xf32>
      tpu.vector_store %arg10[%c0_285, %c0_286], %288 {strides = array<i32>} : memref<1x128xf32, #tpu.memory_space<vmem>>, vector<1x128xf32>,
      %cst_287 = arith.constant 0.000000e+00 : f32
      %290 = vector.broadcast %cst_287 : f32 to vector<64x128xf32>
      %c0_288 = arith.constant 0 : index
      %c0_289 = arith.constant 0 : index
      %c0_290 = arith.constant 0 : index
      %c0_291 = arith.constant 0 : index
      %291 = vector.load %arg2[%c0_288, %c0_289, %c0_290, %c0_291] : memref<4x9x9x8xbf16, #tpu.memory_space<vmem>>, vector<1x8x8x8xbf16>
      %292 = vector.shape_cast %291 : vector<1x8x8x8xbf16> to vector<8x8x8xbf16>
      %293 = vector.shape_cast %292 : vector<8x8x8xbf16> to vector<64x8xbf16>
      %c0_292 = arith.constant 0 : index
      %c0_293 = arith.constant 0 : index
      %c0_294 = arith.constant 0 : index
      %294 = vector.load %arg3[%c0_292, %c0_293, %c0_294] : memref<9x8x128xbf16, #tpu.memory_space<vmem>>, vector<1x8x128xbf16>
      %295 = vector.shape_cast %294 : vector<1x8x128xbf16> to vector<8x128xbf16>
      %cst_295 = arith.constant dense<0.000000e+00> : vector<64x128xf32>
      %296 = tpu.matmul %293, %295, %cst_295 {dimension_numbers = #tpu.dot_dimension_numbers<[1], [0], [0], [1], [0, 0, 1, 1], [], []>} : vector<64x8xbf16>, vector<8x128xbf16>, vector<64x128xf32> -> vector<64x128xf32>
      %297 = arith.addf %290, %296 : vector<64x128xf32>
      %c1_296 = arith.constant 1 : index
      %c0_297 = arith.constant 0 : index
      %c0_298 = arith.constant 0 : index
      %c0_299 = arith.constant 0 : index
      %298 = vector.load %arg2[%c1_296, %c0_297, %c0_298, %c0_299] : memref<4x9x9x8xbf16, #tpu.memory_space<vmem>>, vector<1x8x8x8xbf16>
      %299 = vector.shape_cast %298 : vector<1x8x8x8xbf16> to vector<8x8x8xbf16>
      %300 = vector.shape_cast %299 : vector<8x8x8xbf16> to vector<64x8xbf16>
      %c1_300 = arith.constant 1 : index
      %c0_301 = arith.constant 0 : index
      %c0_302 = arith.constant 0 : index
      %301 = vector.load %arg3[%c1_300, %c0_301, %c0_302] : memref<9x8x128xbf16, #tpu.memory_space<vmem>>, vector<1x8x128xbf16>
      %302 = vector.shape_cast %301 : vector<1x8x128xbf16> to vector<8x128xbf16>
      %cst_303 = arith.constant dense<0.000000e+00> : vector<64x128xf32>
      %303 = tpu.matmul %300, %302, %cst_303 {dimension_numbers = #tpu.dot_dimension_numbers<[1], [0], [0], [1], [0, 0, 1, 1], [], []>} : vector<64x8xbf16>, vector<8x128xbf16>, vector<64x128xf32> -> vector<64x128xf32>
      %304 = arith.addf %297, %303 : vector<64x128xf32>
      %c0_304 = arith.constant 0 : index
      %c0_305 = arith.constant 0 : index
      %c1_306 = arith.constant 1 : index
      %c0_307 = arith.constant 0 : index
      %305 = vector.load %arg2[%c0_304, %c0_305, %c1_306, %c0_307] : memref<4x9x9x8xbf16, #tpu.memory_space<vmem>>, vector<1x8x8x8xbf16>
      %306 = vector.shape_cast %305 : vector<1x8x8x8xbf16> to vector<8x8x8xbf16>
      %307 = vector.shape_cast %306 : vector<8x8x8xbf16> to vector<64x8xbf16>
      %c2_308 = arith.constant 2 : index
      %c0_309 = arith.constant 0 : index
      %c0_310 = arith.constant 0 : index
      %308 = vector.load %arg3[%c2_308, %c0_309, %c0_310] : memref<9x8x128xbf16, #tpu.memory_space<vmem>>, vector<1x8x128xbf16>
      %309 = vector.shape_cast %308 : vector<1x8x128xbf16> to vector<8x128xbf16>
      %cst_311 = arith.constant dense<0.000000e+00> : vector<64x128xf32>
      %310 = tpu.matmul %307, %309, %cst_311 {dimension_numbers = #tpu.dot_dimension_numbers<[1], [0], [0], [1], [0, 0, 1, 1], [], []>} : vector<64x8xbf16>, vector<8x128xbf16>, vector<64x128xf32> -> vector<64x128xf32>
      %311 = arith.addf %304, %310 : vector<64x128xf32>
      %c2_312 = arith.constant 2 : index
      %c0_313 = arith.constant 0 : index
      %c0_314 = arith.constant 0 : index
      %c0_315 = arith.constant 0 : index
      %312 = vector.load %arg2[%c2_312, %c0_313, %c0_314, %c0_315] : memref<4x9x9x8xbf16, #tpu.memory_space<vmem>>, vector<1x8x8x8xbf16>
      %313 = vector.shape_cast %312 : vector<1x8x8x8xbf16> to vector<8x8x8xbf16>
      %314 = vector.shape_cast %313 : vector<8x8x8xbf16> to vector<64x8xbf16>
      %c3_316 = arith.constant 3 : index
      %c0_317 = arith.constant 0 : index
      %c0_318 = arith.constant 0 : index
      %315 = vector.load %arg3[%c3_316, %c0_317, %c0_318] : memref<9x8x128xbf16, #tpu.memory_space<vmem>>, vector<1x8x128xbf16>
      %316 = vector.shape_cast %315 : vector<1x8x128xbf16> to vector<8x128xbf16>
      %cst_319 = arith.constant dense<0.000000e+00> : vector<64x128xf32>
      %317 = tpu.matmul %314, %316, %cst_319 {dimension_numbers = #tpu.dot_dimension_numbers<[1], [0], [0], [1], [0, 0, 1, 1], [], []>} : vector<64x8xbf16>, vector<8x128xbf16>, vector<64x128xf32> -> vector<64x128xf32>
      %318 = arith.addf %311, %317 : vector<64x128xf32>
      %c3_320 = arith.constant 3 : index
      %c0_321 = arith.constant 0 : index
      %c0_322 = arith.constant 0 : index
      %c0_323 = arith.constant 0 : index
      %319 = vector.load %arg2[%c3_320, %c0_321, %c0_322, %c0_323] : memref<4x9x9x8xbf16, #tpu.memory_space<vmem>>, vector<1x8x8x8xbf16>
      %320 = vector.shape_cast %319 : vector<1x8x8x8xbf16> to vector<8x8x8xbf16>
      %321 = vector.shape_cast %320 : vector<8x8x8xbf16> to vector<64x8xbf16>
      %c4_324 = arith.constant 4 : index
      %c0_325 = arith.constant 0 : index
      %c0_326 = arith.constant 0 : index
      %322 = vector.load %arg3[%c4_324, %c0_325, %c0_326] : memref<9x8x128xbf16, #tpu.memory_space<vmem>>, vector<1x8x128xbf16>
      %323 = vector.shape_cast %322 : vector<1x8x128xbf16> to vector<8x128xbf16>
      %cst_327 = arith.constant dense<0.000000e+00> : vector<64x128xf32>
      %324 = tpu.matmul %321, %323, %cst_327 {dimension_numbers = #tpu.dot_dimension_numbers<[1], [0], [0], [1], [0, 0, 1, 1], [], []>} : vector<64x8xbf16>, vector<8x128xbf16>, vector<64x128xf32> -> vector<64x128xf32>
      %325 = arith.addf %318, %324 : vector<64x128xf32>
      %c2_328 = arith.constant 2 : index
      %c0_329 = arith.constant 0 : index
      %c1_330 = arith.constant 1 : index
      %c0_331 = arith.constant 0 : index
      %326 = vector.load %arg2[%c2_328, %c0_329, %c1_330, %c0_331] : memref<4x9x9x8xbf16, #tpu.memory_space<vmem>>, vector<1x8x8x8xbf16>
      %327 = vector.shape_cast %326 : vector<1x8x8x8xbf16> to vector<8x8x8xbf16>
      %328 = vector.shape_cast %327 : vector<8x8x8xbf16> to vector<64x8xbf16>
      %c5_332 = arith.constant 5 : index
      %c0_333 = arith.constant 0 : index
      %c0_334 = arith.constant 0 : index
      %329 = vector.load %arg3[%c5_332, %c0_333, %c0_334] : memref<9x8x128xbf16, #tpu.memory_space<vmem>>, vector<1x8x128xbf16>
      %330 = vector.shape_cast %329 : vector<1x8x128xbf16> to vector<8x128xbf16>
      %cst_335 = arith.constant dense<0.000000e+00> : vector<64x128xf32>
      %331 = tpu.matmul %328, %330, %cst_335 {dimension_numbers = #tpu.dot_dimension_numbers<[1], [0], [0], [1], [0, 0, 1, 1], [], []>} : vector<64x8xbf16>, vector<8x128xbf16>, vector<64x128xf32> -> vector<64x128xf32>
      %332 = arith.addf %325, %331 : vector<64x128xf32>
      %c0_336 = arith.constant 0 : index
      %c1_337 = arith.constant 1 : index
      %c0_338 = arith.constant 0 : index
      %c0_339 = arith.constant 0 : index
      %333 = vector.load %arg2[%c0_336, %c1_337, %c0_338, %c0_339] : memref<4x9x9x8xbf16, #tpu.memory_space<vmem>>, vector<1x8x8x8xbf16>
      %334 = vector.shape_cast %333 : vector<1x8x8x8xbf16> to vector<8x8x8xbf16>
      %335 = vector.shape_cast %334 : vector<8x8x8xbf16> to vector<64x8xbf16>
      %c6_340 = arith.constant 6 : index
      %c0_341 = arith.constant 0 : index
      %c0_342 = arith.constant 0 : index
      %336 = vector.load %arg3[%c6_340, %c0_341, %c0_342] : memref<9x8x128xbf16, #tpu.memory_space<vmem>>, vector<1x8x128xbf16>
      %337 = vector.shape_cast %336 : vector<1x8x128xbf16> to vector<8x128xbf16>
      %cst_343 = arith.constant dense<0.000000e+00> : vector<64x128xf32>
      %338 = tpu.matmul %335, %337, %cst_343 {dimension_numbers = #tpu.dot_dimension_numbers<[1], [0], [0], [1], [0, 0, 1, 1], [], []>} : vector<64x8xbf16>, vector<8x128xbf16>, vector<64x128xf32> -> vector<64x128xf32>
      %339 = arith.addf %332, %338 : vector<64x128xf32>
      %c1_344 = arith.constant 1 : index
      %c1_345 = arith.constant 1 : index
      %c0_346 = arith.constant 0 : index
      %c0_347 = arith.constant 0 : index
      %340 = vector.load %arg2[%c1_344, %c1_345, %c0_346, %c0_347] : memref<4x9x9x8xbf16, #tpu.memory_space<vmem>>, vector<1x8x8x8xbf16>
      %341 = vector.shape_cast %340 : vector<1x8x8x8xbf16> to vector<8x8x8xbf16>
      %342 = vector.shape_cast %341 : vector<8x8x8xbf16> to vector<64x8xbf16>
      %c7_348 = arith.constant 7 : index
      %c0_349 = arith.constant 0 : index
      %c0_350 = arith.constant 0 : index
      %343 = vector.load %arg3[%c7_348, %c0_349, %c0_350] : memref<9x8x128xbf16, #tpu.memory_space<vmem>>, vector<1x8x128xbf16>
      %344 = vector.shape_cast %343 : vector<1x8x128xbf16> to vector<8x128xbf16>
      %cst_351 = arith.constant dense<0.000000e+00> : vector<64x128xf32>
      %345 = tpu.matmul %342, %344, %cst_351 {dimension_numbers = #tpu.dot_dimension_numbers<[1], [0], [0], [1], [0, 0, 1, 1], [], []>} : vector<64x8xbf16>, vector<8x128xbf16>, vector<64x128xf32> -> vector<64x128xf32>
      %346 = arith.addf %339, %345 : vector<64x128xf32>
      %c0_352 = arith.constant 0 : index
      %c1_353 = arith.constant 1 : index
      %c1_354 = arith.constant 1 : index
      %c0_355 = arith.constant 0 : index
      %347 = vector.load %arg2[%c0_352, %c1_353, %c1_354, %c0_355] : memref<4x9x9x8xbf16, #tpu.memory_space<vmem>>, vector<1x8x8x8xbf16>
      %348 = vector.shape_cast %347 : vector<1x8x8x8xbf16> to vector<8x8x8xbf16>
      %349 = vector.shape_cast %348 : vector<8x8x8xbf16> to vector<64x8xbf16>
      %c8_356 = arith.constant 8 : index
      %c0_357 = arith.constant 0 : index
      %c0_358 = arith.constant 0 : index
      %350 = vector.load %arg3[%c8_356, %c0_357, %c0_358] : memref<9x8x128xbf16, #tpu.memory_space<vmem>>, vector<1x8x128xbf16>
      %351 = vector.shape_cast %350 : vector<1x8x128xbf16> to vector<8x128xbf16>
      %cst_359 = arith.constant dense<0.000000e+00> : vector<64x128xf32>
      %352 = tpu.matmul %349, %351, %cst_359 {dimension_numbers = #tpu.dot_dimension_numbers<[1], [0], [0], [1], [0, 0, 1, 1], [], []>} : vector<64x8xbf16>, vector<8x128xbf16>, vector<64x128xf32> -> vector<64x128xf32>
      %353 = arith.addf %346, %352 : vector<64x128xf32>
      %c4_i32_360 = arith.constant 4 : i32
      %354 = arith.muli %arg1, %c4_i32_360 : i32
      %c2_i32_361 = arith.constant 2 : i32
      %355 = arith.addi %354, %c2_i32_361 : i32
      %c1_i32_362 = arith.constant 1 : i32
      %356 = arith.addi %355, %c1_i32_362 : i32
      %357 = vector.shape_cast %353 : vector<64x128xf32> to vector<8x8x128xf32>
      %358 = arith.index_cast %356 : i32 to index
      %c0_363 = arith.constant 0 : index
      %c0_364 = arith.constant 0 : index
      %c0_365 = arith.constant 0 : index
      %359 = vector.load %arg8[%358, %c0_363, %c0_364, %c0_365] : memref<8x9x9x128xf32, #tpu.memory_space<vmem>>, vector<1x8x8x128xf32>
      %360 = vector.shape_cast %359 : vector<1x8x8x128xf32> to vector<8x8x128xf32>
      %361 = vector.shape_cast %357 : vector<8x8x128xf32> to vector<1x8x8x128xf32>
      tpu.vector_store %arg8[%358, %c0_363, %c0_364, %c0_365], %361 {strides = array<i32>} : memref<8x9x9x128xf32, #tpu.memory_space<vmem>>, vector<1x8x8x128xf32>,
      %c0_366 = arith.constant 0 : index
      %c0_367 = arith.constant 0 : index
      %362 = vector.load %arg9[%c0_366, %c0_367] : memref<1x128xf32, #tpu.memory_space<vmem>>, vector<1x128xf32>
      %cst_368 = arith.constant dense<0.000000e+00> : vector<128xf32>
      %363 = vector.multi_reduction <add>, %353, %cst_368 [0] : vector<64x128xf32> to vector<128xf32>
      %364 = vector.shape_cast %363 : vector<128xf32> to vector<1x128xf32>
      %365 = arith.addf %362, %364 : vector<1x128xf32>
      %c0_369 = arith.constant 0 : index
      %c0_370 = arith.constant 0 : index
      %366 = vector.load %arg9[%c0_369, %c0_370] : memref<1x128xf32, #tpu.memory_space<vmem>>, vector<1x128xf32>
      tpu.vector_store %arg9[%c0_369, %c0_370], %365 {strides = array<i32>} : memref<1x128xf32, #tpu.memory_space<vmem>>, vector<1x128xf32>,
      %c0_371 = arith.constant 0 : index
      %c0_372 = arith.constant 0 : index
      %367 = vector.load %arg10[%c0_371, %c0_372] : memref<1x128xf32, #tpu.memory_space<vmem>>, vector<1x128xf32>
      %368 = arith.mulf %353, %353 : vector<64x128xf32>
      %cst_373 = arith.constant dense<0.000000e+00> : vector<128xf32>
      %369 = vector.multi_reduction <add>, %368, %cst_373 [0] : vector<64x128xf32> to vector<128xf32>
      %370 = vector.shape_cast %369 : vector<128xf32> to vector<1x128xf32>
      %371 = arith.addf %367, %370 : vector<1x128xf32>
      %c0_374 = arith.constant 0 : index
      %c0_375 = arith.constant 0 : index
      %372 = vector.load %arg10[%c0_374, %c0_375] : memref<1x128xf32, #tpu.memory_space<vmem>>, vector<1x128xf32>
      tpu.vector_store %arg10[%c0_374, %c0_375], %371 {strides = array<i32>} : memref<1x128xf32, #tpu.memory_space<vmem>>, vector<1x128xf32>,
    } else {
    }
    %c1_i32 = arith.constant 1 : i32
    %3 = arith.cmpi eq, %arg0, %c1_i32 : i32
    %4 = arith.extui %3 : i1 to i32
    %c0_i32_1 = arith.constant 0 : i32
    %5 = arith.cmpi ne, %4, %c0_i32_1 : i32
    scf.if %5 {
      %c0 = arith.constant 0 : index
      %c0_2 = arith.constant 0 : index
      %6 = vector.load %arg9[%c0, %c0_2] : memref<1x128xf32, #tpu.memory_space<vmem>>, vector<1x128xf32>
      %cst = arith.constant 5.120000e+02 : f32
      %7 = vector.broadcast %cst : f32 to vector<1x128xf32>
      %8 = arith.divf %6, %7 : vector<1x128xf32>
      %c0_3 = arith.constant 0 : index
      %c0_4 = arith.constant 0 : index
      %9 = vector.load %arg10[%c0_3, %c0_4] : memref<1x128xf32, #tpu.memory_space<vmem>>, vector<1x128xf32>
      %cst_5 = arith.constant 5.120000e+02 : f32
      %10 = vector.broadcast %cst_5 : f32 to vector<1x128xf32>
      %11 = arith.divf %9, %10 : vector<1x128xf32>
      %12 = arith.mulf %8, %8 : vector<1x128xf32>
      %13 = arith.subf %11, %12 : vector<1x128xf32>
      %cst_6 = arith.constant 0.000000e+00 : f32
      %14 = vector.broadcast %cst_6 : f32 to vector<1x128xf32>
      %15 = arith.maximumf %13, %14 : vector<1x128xf32>
      %c0_7 = arith.constant 0 : index
      %c0_8 = arith.constant 0 : index
      %16 = vector.load %arg5[%c0_7, %c0_8] : memref<1x128xf32, #tpu.memory_space<vmem>>, vector<1x128xf32>
      %cst_9 = arith.constant 9.99999974E-6 : f32
      %17 = vector.broadcast %cst_9 : f32 to vector<1x128xf32>
      %18 = arith.addf %15, %17 : vector<1x128xf32>
      %19 = math.rsqrt %18 : vector<1x128xf32>
      %20 = arith.mulf %16, %19 : vector<1x128xf32>
      %c0_10 = arith.constant 0 : index
      %c0_11 = arith.constant 0 : index
      %21 = vector.load %arg6[%c0_10, %c0_11] : memref<1x128xf32, #tpu.memory_space<vmem>>, vector<1x128xf32>
      %22 = arith.mulf %8, %20 : vector<1x128xf32>
      %23 = arith.subf %21, %22 : vector<1x128xf32>
      %c4_i32 = arith.constant 4 : i32
      %24 = arith.muli %arg1, %c4_i32 : i32
      %c0_i32_12 = arith.constant 0 : i32
      %25 = arith.addi %24, %c0_i32_12 : i32
      %c0_i32_13 = arith.constant 0 : i32
      %26 = arith.addi %25, %c0_i32_13 : i32
      %27 = arith.index_cast %26 : i32 to index
      %c1 = arith.constant 1 : index
      %c1_14 = arith.constant 1 : index
      %c0_15 = arith.constant 0 : index
      %28 = vector.load %arg8[%27, %c1, %c1_14, %c0_15] : memref<8x9x9x128xf32, #tpu.memory_space<vmem>>, vector<1x8x8x128xf32>
      %29 = vector.shape_cast %28 : vector<1x8x8x128xf32> to vector<8x8x128xf32>
      %30 = vector.shape_cast %29 : vector<8x8x128xf32> to vector<64x128xf32>
      %31 = vector.broadcast %20 : vector<1x128xf32> to vector<64x128xf32>
      %32 = arith.mulf %30, %31 : vector<64x128xf32>
      %33 = vector.broadcast %23 : vector<1x128xf32> to vector<64x128xf32>
      %34 = arith.addf %32, %33 : vector<64x128xf32>
      %cst_16 = arith.constant 0.000000e+00 : f32
      %35 = vector.broadcast %cst_16 : f32 to vector<64x128xf32>
      %36 = arith.maximumf %34, %35 : vector<64x128xf32>
      %37 = vector.shape_cast %36 : vector<64x128xf32> to vector<8x8x128xf32>
      %38 = arith.index_cast %26 : i32 to index
      %c1_17 = arith.constant 1 : index
      %c1_18 = arith.constant 1 : index
      %c0_19 = arith.constant 0 : index
      %39 = vector.load %arg8[%38, %c1_17, %c1_18, %c0_19] : memref<8x9x9x128xf32, #tpu.memory_space<vmem>>, vector<1x8x8x128xf32>
      %40 = vector.shape_cast %39 : vector<1x8x8x128xf32> to vector<8x8x128xf32>
      %41 = vector.shape_cast %37 : vector<8x8x128xf32> to vector<1x8x8x128xf32>
      tpu.vector_store %arg8[%38, %c1_17, %c1_18, %c0_19], %41 {strides = array<i32>} : memref<8x9x9x128xf32, #tpu.memory_space<vmem>>, vector<1x8x8x128xf32>,
      %c4_i32_20 = arith.constant 4 : i32
      %42 = arith.muli %arg1, %c4_i32_20 : i32
      %c0_i32_21 = arith.constant 0 : i32
      %43 = arith.addi %42, %c0_i32_21 : i32
      %c1_i32_22 = arith.constant 1 : i32
      %44 = arith.addi %43, %c1_i32_22 : i32
      %45 = arith.index_cast %44 : i32 to index
      %c1_23 = arith.constant 1 : index
      %c0_24 = arith.constant 0 : index
      %c0_25 = arith.constant 0 : index
      %46 = vector.load %arg8[%45, %c1_23, %c0_24, %c0_25] : memref<8x9x9x128xf32, #tpu.memory_space<vmem>>, vector<1x8x8x128xf32>
      %47 = vector.shape_cast %46 : vector<1x8x8x128xf32> to vector<8x8x128xf32>
      %48 = vector.shape_cast %47 : vector<8x8x128xf32> to vector<64x128xf32>
      %49 = vector.broadcast %20 : vector<1x128xf32> to vector<64x128xf32>
      %50 = arith.mulf %48, %49 : vector<64x128xf32>
      %51 = vector.broadcast %23 : vector<1x128xf32> to vector<64x128xf32>
      %52 = arith.addf %50, %51 : vector<64x128xf32>
      %cst_26 = arith.constant 0.000000e+00 : f32
      %53 = vector.broadcast %cst_26 : f32 to vector<64x128xf32>
      %54 = arith.maximumf %52, %53 : vector<64x128xf32>
      %55 = vector.shape_cast %54 : vector<64x128xf32> to vector<8x8x128xf32>
      %56 = arith.index_cast %44 : i32 to index
      %c1_27 = arith.constant 1 : index
      %c0_28 = arith.constant 0 : index
      %c0_29 = arith.constant 0 : index
      %57 = vector.load %arg8[%56, %c1_27, %c0_28, %c0_29] : memref<8x9x9x128xf32, #tpu.memory_space<vmem>>, vector<1x8x8x128xf32>
      %58 = vector.shape_cast %57 : vector<1x8x8x128xf32> to vector<8x8x128xf32>
      %59 = vector.shape_cast %55 : vector<8x8x128xf32> to vector<1x8x8x128xf32>
      tpu.vector_store %arg8[%56, %c1_27, %c0_28, %c0_29], %59 {strides = array<i32>} : memref<8x9x9x128xf32, #tpu.memory_space<vmem>>, vector<1x8x8x128xf32>,
      %c4_i32_30 = arith.constant 4 : i32
      %60 = arith.muli %arg1, %c4_i32_30 : i32
      %c2_i32 = arith.constant 2 : i32
      %61 = arith.addi %60, %c2_i32 : i32
      %c0_i32_31 = arith.constant 0 : i32
      %62 = arith.addi %61, %c0_i32_31 : i32
      %63 = arith.index_cast %62 : i32 to index
      %c0_32 = arith.constant 0 : index
      %c1_33 = arith.constant 1 : index
      %c0_34 = arith.constant 0 : index
      %64 = vector.load %arg8[%63, %c0_32, %c1_33, %c0_34] : memref<8x9x9x128xf32, #tpu.memory_space<vmem>>, vector<1x8x8x128xf32>
      %65 = vector.shape_cast %64 : vector<1x8x8x128xf32> to vector<8x8x128xf32>
      %66 = vector.shape_cast %65 : vector<8x8x128xf32> to vector<64x128xf32>
      %67 = vector.broadcast %20 : vector<1x128xf32> to vector<64x128xf32>
      %68 = arith.mulf %66, %67 : vector<64x128xf32>
      %69 = vector.broadcast %23 : vector<1x128xf32> to vector<64x128xf32>
      %70 = arith.addf %68, %69 : vector<64x128xf32>
      %cst_35 = arith.constant 0.000000e+00 : f32
      %71 = vector.broadcast %cst_35 : f32 to vector<64x128xf32>
      %72 = arith.maximumf %70, %71 : vector<64x128xf32>
      %73 = vector.shape_cast %72 : vector<64x128xf32> to vector<8x8x128xf32>
      %74 = arith.index_cast %62 : i32 to index
      %c0_36 = arith.constant 0 : index
      %c1_37 = arith.constant 1 : index
      %c0_38 = arith.constant 0 : index
      %75 = vector.load %arg8[%74, %c0_36, %c1_37, %c0_38] : memref<8x9x9x128xf32, #tpu.memory_space<vmem>>, vector<1x8x8x128xf32>
      %76 = vector.shape_cast %75 : vector<1x8x8x128xf32> to vector<8x8x128xf32>
      %77 = vector.shape_cast %73 : vector<8x8x128xf32> to vector<1x8x8x128xf32>
      tpu.vector_store %arg8[%74, %c0_36, %c1_37, %c0_38], %77 {strides = array<i32>} : memref<8x9x9x128xf32, #tpu.memory_space<vmem>>, vector<1x8x8x128xf32>,
      %c4_i32_39 = arith.constant 4 : i32
      %78 = arith.muli %arg1, %c4_i32_39 : i32
      %c2_i32_40 = arith.constant 2 : i32
      %79 = arith.addi %78, %c2_i32_40 : i32
      %c1_i32_41 = arith.constant 1 : i32
      %80 = arith.addi %79, %c1_i32_41 : i32
      %81 = arith.index_cast %80 : i32 to index
      %c0_42 = arith.constant 0 : index
      %c0_43 = arith.constant 0 : index
      %c0_44 = arith.constant 0 : index
      %82 = vector.load %arg8[%81, %c0_42, %c0_43, %c0_44] : memref<8x9x9x128xf32, #tpu.memory_space<vmem>>, vector<1x8x8x128xf32>
      %83 = vector.shape_cast %82 : vector<1x8x8x128xf32> to vector<8x8x128xf32>
      %84 = vector.shape_cast %83 : vector<8x8x128xf32> to vector<64x128xf32>
      %85 = vector.broadcast %20 : vector<1x128xf32> to vector<64x128xf32>
      %86 = arith.mulf %84, %85 : vector<64x128xf32>
      %87 = vector.broadcast %23 : vector<1x128xf32> to vector<64x128xf32>
      %88 = arith.addf %86, %87 : vector<64x128xf32>
      %cst_45 = arith.constant 0.000000e+00 : f32
      %89 = vector.broadcast %cst_45 : f32 to vector<64x128xf32>
      %90 = arith.maximumf %88, %89 : vector<64x128xf32>
      %91 = vector.shape_cast %90 : vector<64x128xf32> to vector<8x8x128xf32>
      %92 = arith.index_cast %80 : i32 to index
      %c0_46 = arith.constant 0 : index
      %c0_47 = arith.constant 0 : index
      %c0_48 = arith.constant 0 : index
      %93 = vector.load %arg8[%92, %c0_46, %c0_47, %c0_48] : memref<8x9x9x128xf32, #tpu.memory_space<vmem>>, vector<1x8x8x128xf32>
      %94 = vector.shape_cast %93 : vector<1x8x8x128xf32> to vector<8x8x128xf32>
      %95 = vector.shape_cast %91 : vector<8x8x128xf32> to vector<1x8x8x128xf32>
      tpu.vector_store %arg8[%92, %c0_46, %c0_47, %c0_48], %95 {strides = array<i32>} : memref<8x9x9x128xf32, #tpu.memory_space<vmem>>, vector<1x8x8x128xf32>,
      %cst_49 = arith.constant 0.000000e+00 : f32
      %96 = vector.broadcast %cst_49 : f32 to vector<64x128xf32>
      %c4_i32_50 = arith.constant 4 : i32
      %97 = arith.muli %arg1, %c4_i32_50 : i32
      %c0_i32_51 = arith.constant 0 : i32
      %98 = arith.addi %97, %c0_i32_51 : i32
      %c0_i32_52 = arith.constant 0 : i32
      %99 = arith.addi %98, %c0_i32_52 : i32
      %100 = arith.index_cast %99 : i32 to index
      %c0_53 = arith.constant 0 : index
      %c0_54 = arith.constant 0 : index
      %c0_55 = arith.constant 0 : index
      %101 = vector.load %arg8[%100, %c0_53, %c0_54, %c0_55] : memref<8x9x9x128xf32, #tpu.memory_space<vmem>>, vector<1x8x8x128xf32>
      %102 = vector.shape_cast %101 : vector<1x8x8x128xf32> to vector<8x8x128xf32>
      %103 = vector.shape_cast %102 : vector<8x8x128xf32> to vector<64x128xf32>
      %104 = arith.truncf %103 : vector<64x128xf32> to vector<64x128xbf16>
      %c0_56 = arith.constant 0 : index
      %c0_57 = arith.constant 0 : index
      %c0_58 = arith.constant 0 : index
      %105 = vector.load %arg4[%c0_56, %c0_57, %c0_58] : memref<9x128x128xbf16, #tpu.memory_space<vmem>>, vector<1x128x128xbf16>
      %106 = vector.shape_cast %105 : vector<1x128x128xbf16> to vector<128x128xbf16>
      %cst_59 = arith.constant dense<0.000000e+00> : vector<64x128xf32>
      %107 = tpu.matmul %104, %106, %cst_59 {dimension_numbers = #tpu.dot_dimension_numbers<[1], [0], [0], [1], [0, 0, 1, 1], [], []>} : vector<64x128xbf16>, vector<128x128xbf16>, vector<64x128xf32> -> vector<64x128xf32>
      %108 = arith.addf %96, %107 : vector<64x128xf32>
      %c4_i32_60 = arith.constant 4 : i32
      %109 = arith.muli %arg1, %c4_i32_60 : i32
      %c0_i32_61 = arith.constant 0 : i32
      %110 = arith.addi %109, %c0_i32_61 : i32
      %c1_i32_62 = arith.constant 1 : i32
      %111 = arith.addi %110, %c1_i32_62 : i32
      %112 = arith.index_cast %111 : i32 to index
      %c0_63 = arith.constant 0 : index
      %c0_64 = arith.constant 0 : index
      %c0_65 = arith.constant 0 : index
      %113 = vector.load %arg8[%112, %c0_63, %c0_64, %c0_65] : memref<8x9x9x128xf32, #tpu.memory_space<vmem>>, vector<1x8x8x128xf32>
      %114 = vector.shape_cast %113 : vector<1x8x8x128xf32> to vector<8x8x128xf32>
      %115 = vector.shape_cast %114 : vector<8x8x128xf32> to vector<64x128xf32>
      %116 = arith.truncf %115 : vector<64x128xf32> to vector<64x128xbf16>
      %c1_66 = arith.constant 1 : index
      %c0_67 = arith.constant 0 : index
      %c0_68 = arith.constant 0 : index
      %117 = vector.load %arg4[%c1_66, %c0_67, %c0_68] : memref<9x128x128xbf16, #tpu.memory_space<vmem>>, vector<1x128x128xbf16>
      %118 = vector.shape_cast %117 : vector<1x128x128xbf16> to vector<128x128xbf16>
      %cst_69 = arith.constant dense<0.000000e+00> : vector<64x128xf32>
      %119 = tpu.matmul %116, %118, %cst_69 {dimension_numbers = #tpu.dot_dimension_numbers<[1], [0], [0], [1], [0, 0, 1, 1], [], []>} : vector<64x128xbf16>, vector<128x128xbf16>, vector<64x128xf32> -> vector<64x128xf32>
      %120 = arith.addf %108, %119 : vector<64x128xf32>
      %c4_i32_70 = arith.constant 4 : i32
      %121 = arith.muli %arg1, %c4_i32_70 : i32
      %c0_i32_71 = arith.constant 0 : i32
      %122 = arith.addi %121, %c0_i32_71 : i32
      %c0_i32_72 = arith.constant 0 : i32
      %123 = arith.addi %122, %c0_i32_72 : i32
      %124 = arith.index_cast %123 : i32 to index
      %c0_73 = arith.constant 0 : index
      %c1_74 = arith.constant 1 : index
      %c0_75 = arith.constant 0 : index
      %125 = vector.load %arg8[%124, %c0_73, %c1_74, %c0_75] : memref<8x9x9x128xf32, #tpu.memory_space<vmem>>, vector<1x8x8x128xf32>
      %126 = vector.shape_cast %125 : vector<1x8x8x128xf32> to vector<8x8x128xf32>
      %127 = vector.shape_cast %126 : vector<8x8x128xf32> to vector<64x128xf32>
      %128 = arith.truncf %127 : vector<64x128xf32> to vector<64x128xbf16>
      %c2 = arith.constant 2 : index
      %c0_76 = arith.constant 0 : index
      %c0_77 = arith.constant 0 : index
      %129 = vector.load %arg4[%c2, %c0_76, %c0_77] : memref<9x128x128xbf16, #tpu.memory_space<vmem>>, vector<1x128x128xbf16>
      %130 = vector.shape_cast %129 : vector<1x128x128xbf16> to vector<128x128xbf16>
      %cst_78 = arith.constant dense<0.000000e+00> : vector<64x128xf32>
      %131 = tpu.matmul %128, %130, %cst_78 {dimension_numbers = #tpu.dot_dimension_numbers<[1], [0], [0], [1], [0, 0, 1, 1], [], []>} : vector<64x128xbf16>, vector<128x128xbf16>, vector<64x128xf32> -> vector<64x128xf32>
      %132 = arith.addf %120, %131 : vector<64x128xf32>
      %c4_i32_79 = arith.constant 4 : i32
      %133 = arith.muli %arg1, %c4_i32_79 : i32
      %c2_i32_80 = arith.constant 2 : i32
      %134 = arith.addi %133, %c2_i32_80 : i32
      %c0_i32_81 = arith.constant 0 : i32
      %135 = arith.addi %134, %c0_i32_81 : i32
      %136 = arith.index_cast %135 : i32 to index
      %c0_82 = arith.constant 0 : index
      %c0_83 = arith.constant 0 : index
      %c0_84 = arith.constant 0 : index
      %137 = vector.load %arg8[%136, %c0_82, %c0_83, %c0_84] : memref<8x9x9x128xf32, #tpu.memory_space<vmem>>, vector<1x8x8x128xf32>
      %138 = vector.shape_cast %137 : vector<1x8x8x128xf32> to vector<8x8x128xf32>
      %139 = vector.shape_cast %138 : vector<8x8x128xf32> to vector<64x128xf32>
      %140 = arith.truncf %139 : vector<64x128xf32> to vector<64x128xbf16>
      %c3 = arith.constant 3 : index
      %c0_85 = arith.constant 0 : index
      %c0_86 = arith.constant 0 : index
      %141 = vector.load %arg4[%c3, %c0_85, %c0_86] : memref<9x128x128xbf16, #tpu.memory_space<vmem>>, vector<1x128x128xbf16>
      %142 = vector.shape_cast %141 : vector<1x128x128xbf16> to vector<128x128xbf16>
      %cst_87 = arith.constant dense<0.000000e+00> : vector<64x128xf32>
      %143 = tpu.matmul %140, %142, %cst_87 {dimension_numbers = #tpu.dot_dimension_numbers<[1], [0], [0], [1], [0, 0, 1, 1], [], []>} : vector<64x128xbf16>, vector<128x128xbf16>, vector<64x128xf32> -> vector<64x128xf32>
      %144 = arith.addf %132, %143 : vector<64x128xf32>
      %c4_i32_88 = arith.constant 4 : i32
      %145 = arith.muli %arg1, %c4_i32_88 : i32
      %c2_i32_89 = arith.constant 2 : i32
      %146 = arith.addi %145, %c2_i32_89 : i32
      %c1_i32_90 = arith.constant 1 : i32
      %147 = arith.addi %146, %c1_i32_90 : i32
      %148 = arith.index_cast %147 : i32 to index
      %c0_91 = arith.constant 0 : index
      %c0_92 = arith.constant 0 : index
      %c0_93 = arith.constant 0 : index
      %149 = vector.load %arg8[%148, %c0_91, %c0_92, %c0_93] : memref<8x9x9x128xf32, #tpu.memory_space<vmem>>, vector<1x8x8x128xf32>
      %150 = vector.shape_cast %149 : vector<1x8x8x128xf32> to vector<8x8x128xf32>
      %151 = vector.shape_cast %150 : vector<8x8x128xf32> to vector<64x128xf32>
      %152 = arith.truncf %151 : vector<64x128xf32> to vector<64x128xbf16>
      %c4 = arith.constant 4 : index
      %c0_94 = arith.constant 0 : index
      %c0_95 = arith.constant 0 : index
      %153 = vector.load %arg4[%c4, %c0_94, %c0_95] : memref<9x128x128xbf16, #tpu.memory_space<vmem>>, vector<1x128x128xbf16>
      %154 = vector.shape_cast %153 : vector<1x128x128xbf16> to vector<128x128xbf16>
      %cst_96 = arith.constant dense<0.000000e+00> : vector<64x128xf32>
      %155 = tpu.matmul %152, %154, %cst_96 {dimension_numbers = #tpu.dot_dimension_numbers<[1], [0], [0], [1], [0, 0, 1, 1], [], []>} : vector<64x128xbf16>, vector<128x128xbf16>, vector<64x128xf32> -> vector<64x128xf32>
      %156 = arith.addf %144, %155 : vector<64x128xf32>
      %c4_i32_97 = arith.constant 4 : i32
      %157 = arith.muli %arg1, %c4_i32_97 : i32
      %c2_i32_98 = arith.constant 2 : i32
      %158 = arith.addi %157, %c2_i32_98 : i32
      %c0_i32_99 = arith.constant 0 : i32
      %159 = arith.addi %158, %c0_i32_99 : i32
      %160 = arith.index_cast %159 : i32 to index
      %c0_100 = arith.constant 0 : index
      %c1_101 = arith.constant 1 : index
      %c0_102 = arith.constant 0 : index
      %161 = vector.load %arg8[%160, %c0_100, %c1_101, %c0_102] : memref<8x9x9x128xf32, #tpu.memory_space<vmem>>, vector<1x8x8x128xf32>
      %162 = vector.shape_cast %161 : vector<1x8x8x128xf32> to vector<8x8x128xf32>
      %163 = vector.shape_cast %162 : vector<8x8x128xf32> to vector<64x128xf32>
      %164 = arith.truncf %163 : vector<64x128xf32> to vector<64x128xbf16>
      %c5 = arith.constant 5 : index
      %c0_103 = arith.constant 0 : index
      %c0_104 = arith.constant 0 : index
      %165 = vector.load %arg4[%c5, %c0_103, %c0_104] : memref<9x128x128xbf16, #tpu.memory_space<vmem>>, vector<1x128x128xbf16>
      %166 = vector.shape_cast %165 : vector<1x128x128xbf16> to vector<128x128xbf16>
      %cst_105 = arith.constant dense<0.000000e+00> : vector<64x128xf32>
      %167 = tpu.matmul %164, %166, %cst_105 {dimension_numbers = #tpu.dot_dimension_numbers<[1], [0], [0], [1], [0, 0, 1, 1], [], []>} : vector<64x128xbf16>, vector<128x128xbf16>, vector<64x128xf32> -> vector<64x128xf32>
      %168 = arith.addf %156, %167 : vector<64x128xf32>
      %c4_i32_106 = arith.constant 4 : i32
      %169 = arith.muli %arg1, %c4_i32_106 : i32
      %c0_i32_107 = arith.constant 0 : i32
      %170 = arith.addi %169, %c0_i32_107 : i32
      %c0_i32_108 = arith.constant 0 : i32
      %171 = arith.addi %170, %c0_i32_108 : i32
      %172 = arith.index_cast %171 : i32 to index
      %c1_109 = arith.constant 1 : index
      %c0_110 = arith.constant 0 : index
      %c0_111 = arith.constant 0 : index
      %173 = vector.load %arg8[%172, %c1_109, %c0_110, %c0_111] : memref<8x9x9x128xf32, #tpu.memory_space<vmem>>, vector<1x8x8x128xf32>
      %174 = vector.shape_cast %173 : vector<1x8x8x128xf32> to vector<8x8x128xf32>
      %175 = vector.shape_cast %174 : vector<8x8x128xf32> to vector<64x128xf32>
      %176 = arith.truncf %175 : vector<64x128xf32> to vector<64x128xbf16>
      %c6 = arith.constant 6 : index
      %c0_112 = arith.constant 0 : index
      %c0_113 = arith.constant 0 : index
      %177 = vector.load %arg4[%c6, %c0_112, %c0_113] : memref<9x128x128xbf16, #tpu.memory_space<vmem>>, vector<1x128x128xbf16>
      %178 = vector.shape_cast %177 : vector<1x128x128xbf16> to vector<128x128xbf16>
      %cst_114 = arith.constant dense<0.000000e+00> : vector<64x128xf32>
      %179 = tpu.matmul %176, %178, %cst_114 {dimension_numbers = #tpu.dot_dimension_numbers<[1], [0], [0], [1], [0, 0, 1, 1], [], []>} : vector<64x128xbf16>, vector<128x128xbf16>, vector<64x128xf32> -> vector<64x128xf32>
      %180 = arith.addf %168, %179 : vector<64x128xf32>
      %c4_i32_115 = arith.constant 4 : i32
      %181 = arith.muli %arg1, %c4_i32_115 : i32
      %c0_i32_116 = arith.constant 0 : i32
      %182 = arith.addi %181, %c0_i32_116 : i32
      %c1_i32_117 = arith.constant 1 : i32
      %183 = arith.addi %182, %c1_i32_117 : i32
      %184 = arith.index_cast %183 : i32 to index
      %c1_118 = arith.constant 1 : index
      %c0_119 = arith.constant 0 : index
      %c0_120 = arith.constant 0 : index
      %185 = vector.load %arg8[%184, %c1_118, %c0_119, %c0_120] : memref<8x9x9x128xf32, #tpu.memory_space<vmem>>, vector<1x8x8x128xf32>
      %186 = vector.shape_cast %185 : vector<1x8x8x128xf32> to vector<8x8x128xf32>
      %187 = vector.shape_cast %186 : vector<8x8x128xf32> to vector<64x128xf32>
      %188 = arith.truncf %187 : vector<64x128xf32> to vector<64x128xbf16>
      %c7 = arith.constant 7 : index
      %c0_121 = arith.constant 0 : index
      %c0_122 = arith.constant 0 : index
      %189 = vector.load %arg4[%c7, %c0_121, %c0_122] : memref<9x128x128xbf16, #tpu.memory_space<vmem>>, vector<1x128x128xbf16>
      %190 = vector.shape_cast %189 : vector<1x128x128xbf16> to vector<128x128xbf16>
      %cst_123 = arith.constant dense<0.000000e+00> : vector<64x128xf32>
      %191 = tpu.matmul %188, %190, %cst_123 {dimension_numbers = #tpu.dot_dimension_numbers<[1], [0], [0], [1], [0, 0, 1, 1], [], []>} : vector<64x128xbf16>, vector<128x128xbf16>, vector<64x128xf32> -> vector<64x128xf32>
      %192 = arith.addf %180, %191 : vector<64x128xf32>
      %c4_i32_124 = arith.constant 4 : i32
      %193 = arith.muli %arg1, %c4_i32_124 : i32
      %c0_i32_125 = arith.constant 0 : i32
      %194 = arith.addi %193, %c0_i32_125 : i32
      %c0_i32_126 = arith.constant 0 : i32
      %195 = arith.addi %194, %c0_i32_126 : i32
      %196 = arith.index_cast %195 : i32 to index
      %c1_127 = arith.constant 1 : index
      %c1_128 = arith.constant 1 : index
      %c0_129 = arith.constant 0 : index
      %197 = vector.load %arg8[%196, %c1_127, %c1_128, %c0_129] : memref<8x9x9x128xf32, #tpu.memory_space<vmem>>, vector<1x8x8x128xf32>
      %198 = vector.shape_cast %197 : vector<1x8x8x128xf32> to vector<8x8x128xf32>
      %199 = vector.shape_cast %198 : vector<8x8x128xf32> to vector<64x128xf32>
      %200 = arith.truncf %199 : vector<64x128xf32> to vector<64x128xbf16>
      %c8 = arith.constant 8 : index
      %c0_130 = arith.constant 0 : index
      %c0_131 = arith.constant 0 : index
      %201 = vector.load %arg4[%c8, %c0_130, %c0_131] : memref<9x128x128xbf16, #tpu.memory_space<vmem>>, vector<1x128x128xbf16>
      %202 = vector.shape_cast %201 : vector<1x128x128xbf16> to vector<128x128xbf16>
      %cst_132 = arith.constant dense<0.000000e+00> : vector<64x128xf32>
      %203 = tpu.matmul %200, %202, %cst_132 {dimension_numbers = #tpu.dot_dimension_numbers<[1], [0], [0], [1], [0, 0, 1, 1], [], []>} : vector<64x128xbf16>, vector<128x128xbf16>, vector<64x128xf32> -> vector<64x128xf32>
      %204 = arith.addf %192, %203 : vector<64x128xf32>
      %205 = vector.shape_cast %204 : vector<64x128xf32> to vector<1x8x8x128xf32>
      %206 = arith.truncf %205 : vector<1x8x8x128xf32> to vector<1x8x8x128xbf16>
      %c0_133 = arith.constant 0 : index
      %c0_134 = arith.constant 0 : index
      %c0_135 = arith.constant 0 : index
      %c0_136 = arith.constant 0 : index
      %207 = vector.load %arg7[%c0_133, %c0_134, %c0_135, %c0_136] : memref<1x8x8x128xbf16, #tpu.memory_space<vmem>>, vector<1x8x8x128xbf16>
      tpu.vector_store %arg7[%c0_133, %c0_134, %c0_135, %c0_136], %206 {strides = array<i32>} : memref<1x8x8x128xbf16, #tpu.memory_space<vmem>>, vector<1x8x8x128xbf16>,
    } else {
    }
    return
  }
  func.func @transform_0(%arg0: i32, %arg1: i32) -> (i32, i32, i32, i32) {
    %c1_i32 = arith.constant 1 : i32
    %0 = arith.subi %c1_i32, %arg0 : i32
    %1 = arith.muli %arg1, %0 : i32
    %c1_i32_0 = arith.constant 1 : i32
    %2 = arith.muli %c1_i32_0, %arg0 : i32
    %3 = arith.addi %1, %2 : i32
    %c0_i32 = arith.constant 0 : i32
    %c0_i32_1 = arith.constant 0 : i32
    %c0_i32_2 = arith.constant 0 : i32
    %c0_i32_3 = arith.constant 0 : i32
    return %3, %c0_i32, %c0_i32_1, %c0_i32_2 : i32, i32, i32, i32
  }
  func.func @transform_1(%arg0: i32, %arg1: i32) -> (i32, i32, i32) {
    %c0_i32 = arith.constant 0 : i32
    %c0_i32_0 = arith.constant 0 : i32
    %c0_i32_1 = arith.constant 0 : i32
    %c0_i32_2 = arith.constant 0 : i32
    return %c0_i32, %c0_i32_0, %c0_i32_1 : i32, i32, i32
  }
  func.func @transform_2(%arg0: i32, %arg1: i32) -> (i32, i32, i32) {
    %c0_i32 = arith.constant 0 : i32
    %c0_i32_0 = arith.constant 0 : i32
    %c0_i32_1 = arith.constant 0 : i32
    %c0_i32_2 = arith.constant 0 : i32
    return %c0_i32, %c0_i32_0, %c0_i32_1 : i32, i32, i32
  }
  func.func @transform_3(%arg0: i32, %arg1: i32) -> (i32, i32) {
    %c0_i32 = arith.constant 0 : i32
    %c0_i32_0 = arith.constant 0 : i32
    %c0_i32_1 = arith.constant 0 : i32
    return %c0_i32, %c0_i32_0 : i32, i32
  }
  func.func @transform_4(%arg0: i32, %arg1: i32) -> (i32, i32) {
    %c0_i32 = arith.constant 0 : i32
    %c0_i32_0 = arith.constant 0 : i32
    %c0_i32_1 = arith.constant 0 : i32
    return %c0_i32, %c0_i32_0 : i32, i32
  }
  func.func @transform_5(%arg0: i32, %arg1: i32) -> (i32, i32, i32, i32) {
    %0 = arith.muli %arg1, %arg0 : i32
    %c0_i32 = arith.constant 0 : i32
    %c0_i32_0 = arith.constant 0 : i32
    %c0_i32_1 = arith.constant 0 : i32
    %c0_i32_2 = arith.constant 0 : i32
    return %0, %c0_i32, %c0_i32_0, %c0_i32_1 : i32, i32, i32, i32
  }
}

</mosaic_0001>

<bundles_post_ra>
// kernel: basic_block_forward.1
= control target key start
LH: loop header
LB: loop body
LE: loop exit
PB: predicated region body
PF: predicated region fallthrough
CT: control target
= control target key end

     0   :  { %s11084_s18 = smov 0   ;;  %s11086_s19 = smov 0   ;;  %s12934_s0 = inlined_call_operand.vmem [shape: bf16[8,9,9,8], index: 0, kind: input, shape index: {}]   ;;  %s12935_s1 = inlined_call_operand.vmem [shape: bf16[9,8,128], index: 1, kind: input, shape index: {}]   ;;  %s12936_s2 = inlined_call_operand.vmem [shape: bf16[9,128,128], index: 2, kind: input, shape index: {}]   ;;  %s12937_s3 = inlined_call_operand.vmem [shape: f32[1,128], index: 3, kind: input, shape index: {}]   ;;  %s12938_s4 = inlined_call_operand.vmem [shape: f32[1,128], index: 4, kind: input, shape index: {}]   ;;  %s12939_s5 = inlined_call_operand.vmem [shape: bf16[2,8,8,128], index: 5, kind: output, shape index: {}]  }
   0x1   :  { %s11088_s20 = smov 0   ;;  %s11090_s21 = smov 0  }
   0x2   :  { %s11092_s22 = smov 0  }
   0x3 LB: > { %s24_s23 = sadd.s32 1, %s11042_s20  ;;  %s27_s24 = sadd.s32 1, %s11046_s21  ;;  %s11050_s22 = sphi %s11092_s22, %s15_s22   ;;  %s11046_s21 = sphi %s11090_s21, %s12945_s21   ;;  %s11042_s20 = sphi %s11088_s20, %s12944_s20   ;;  %s11038_s19 = sphi %s11086_s19, %s12943_s19   ;;  %s11034_s18 = sphi %s11084_s18, %s12942_s18  }
   0x4   : > { %p25_p0 = scmp.ge.s32.totalorder %s24_s23, 2  ;;  %p8415_p1 = scmp.ge.s32.totalorder %s11050_s22, 1 }
   0x5   : > { %p215_p2 = scmp.lt.s32.totalorder %s11050_s22, 5 }
   0x6   : > { %s12947_s23 = smov (%p25_p0, %s24_s23), 0  ;;  %s12949_s24 = smov (!%p25_p0, %s27_s24), %s11046_s21 }
   0x7   : > { %p216_p3 = pnand %p8415_p1, %p215_p2  ;;  %p29_p4 = scmp.ge.s32.totalorder %s12949_s24, 2 }
   0x8   : > { %s248_s25 = ssub.s32 (!%p216_p3), 1, %s11038_s19  ;;  %s261_s26 = smul.u32 (!%p216_p3), %s11034_s18, %s11038_s19 }
   0x9   : > { %s12951_s24 = smov (%p29_p4, %s12949_s24), 0  ;;  %219 = sbr.rel (%p216_p3) target bundleno = 1045 (0x415), region = 40 }
   0xa   : > { %s249_s27 = smul.u32 (!%p216_p3), %s11034_s18, %s248_s25  ;;  %p262_p5 = scmp.lt.s32.totalorder (!%p216_p3), %s261_s26, 1 }
   0xb   : > { %p8420_p7 = scmp.ne.s32.totalorder (!%p216_p3), %s11038_s19, 0 }
   0xc   : > { %s250_s28 = sadd.s32 (!%p216_p3), %s11038_s19, %s249_s27 }
   0xd   : > { %s8416_s29 = sshll.u32 (!%p216_p3), %s250_s28, 2 }
   0xe   : > { %p252_p6 = scmp.lt.s32.totalorder (!%p216_p3), %s8416_s29, 7 }
  0x10   : > { %s12953_s26 = smov (!%p262_p5, %s261_s26), 1  ;;  %s12955_s29 = smov (!%p252_p6, %s8416_s29), 7 }
  0x11   : > { %s9563_s30 = sshll.u32 %s12953_s26, 5  ;;  %s10823_s6 = smul.u32 72, %s12955_s29 }
  0x12   : > { %s11126_s9 = scalar_lea.vmem %s12939_s5, %s9563_s30  ;;  %272 = sbr.rel (%p8420_p7) target bundleno = 653 (0x28d), region = 44 }
  0x13   : > { %s11131_s12 = scalar_lea.vmem %s12934_s0, %s10823_s6  ;;  %p8421_p8 = scmp.ne.s32.totalorder (!%p8420_p7), %s11034_s18, 0 }
  0x19   : > { %276 = sbr.rel (%p8421_p8) target bundleno = 32 (0x20), region = 48  ;;  %v11052_v0 = vmov (!%p8421_p8), 0.0  }
  0x1a   : > { %277 = vst [vmem:[#allocation3] sm:$0x1] (!%p8421_p8), %v11052_v0  ;;  %278 = vst [vmem:[#allocation4] sm:$0x1] (!%p8421_p8), %v11052_v0 }
  0x20 PF: > { %vm532_vm0 = vcmask 1043456   ;;  %v8708_v1 = vld [vmem:[%s12935_s1 + $0x4] sm:$0xf]  ;;  %vm519_vm1 = vcmask 64512   ;;  %v10866_v3 = vld [vmem:[%s11131_s12 + $0xd8] ss:$8 sps:$4 sm:$0xff]  }
  0x21   : > { %10796 = vmatprep.subr.msk.bf16.mxu1 %vm532_vm0, %v8708_v1  ;;  %v2192_v2 = vsel %vm532_vm0, %v8708_v1, 0  ;;  %v10867_v4 = vld [vmem:[%s11131_s12 + $0xe8] ss:$8 sps:$4 sm:$0xff]   ;;  %9967 = vmatprep.mubr.msk.bf16.mxu1 %vm519_vm1, %v10866_v3  ;;  %v8508_v5 = vld [vmem:[%s12935_s1 + $0x4] sm:$0xf]  ;;  %s8423_s30 = smul.u32 576, %s11034_s18 }
  0x22   : > { %9966 = vmatpush3.bf16.msra.mxu1 %v2192_v2  ;;  %v8492_v6 = vld [vmem:[%s11131_s12 + $0x90] sm:$0xf]  ;;  %v8493_v7 = vld [vmem:[%s11131_s12 + $0x94] sm:$0x1]  ;;  %10787 = vmatprep.subr.msk.bf16.mxu0 %vm532_vm0, %v8508_v5  ;;  %v534_v8 = vsel %vm532_vm0, %v8508_v5, 0 }
  0x23   : > { %v8494_v9 = vld [vmem:[%s11131_s12 + $0x98] sm:$0xf]  ;;  %v8495_v10 = vld [vmem:[%s11131_s12 + $0x9c] sm:$0x1]  ;;  %v394_v11 = vshrl.u32 %v8492_v6, 16  ;;  %9876 = vmatpush3.bf16.msra.mxu0 %v534_v8  ;;  %v397_v12 = vshll.u32 %v8492_v6, 16 }
  0x24   : > { %vm390_vm2 = vsmask.f32 3328  ;;  %vm391_vm3 = vsmask.f32 7440  ;;  %v403_v13 = vshll.u32 %v8493_v7, 16  ;;  %v408_v15 = vshrl.u32 %v8494_v9, 16 }
  0x25   : > { %9968 = vmatmul.mubr.msk.bf16.vlgmr.msra.gmra.mrb[0].mxu1 %vm519_vm1, %v10867_v4  ;;  %v396_v14 = vrot.slane %v394_v11, 4  ;;  %v411_v16 = vshll.u32 %v8494_v9, 16  ;;  %v417_v17 = vshll.u32 %v8495_v10, 16  ;;  %v372_v18 = vld [vmem:[%s12935_s1] sm:$0xf]  ;;  %v399_v19 = vrot.slane %v397_v12, 5  ;;  %vm11166_vm4 = vmor %vm390_vm2, %vm391_vm3 }
  0x26   : > { %v405_v20 = vrot.slane %v403_v13, 5  ;;  %10788 = vmatprep.subr.msk.bf16.mxu0 %vm532_vm0, %v372_v18  ;;  %v410_v21 = vrot.slane %v408_v15, 4  ;;  %v10868_v24 = vld [vmem:[%s11131_s12 + $0xf8] ss:$8 sps:$4 sm:$0xff]   ;;  %v11159_v25 = vsel %vm532_vm0, %v372_v18, 0  ;;  %s11948_s8 = scalar_lea.vmem [#allocation2], %s8423_s30 }
  0x27   : > { %v413_v22 = vrot.slane %v411_v16, 5  ;;  %v419_v23 = vrot.slane %v417_v17, 5  ;;  %v400_v26 = vor.u32 %v399_v19, %v396_v14  ;;  %v8496_v27 = vld [vmem:[%s11131_s12 + $0xa0] sm:$0xf]  ;;  %v8497_v28 = vld [vmem:[%s11131_s12 + $0xa4] sm:$0x1]  ;;  %9971 = vmatprep.mubr.msk.bf16.mxu1 %vm519_vm1, %v10868_v24 }
  0x28   : > { %v8498_v29 = vld [vmem:[%s11131_s12 + $0xa8] sm:$0xf]  ;;  %v8499_v32 = vld [vmem:[%s11131_s12 + $0xac] sm:$0x1]  ;;  %v422_v33 = vshrl.u32 %v8496_v27, 16  ;;  %v425_v34 = vshll.u32 %v8496_v27, 16 }
  0x29   : > { %v414_v31 = vor.u32 %v413_v22, %v410_v21  ;;  %v431_v35 = vshll.u32 %v8497_v28, 16  ;;  %v401_v36 = vrot.slane %v400_v26, 4  ;;  %v436_v37 = vshrl.u32 %v8498_v29, 16  ;;  %v10869_v48 = vld [vmem:[%s11131_s12 + $0x108] ss:$8 sps:$4 sm:$0xff]  }
  0x2a   : > { %v439_v38 = vshll.u32 %v8498_v29, 16  ;;  %v445_v39 = vshll.u32 %v8499_v32, 16  ;;  %v424_v41 = vrot.slane %v422_v33, 4  ;;  %v427_v42 = vrot.slane %v425_v34, 5  ;;  %v2149_v51 = vld [vmem:[%s12935_s1] sm:$0xf] }
  0x2b   : > { %v415_v40 = vrot.slane %v414_v31, 4  ;;  %v433_v43 = vrot.slane %v431_v35, 5  ;;  %v406_v44 = vsel %vm11166_vm4, %v401_v36, %v405_v20  ;;  %v438_v45 = vrot.slane %v436_v37, 4  ;;  %v8500_v52 = vld [vmem:[%s11131_s12 + $0xb0] sm:$0xf]  ;;  %10797 = vmatprep.subr.msk.bf16.mxu1 %vm532_vm0, %v2149_v51 }
  0x2c   : > { %v441_v46 = vrot.slane %v439_v38, 5  ;;  %v447_v47 = vrot.slane %v445_v39, 5  ;;  %v428_v50 = vor.u32 %v427_v42, %v424_v41  ;;  %v8501_v53 = vld [vmem:[%s11131_s12 + $0xb4] sm:$0x1]  ;;  %v2292_v56 = vsel %vm532_vm0, %v2149_v51, 0 }
  0x2d   : > { %v420_v49 = vsel %vm11166_vm4, %v415_v40, %v419_v23  ;;  %9972 = vmatmul.mubr.msk.bf16.gmra.mrb[4].mxu1 %vm519_vm1, %v10869_v48  ;;  %v8502_v57 = vld [vmem:[%s11131_s12 + $0xb8] sm:$0xf]  ;;  %v8503_v58 = vld [vmem:[%s11131_s12 + $0xbc] sm:$0x1]  ;;  %v450_v59 = vshrl.u32 %v8500_v52, 16  ;;  %v453_v61 = vshll.u32 %v8500_v52, 16 }
  0x2e   : > { %v8509_v54 = vcombine.low %v406_v44, %v420_v49  ;;  %v442_v55 = vor.u32 %v441_v46, %v438_v45  ;;  %v429_v60 = vrot.slane %v428_v50, 4  ;;  %9976 = vmatpush3.bf16.msra.mxu1 %v2292_v56  ;;  %v459_v62 = vshll.u32 %v8501_v53, 16  ;;  %v10870_v8 = vld [vmem:[%s11131_s12 + $0x90] ss:$8 sps:$4 sm:$0xff]   ;;  %v8504_v12 = vld [vmem:[%s11131_s12 + $0xc0] sm:$0xf] }
  0x2f   : > { %v464_v63 = vshrl.u32 %v8502_v57, 16  ;;  %v452_v1 = vrot.slane %v450_v59, 4  ;;  %v467_v2 = vshll.u32 %v8502_v57, 16  ;;  %v473_v3 = vshll.u32 %v8503_v58, 16  ;;  %v8505_v13 = vld [vmem:[%s11131_s12 + $0xc4] sm:$0x1]  ;;  %9977 = vmatprep.mubr.msk.bf16.mxu1 %vm519_vm1, %v10870_v8 }
  0x30   : > { %9877 = vmatprep.mubr.msk.bf16.mxu0 %vm519_vm1, %v8509_v54  ;;  %v443_v0 = vrot.slane %v442_v55, 4  ;;  %v434_v4 = vsel %vm11166_vm4, %v429_v60, %v433_v43  ;;  %v455_v5 = vrot.slane %v453_v61, 5  ;;  %v461_v6 = vrot.slane %v459_v62, 5  ;;  %v8506_v16 = vld [vmem:[%s11131_s12 + $0xc8] sm:$0xf] }
  0x31   : > { %v466_v7 = vrot.slane %v464_v63, 4  ;;  %v469_v10 = vrot.slane %v467_v2, 5  ;;  %v475_v11 = vrot.slane %v473_v3, 5  ;;  %v8507_v17 = vld [vmem:[%s11131_s12 + $0xcc] sm:$0x1]  ;;  %v478_v18 = vshrl.u32 %v8504_v12, 16 }
  0x32   : > { %v448_v9 = vsel %vm11166_vm4, %v443_v0, %v447_v47  ;;  %v456_v15 = vor.u32 %v455_v5, %v452_v1  ;;  %v481_v19 = vshll.u32 %v8504_v12, 16  ;;  %v487_v21 = vshll.u32 %v8505_v13, 16  ;;  %v10871_v33 = vld [vmem:[%s11131_s12 + $0xa0] ss:$8 sps:$4 sm:$0xff]   ;;  %v10873_v42 = vld [vmem:[%s11131_s12 + $0xb0] ss:$8 sps:$4 sm:$0xff]  }
  0x33   : > { %v8510_v14 = vcombine.low %v434_v4, %v448_v9  ;;  %v470_v20 = vor.u32 %v469_v10, %v466_v7  ;;  %v492_v22 = vshrl.u32 %v8506_v16, 16  ;;  %v495_v23 = vshll.u32 %v8506_v16, 16  ;;  %v10872_v45 = vld [vmem:[%s11131_s12 + $0xd8] ss:$8 sps:$4 sm:$0xff]   ;;  %v8741_v48 = vld [vmem:[%s12935_s1 + $0x8] sm:$0xf] }
  0x34   : > { %v457_v24 = vrot.slane %v456_v15, 4  ;;  %v480_v26 = vrot.slane %v478_v18, 4  ;;  %v483_v27 = vrot.slane %v481_v19, 5  ;;  %v501_v28 = vshll.u32 %v8507_v17, 16  ;;  %v10875_v47 = vld [vmem:[%s11131_s12 + $0xc0] ss:$8 sps:$4 sm:$0xff]   ;;  %10798 = vmatprep.subr.msk.bf16.mxu1 %vm532_vm0, %v8741_v48 }
  0x35   : > { %9878 = vmatmul.mubr.msk.bf16.vlgmr.msra.gmra.mrb[0].mxu0 %vm519_vm1, %v8510_v14  ;;  %v471_v29 = vrot.slane %v470_v20, 4  ;;  %v494_v31 = vrot.slane %v492_v22, 4  ;;  %v497_v32 = vrot.slane %v495_v23, 5  ;;  %v489_v36 = vrot.slane %v487_v21, 5  ;;  %9978 = vmatmul.mubr.msk.bf16.vlgmr.msra.gmra.mrb[0].mxu1 %vm519_vm1, %v10871_v33  ;;  %v8725_v52 = vld [vmem:[%s11131_s12 + $0x90] sm:$0xf] }
  0x36   : > { %9886 = vmatpush3.bf16.msra.mxu0 %v11159_v25  ;;  %v462_v34 = vsel %vm11166_vm4, %v457_v24, %v461_v6  ;;  %v484_v35 = vor.u32 %v483_v27, %v480_v26  ;;  %v503_v39 = vrot.slane %v501_v28, 5  ;;  %v8541_v25 = vld [vmem:[%s12935_s1 + $0x8] sm:$0xf]  ;;  %9981 = vmatprep.mubr.msk.bf16.mxu1 %vm519_vm1, %v10873_v42  ;;  %v2513_v51 = vsel %vm532_vm0, %v8741_v48, 0  ;;  %v8726_v53 = vld [vmem:[%s11131_s12 + $0x94] sm:$0x1] }
  0x37   : > { %v476_v37 = vsel %vm11166_vm4, %v471_v29, %v475_v11  ;;  %v498_v38 = vor.u32 %v497_v32, %v494_v31  ;;  %10789 = vmatprep.subr.msk.bf16.mxu0 %vm532_vm0, %v8541_v25  ;;  %v856_v50 = vsel %vm532_vm0, %v8541_v25, 0  ;;  %9986 = vmatpush3.bf16.msra.mxu1 %v2513_v51  ;;  %v8727_v54 = vld [vmem:[%s11131_s12 + $0x98] sm:$0xf]  ;;  %v8728_v55 = vld [vmem:[%s11131_s12 + $0x9c] sm:$0x1]  ;;  %v2376_v56 = vshrl.u32 %v8725_v52, 16 }
  0x38   : > { %v8511_v40 = vcombine.low %v462_v34, %v476_v37  ;;  %v485_v41 = vrot.slane %v484_v35, 4  ;;  %v2379_v57 = vshll.u32 %v8725_v52, 16  ;;  %v2385_v58 = vshll.u32 %v8726_v53, 16  ;;  %v10874_v62 = vld [vmem:[%s11131_s12 + $0xe8] ss:$8 sps:$4 sm:$0xff]  }
  0x39   : > { %v499_v43 = vrot.slane %v498_v38, 4  ;;  %v2390_v59 = vshrl.u32 %v8727_v54, 16  ;;  %v2393_v60 = vshll.u32 %v8727_v54, 16  ;;  %v2399_v61 = vshll.u32 %v8728_v55, 16  ;;  %v10876_v3 = vld [vmem:[%s11131_s12 + $0xf8] ss:$8 sps:$4 sm:$0xff]  }
  0x3a   : > { %9881 = vmatprep.mubr.msk.bf16.mxu0 %vm519_vm1, %v8511_v40  ;;  %v490_v44 = vsel %vm11166_vm4, %v485_v41, %v489_v36  ;;  %v2378_v63 = vrot.slane %v2376_v56, 4  ;;  %v2381_v0 = vrot.slane %v2379_v57, 5  ;;  %v2387_v1 = vrot.slane %v2385_v58, 5  ;;  %v8729_v6 = vld [vmem:[%s11131_s12 + $0xa0] sm:$0xf] }
  0x3b   : > { %v504_v46 = vsel %vm11166_vm4, %v499_v43, %v503_v39  ;;  %v2392_v2 = vrot.slane %v2390_v59, 4  ;;  %v2395_v4 = vrot.slane %v2393_v60, 5  ;;  %v2401_v5 = vrot.slane %v2399_v61, 5  ;;  %v8730_v7 = vld [vmem:[%s11131_s12 + $0xa4] sm:$0x1] }
  0x3c   : > { %v8512_v49 = vcombine.low %v490_v44, %v504_v46  ;;  %v2382_v8 = vor.u32 %v2381_v0, %v2378_v63  ;;  %v8731_v9 = vld [vmem:[%s11131_s12 + $0xa8] sm:$0xf]  ;;  %v8732_v10 = vld [vmem:[%s11131_s12 + $0xac] sm:$0x1]  ;;  %v2404_v11 = vshrl.u32 %v8729_v6, 16  ;;  %v2407_v12 = vshll.u32 %v8729_v6, 16 }
  0x3d   : > { %9982 = vmatmul.mubr.msk.bf16.gmra.mrb[4].mxu1 %vm519_vm1, %v10875_v47  ;;  %v2396_v13 = vor.u32 %v2395_v4, %v2392_v2  ;;  %v2413_v14 = vshll.u32 %v8730_v7, 16  ;;  %v2418_v15 = vshrl.u32 %v8731_v9, 16  ;;  %v2421_v16 = vshll.u32 %v8731_v9, 16  ;;  %v8525_v17 = vld [vmem:[%s11131_s12 + $0xd8] sm:$0xf] }
  0x3e   : > { %9882 = vmatmul.mubr.msk.bf16.gmra.mrb[4].mxu0 %vm519_vm1, %v8512_v49  ;;  %v2383_v18 = vrot.slane %v2382_v8, 4  ;;  %v2406_v19 = vrot.slane %v2404_v11, 4  ;;  %v2409_v20 = vrot.slane %v2407_v12, 5  ;;  %v2427_v21 = vshll.u32 %v8732_v10, 16  ;;  %v8526_v22 = vld [vmem:[%s11131_s12 + $0xdc] sm:$0x1] }
  0x3f   : > { %9887 = vmatprep.mubr.msk.bf16.mxu0 %vm519_vm1, %v10872_v45  ;;  %v2397_v23 = vrot.slane %v2396_v13, 4  ;;  %v2415_v24 = vrot.slane %v2413_v14, 5  ;;  %v2420_v26 = vrot.slane %v2418_v15, 4  ;;  %v2423_v27 = vrot.slane %v2421_v16, 5  ;;  %v8527_v28 = vld [vmem:[%s11131_s12 + $0xe0] sm:$0xf] }
  0x40   : > { %v2388_v29 = vsel %vm11166_vm4, %v2383_v18, %v2387_v1  ;;  %v2410_v31 = vor.u32 %v2409_v20, %v2406_v19  ;;  %v2429_v32 = vrot.slane %v2427_v21, 5  ;;  %v718_v33 = vshrl.u32 %v8525_v17, 16  ;;  %v11247_v34 = vld [vmem:[%s12935_s1 + $0xc] sm:$0xf]  ;;  %v8528_v37 = vld [vmem:[%s11131_s12 + $0xe4] sm:$0x1] }
  0x41   : > { %v2402_v35 = vsel %vm11166_vm4, %v2397_v23, %v2401_v5  ;;  %v2424_v36 = vor.u32 %v2423_v27, %v2420_v26  ;;  %v721_v38 = vshll.u32 %v8525_v17, 16  ;;  %v727_v39 = vshll.u32 %v8526_v22, 16  ;;  %v8733_v25 = vld [vmem:[%s11131_s12 + $0xb0] sm:$0xf]  ;;  %v8734_v49 = vld [vmem:[%s11131_s12 + $0xb4] sm:$0x1] }
  0x42   : > { %v8742_v40 = vcombine.low %v2388_v29, %v2402_v35  ;;  %v10877_v41 = vld [vmem:[%s11131_s12 + $0x108] ss:$8 sps:$4 sm:$0xff]   ;;  %v2411_v42 = vrot.slane %v2410_v31, 4  ;;  %v720_v43 = vrot.slane %v718_v33, 4  ;;  %v732_v44 = vshrl.u32 %v8527_v28, 16 }
  0x43   : > { %v2425_v45 = vrot.slane %v2424_v36, 4  ;;  %v723_v46 = vrot.slane %v721_v38, 5  ;;  %v729_v47 = vrot.slane %v727_v39, 5  ;;  %v735_v48 = vshll.u32 %v8527_v28, 16  ;;  %v8735_v53 = vld [vmem:[%s11131_s12 + $0xb8] sm:$0xf] }
  0x44   : > { %9987 = vmatprep.mubr.msk.bf16.mxu1 %vm519_vm1, %v8742_v40  ;;  %v734_v51 = vrot.slane %v732_v44, 4  ;;  %v741_v52 = vshll.u32 %v8528_v37, 16  ;;  %v2432_v54 = vshrl.u32 %v8733_v25, 16  ;;  %v8736_v58 = vld [vmem:[%s11131_s12 + $0xbc] sm:$0x1]  ;;  %v2435_v59 = vshll.u32 %v8733_v25, 16 }
  0x45   : > { %v2430_v55 = vsel %vm11166_vm4, %v2425_v45, %v2429_v32  ;;  %v724_v56 = vor.u32 %v723_v46, %v720_v43  ;;  %v737_v57 = vrot.slane %v735_v48, 5  ;;  %v8529_v60 = vld [vmem:[%s11131_s12 + $0xe8] sm:$0xf]  ;;  %v2441_v0 = vshll.u32 %v8734_v49, 16  ;;  %v8530_v5 = vld [vmem:[%s11131_s12 + $0xec] sm:$0x1] }
  0x46   : > { %9888 = vmatmul.mubr.msk.bf16.vlgmr.msra.gmra.mrb[0].mxu0 %vm519_vm1, %v10874_v62  ;;  %v743_v62 = vrot.slane %v741_v52, 5  ;;  %v2434_v63 = vrot.slane %v2432_v54, 4  ;;  %v2446_v4 = vshrl.u32 %v8735_v53, 16  ;;  %v2449_v7 = vshll.u32 %v8735_v53, 16  ;;  %v8531_v9 = vld [vmem:[%s11131_s12 + $0xf0] sm:$0xf] }
  0x47   : > { %9896 = vmatpush3.bf16.msra.mxu0 %v856_v50  ;;  %9891 = vmatprep.mubr.msk.bf16.mxu0 %vm519_vm1, %v10876_v3  ;;  %v2416_v50 = vsel %vm11166_vm4, %v2411_v42, %v2415_v24  ;;  %v725_v1 = vrot.slane %v724_v56, 4  ;;  %v738_v2 = vor.u32 %v737_v57, %v734_v51  ;;  %v2437_v3 = vrot.slane %v2435_v59, 5  ;;  %v8532_v15 = vld [vmem:[%s11131_s12 + $0xf4] sm:$0x1]  ;;  %v8758_v20 = vld [vmem:[%s12935_s1 + $0xc] sm:$0xf] }
  0x48   : > { %10790 = vmatprep.subr.msk.bf16.mxu0 %vm532_vm0, %v11247_v34  ;;  %v8743_v61 = vcombine.low %v2416_v50, %v2430_v55  ;;  %v2443_v6 = vrot.slane %v2441_v0, 5  ;;  %v2455_v8 = vshll.u32 %v8736_v58, 16  ;;  %v746_v10 = vshrl.u32 %v8529_v60, 16  ;;  %10799 = vmatprep.subr.msk.bf16.mxu1 %vm532_vm0, %v8758_v20  ;;  %v8737_v31 = vld [vmem:[%s11131_s12 + $0xc0] sm:$0xf] }
  0x49   : > { %v730_v11 = vsel %vm11166_vm4, %v725_v1, %v729_v47  ;;  %v739_v12 = vrot.slane %v738_v2, 4  ;;  %v2438_v13 = vor.u32 %v2437_v3, %v2434_v63  ;;  %v2448_v14 = vrot.slane %v2446_v4, 4  ;;  %v8738_v32 = vld [vmem:[%s11131_s12 + $0xc4] sm:$0x1]  ;;  %v8739_v38 = vld [vmem:[%s11131_s12 + $0xc8] sm:$0xf] }
  0x4a   : > { %9988 = vmatmul.mubr.msk.bf16.vlgmr.msra.gmra.mrb[0].mxu1 %vm519_vm1, %v8743_v61  ;;  %v2451_v16 = vrot.slane %v2449_v7, 5  ;;  %v2457_v17 = vrot.slane %v2455_v8, 5  ;;  %v748_v18 = vrot.slane %v746_v10, 4  ;;  %v749_v19 = vshll.u32 %v8529_v60, 16  ;;  %v8740_v42 = vld [vmem:[%s11131_s12 + $0xcc] sm:$0x1] }
  0x4b   : > { %v744_v21 = vsel %vm11166_vm4, %v739_v12, %v743_v62  ;;  %v2439_v22 = vrot.slane %v2438_v13, 4  ;;  %v755_v23 = vshll.u32 %v8530_v5, 16  ;;  %v760_v24 = vshrl.u32 %v8531_v9, 16  ;;  %v8533_v51 = vld [vmem:[%s11131_s12 + $0xf8] sm:$0xf] }
  0x4c   : > { %v8542_v26 = vcombine.low %v730_v11, %v744_v21  ;;  %v2452_v27 = vor.u32 %v2451_v16, %v2448_v14  ;;  %v751_v28 = vrot.slane %v749_v19, 5  ;;  %v763_v29 = vshll.u32 %v8531_v9, 16  ;;  %v8534_v52 = vld [vmem:[%s11131_s12 + $0xfc] sm:$0x1]  ;;  %v8535_v56 = vld [vmem:[%s11131_s12 + $0x100] sm:$0xf] }
  0x4d   : > { %v2444_v33 = vsel %vm11166_vm4, %v2439_v22, %v2443_v6  ;;  %v757_v35 = vrot.slane %v755_v23, 5  ;;  %v762_v36 = vrot.slane %v760_v24, 4  ;;  %v769_v37 = vshll.u32 %v8532_v15, 16  ;;  %v8536_v61 = vld [vmem:[%s11131_s12 + $0x104] sm:$0x1] }
  0x4e   : > { %9892 = vmatmul.mubr.msk.bf16.gmra.mrb[4].mxu0 %vm519_vm1, %v10877_v41  ;;  %v2453_v39 = vrot.slane %v2452_v27, 4  ;;  %v752_v25 = vor.u32 %v751_v28, %v748_v18  ;;  %v765_v40 = vrot.slane %v763_v29, 5  ;;  %v975_v41 = vsel %vm532_vm0, %v11247_v34, 0  ;;  %v8537_v2 = vld [vmem:[%s11131_s12 + $0x108] sm:$0xf] }
  0x4f   : > { %9897 = vmatprep.mubr.msk.bf16.mxu0 %vm519_vm1, %v8542_v26  ;;  %v771_v43 = vrot.slane %v769_v37, 5  ;;  %v2460_v44 = vshrl.u32 %v8737_v31, 16  ;;  %v2463_v45 = vshll.u32 %v8737_v31, 16  ;;  %v2469_v46 = vshll.u32 %v8738_v32, 16  ;;  %v8538_v6 = vld [vmem:[%s11131_s12 + $0x10c] sm:$0x1] }
  0x50   : > { %v2458_v47 = vsel %vm11166_vm4, %v2453_v39, %v2457_v17  ;;  %v753_v48 = vrot.slane %v752_v25, 4  ;;  %v766_v49 = vor.u32 %v765_v40, %v762_v36  ;;  %v2474_v50 = vshrl.u32 %v8739_v38, 16  ;;  %v8539_v15 = vld [vmem:[%s11131_s12 + $0x110] sm:$0xf]  ;;  %v8540_v28 = vld [vmem:[%s11131_s12 + $0x114] sm:$0x1] }
  0x51   : > { %v8744_v53 = vcombine.low %v2444_v33, %v2458_v47  ;;  %v2462_v54 = vrot.slane %v2460_v44, 4  ;;  %v2465_v55 = vrot.slane %v2463_v45, 5  ;;  %v2471_v34 = vrot.slane %v2469_v46, 5  ;;  %v10878_v23 = vld [vmem:[%s11131_s12 + $0x8] ss:$8 sps:$4 sm:$0xff]  }
  0x52   : > { %v758_v57 = vsel %vm11166_vm4, %v753_v48, %v757_v35  ;;  %v767_v58 = vrot.slane %v766_v49, 4  ;;  %v2476_v59 = vrot.slane %v2474_v50, 4  ;;  %v2477_v60 = vshll.u32 %v8739_v38, 16  ;;  %v8583_v37 = vld [vmem:[%s12935_s1 + $0x10] sm:$0xf] }
  0x53   : > { %9991 = vmatprep.mubr.msk.bf16.mxu1 %vm519_vm1, %v8744_v53  ;;  %v2466_v62 = vor.u32 %v2465_v55, %v2462_v54  ;;  %v2483_v63 = vshll.u32 %v8740_v42, 16  ;;  %v2630_v0 = vsel %vm532_vm0, %v8758_v20, 0  ;;  %v774_v1 = vshrl.u32 %v8533_v51, 16 }
  0x54   : > { %v772_v3 = vsel %vm11166_vm4, %v767_v58, %v771_v43  ;;  %v2479_v4 = vrot.slane %v2477_v60, 5  ;;  %9996 = vmatpush3.bf16.msra.mxu1 %v2630_v0  ;;  %v777_v5 = vshll.u32 %v8533_v51, 16  ;;  %v783_v10 = vshll.u32 %v8534_v52, 16  ;;  %v8775_v52 = vld [vmem:[%s12935_s1 + $0x10] sm:$0xf] }
  0x55   : > { %v8543_v7 = vcombine.low %v758_v57, %v772_v3  ;;  %v2467_v8 = vrot.slane %v2466_v62, 4  ;;  %v776_v9 = vrot.slane %v774_v1, 4  ;;  %v2485_v12 = vrot.slane %v2483_v63, 5  ;;  %10800 = vmatprep.subr.msk.bf16.mxu1 %vm532_vm0, %v8775_v52  ;;  %v10880_v58 = vld [vmem:[%s11131_s12 + $0x50] ss:$8 sps:$4 sm:$0xff]  }
  0x56   : > { %v2480_v11 = vor.u32 %v2479_v4, %v2476_v59  ;;  %v779_v13 = vrot.slane %v777_v5, 5  ;;  %v788_v14 = vshrl.u32 %v8535_v56, 16  ;;  %v791_v17 = vshll.u32 %v8535_v56, 16  ;;  %v10881_v56 = vld [vmem:[%s11131_s12 + $0x28] ss:$8 sps:$4 sm:$0xff]  }
  0x57   : > { %9898 = vmatmul.mubr.msk.bf16.vlgmr.msra.gmra.mrb[0].mxu0 %vm519_vm1, %v8543_v7  ;;  %v2472_v16 = vsel %vm11166_vm4, %v2467_v8, %v2471_v34  ;;  %v797_v18 = vshll.u32 %v8536_v61, 16  ;;  %v802_v19 = vshrl.u32 %v8537_v2, 16  ;;  %v805_v24 = vshll.u32 %v8537_v2, 16  ;;  %v10879_v34 = vld [vmem:[%s11131_s12 + $0x18] ss:$8 sps:$4 sm:$0xff]  }
  0x58   : > { %9906 = vmatpush3.bf16.msra.mxu0 %v975_v41  ;;  %v2481_v20 = vrot.slane %v2480_v11, 4  ;;  %v780_v21 = vor.u32 %v779_v13, %v776_v9  ;;  %v790_v22 = vrot.slane %v788_v14, 4  ;;  %v785_v26 = vrot.slane %v783_v10, 5  ;;  %v8567_v62 = vld [vmem:[%s11131_s12 + $0x8] sm:$0xf] }
  0x59   : > { %v793_v27 = vrot.slane %v791_v17, 5  ;;  %v804_v29 = vrot.slane %v802_v19, 4  ;;  %v811_v31 = vshll.u32 %v8538_v6, 16  ;;  %v807_v35 = vrot.slane %v805_v24, 5  ;;  %10791 = vmatprep.subr.msk.bf16.mxu0 %vm532_vm0, %v8583_v37  ;;  %v8568_v63 = vld [vmem:[%s11131_s12 + $0xc] sm:$0x1] }
  0x5a   : > { %v2486_v32 = vsel %vm11166_vm4, %v2481_v20, %v2485_v12  ;;  %v781_v33 = vrot.slane %v780_v21, 4  ;;  %v816_v36 = vshrl.u32 %v8539_v15, 16  ;;  %v799_v25 = vrot.slane %v797_v18, 5  ;;  %v8569_v0 = vld [vmem:[%s11131_s12 + $0x10] sm:$0xf] }
  0x5b   : > { %v8745_v38 = vcombine.low %v2472_v16, %v2486_v32  ;;  %v794_v39 = vor.u32 %v793_v27, %v790_v22  ;;  %v819_v40 = vshll.u32 %v8539_v15, 16  ;;  %v808_v41 = vor.u32 %v807_v35, %v804_v29  ;;  %v8570_v1 = vld [vmem:[%s11131_s12 + $0x14] sm:$0x1]  ;;  %v10883_v6 = vld [vmem:[%s11131_s12 + $0x38] ss:$8 sps:$4 sm:$0xff]  }
  0x5c   : > { %v818_v42 = vrot.slane %v816_v36, 4  ;;  %v825_v43 = vshll.u32 %v8540_v28, 16  ;;  %v786_v44 = vsel %vm11166_vm4, %v781_v33, %v785_v26  ;;  %v813_v46 = vrot.slane %v811_v31, 5  ;;  %v10882_v9 = vld [vmem:[%s11131_s12 + $0x60] ss:$8 sps:$4 sm:$0xff]  }
  0x5d   : > { %9992 = vmatmul.mubr.msk.bf16.gmra.mrb[4].mxu1 %vm519_vm1, %v8745_v38  ;;  %v795_v45 = vrot.slane %v794_v39, 4  ;;  %v821_v47 = vrot.slane %v819_v40, 5  ;;  %v809_v48 = vrot.slane %v808_v41, 4  ;;  %v1206_v60 = vsel %vm532_vm0, %v8583_v37, 0  ;;  %v10885_v10 = vld [vmem:[%s11131_s12 + $0x50] ss:$8 sps:$4 sm:$0xff]  }
  0x5e   : > { %9997 = vmatprep.mubr.msk.bf16.mxu1 %vm519_vm1, %v10878_v23  ;;  %v827_v51 = vrot.slane %v825_v43, 5  ;;  %v2747_v61 = vsel %vm532_vm0, %v8775_v52, 0  ;;  %v1068_v2 = vshrl.u32 %v8567_v62, 16  ;;  %v1071_v3 = vshll.u32 %v8567_v62, 16  ;;  %v10884_v15 = vld [vmem:[%s11131_s12 + $0x70] ss:$8 sps:$4 sm:$0xff]  }
  0x5f   : > { %v800_v49 = vsel %vm11166_vm4, %v795_v45, %v799_v25  ;;  %v822_v50 = vor.u32 %v821_v47, %v818_v42  ;;  %v814_v54 = vsel %vm11166_vm4, %v809_v48, %v813_v46  ;;  %v1077_v4 = vshll.u32 %v8568_v63, 16  ;;  %v8571_v18 = vld [vmem:[%s11131_s12 + $0x18] sm:$0xf]  ;;  %v8572_v19 = vld [vmem:[%s11131_s12 + $0x1c] sm:$0x1] }
  0x60   : > { %v8544_v53 = vcombine.low %v786_v44, %v800_v49  ;;  %v1082_v5 = vshrl.u32 %v8569_v0, 16  ;;  %v1085_v7 = vshll.u32 %v8569_v0, 16  ;;  %v1091_v8 = vshll.u32 %v8570_v1, 16  ;;  %v8608_v21 = vld [vmem:[%s12935_s1 + $0x14] sm:$0xf] }
  0x61   : > { %v823_v55 = vrot.slane %v822_v50, 4  ;;  %v1070_v11 = vrot.slane %v1068_v2, 4  ;;  %v1073_v12 = vrot.slane %v1071_v3, 5  ;;  %v1079_v13 = vrot.slane %v1077_v4, 5  ;;  %v8573_v22 = vld [vmem:[%s11131_s12 + $0x20] sm:$0xf] }
  0x62   : > { %9901 = vmatprep.mubr.msk.bf16.mxu0 %vm519_vm1, %v8544_v53  ;;  %v1084_v14 = vrot.slane %v1082_v5, 4  ;;  %v1087_v16 = vrot.slane %v1085_v7, 5  ;;  %v1093_v17 = vrot.slane %v1091_v8, 5  ;;  %v8574_v23 = vld [vmem:[%s11131_s12 + $0x24] sm:$0x1]  ;;  %v1096_v24 = vshrl.u32 %v8571_v18, 16 }
  0x63   : > { %v828_v57 = vsel %vm11166_vm4, %v823_v55, %v827_v51  ;;  %v1074_v20 = vor.u32 %v1073_v12, %v1070_v11  ;;  %v1099_v26 = vshll.u32 %v8571_v18, 16  ;;  %v1105_v28 = vshll.u32 %v8572_v19, 16  ;;  %v8800_v43 = vld [vmem:[%s12935_s1 + $0x14] sm:$0xf]  ;;  %v8575_v44 = vld [vmem:[%s11131_s12 + $0x28] sm:$0xf] }
  0x64   : > { %v8545_v59 = vcombine.low %v814_v54, %v828_v57  ;;  %v1088_v27 = vor.u32 %v1087_v16, %v1084_v14  ;;  %v1110_v29 = vshrl.u32 %v8573_v22, 16  ;;  %v1113_v31 = vshll.u32 %v8573_v22, 16  ;;  %v10887_v45 = vld [vmem:[%s11131_s12 + $0x60] ss:$8 sps:$4 sm:$0xff]   ;;  %v8576_v49 = vld [vmem:[%s11131_s12 + $0x2c] sm:$0x1] }
  0x65   : > { %9998 = vmatmul.mubr.msk.bf16.vlgmr.msra.gmra.mrb[0].mxu1 %vm519_vm1, %v10879_v34  ;;  %v1075_v32 = vrot.slane %v1074_v20, 4  ;;  %v1098_v33 = vrot.slane %v1096_v24, 4  ;;  %v1101_v35 = vrot.slane %v1099_v26, 5  ;;  %v1119_v36 = vshll.u32 %v8574_v23, 16  ;;  %v8577_v50 = vld [vmem:[%s11131_s12 + $0x30] sm:$0xf] }
  0x66   : > { %9902 = vmatmul.mubr.msk.bf16.gmra.mrb[4].mxu0 %vm519_vm1, %v8545_v59  ;;  %10001 = vmatprep.mubr.msk.bf16.mxu1 %vm519_vm1, %v10881_v56  ;;  %v1089_v37 = vrot.slane %v1088_v27, 4  ;;  %v1112_v38 = vrot.slane %v1110_v29, 4  ;;  %v1115_v39 = vrot.slane %v1113_v31, 5  ;;  %v1107_v41 = vrot.slane %v1105_v28, 5  ;;  %v10886_v52 = vld [vmem:[%s11131_s12 + $0x80] ss:$8 sps:$4 sm:$0xff]  }
  0x67   : > { %9907 = vmatprep.mubr.msk.bf16.mxu0 %vm519_vm1, %v10880_v58  ;;  %10006 = vmatpush3.bf16.msra.mxu1 %v2747_v61  ;;  %v1080_v25 = vsel %vm11166_vm4, %v1075_v32, %v1079_v13  ;;  %v1102_v40 = vor.u32 %v1101_v35, %v1098_v33  ;;  %v1121_v42 = vrot.slane %v1119_v36, 5  ;;  %v11367_v48 = vsel %vm532_vm0, %v8608_v21, 0  ;;  %v10888_v53 = vld [vmem:[%s11131_s12 + $0x70] ss:$8 sps:$4 sm:$0xff]   ;;  %v8578_v34 = vld [vmem:[%s11131_s12 + $0x34] sm:$0x1] }
  0x68   : > { %v1094_v46 = vsel %vm11166_vm4, %v1089_v37, %v1093_v17  ;;  %v1116_v47 = vor.u32 %v1115_v39, %v1112_v38  ;;  %v1124_v51 = vshrl.u32 %v8575_v44, 16  ;;  %10801 = vmatprep.subr.msk.bf16.mxu1 %vm532_vm0, %v8800_v43  ;;  %v2976_v55 = vsel %vm532_vm0, %v8800_v43, 0  ;;  %v8784_v62 = vld [vmem:[%s11131_s12 + $0x8] sm:$0xf]  ;;  %v8785_v3 = vld [vmem:[%s11131_s12 + $0xc] sm:$0x1] }
  0x69   : > { %v1103_v54 = vrot.slane %v1102_v40, 4  ;;  %v1127_v56 = vshll.u32 %v8575_v44, 16  ;;  %v1133_v57 = vshll.u32 %v8576_v49, 16  ;;  %v1141_v61 = vshll.u32 %v8577_v50, 16  ;;  %v8786_v8 = vld [vmem:[%s11131_s12 + $0x10] sm:$0xf] }
  0x6a   : > { %v1117_v58 = vrot.slane %v1116_v47, 4  ;;  %v1126_v59 = vrot.slane %v1124_v51, 4  ;;  %v1147_v2 = vshll.u32 %v8578_v34, 16  ;;  %v8584_v4 = vcombine.low %v1080_v25, %v1094_v46  ;;  %v8579_v18 = vld [vmem:[%s11131_s12 + $0x38] sm:$0xf] }
  0x6b   : > { %v1108_v63 = vsel %vm11166_vm4, %v1103_v54, %v1107_v41  ;;  %v1129_v0 = vrot.slane %v1127_v56, 5  ;;  %v1135_v1 = vrot.slane %v1133_v57, 5  ;;  %v1143_v7 = vrot.slane %v1141_v61, 5  ;;  %v8580_v23 = vld [vmem:[%s11131_s12 + $0x3c] sm:$0x1] }
  0x6c   : > { %v1122_v5 = vsel %vm11166_vm4, %v1117_v58, %v1121_v42  ;;  %v1149_v12 = vrot.slane %v1147_v2, 5  ;;  %v2839_v13 = vshrl.u32 %v8784_v62, 16  ;;  %v2848_v16 = vshll.u32 %v8785_v3, 16  ;;  %v8581_v29 = vld [vmem:[%s11131_s12 + $0x40] sm:$0xf] }
  0x6d   : > { %10002 = vmatmul.mubr.msk.bf16.gmra.mrb[4].mxu1 %vm519_vm1, %v10883_v6  ;;  %v1130_v11 = vor.u32 %v1129_v0, %v1126_v59  ;;  %v2853_v17 = vshrl.u32 %v8786_v8, 16  ;;  %v10889_v31 = vld [vmem:[%s11131_s12 + $0x80] ss:$8 sps:$4 sm:$0xff]   ;;  %v1152_v36 = vshrl.u32 %v8579_v18, 16  ;;  %v8582_v39 = vld [vmem:[%s11131_s12 + $0x44] sm:$0x1] }
  0x6e   : > { %9908 = vmatmul.mubr.msk.bf16.vlgmr.msra.gmra.mrb[0].mxu0 %vm519_vm1, %v10882_v9  ;;  %10007 = vmatprep.mubr.msk.bf16.mxu1 %vm519_vm1, %v10885_v10  ;;  %v8787_v9 = vld [vmem:[%s11131_s12 + $0x14] sm:$0x1]  ;;  %v8585_v10 = vcombine.low %v1108_v63, %v1122_v5  ;;  %v2841_v20 = vrot.slane %v2839_v13, 4  ;;  %v2850_v27 = vrot.slane %v2848_v16, 5  ;;  %v1155_v25 = vshll.u32 %v8579_v18, 16 }
  0x6f   : > { %9916 = vmatpush3.bf16.msra.mxu0 %v1206_v60  ;;  %9911 = vmatprep.mubr.msk.bf16.mxu0 %vm519_vm1, %v10884_v15  ;;  %v1138_v60 = vshrl.u32 %v8577_v50, 16  ;;  %v2842_v15 = vshll.u32 %v8784_v62, 16  ;;  %v1131_v19 = vrot.slane %v1130_v11, 4  ;;  %v2862_v22 = vshll.u32 %v8787_v9, 16  ;;  %v8788_v41 = vld [vmem:[%s11131_s12 + $0x18] sm:$0xf] }
  0x70   : > { %10792 = vmatprep.subr.msk.bf16.mxu0 %vm532_vm0, %v8608_v21  ;;  %v2856_v21 = vshll.u32 %v8786_v8, 16  ;;  %v2855_v28 = vrot.slane %v2853_v17, 4  ;;  %v1161_v40 = vshll.u32 %v8580_v23, 16  ;;  %v1154_v44 = vrot.slane %v1152_v36, 4  ;;  %v8789_v51 = vld [vmem:[%s11131_s12 + $0x1c] sm:$0x1] }
  0x71   : > { %v1140_v6 = vrot.slane %v1138_v60, 4  ;;  %v2844_v26 = vrot.slane %v2842_v15, 5  ;;  %v1136_v32 = vsel %vm11166_vm4, %v1131_v19, %v1135_v1  ;;  %v2864_v35 = vrot.slane %v2862_v22, 5  ;;  %v8791_v59 = vld [vmem:[%s11131_s12 + $0x24] sm:$0x1] }
  0x72   : > { %v2858_v33 = vrot.slane %v2856_v21, 5  ;;  %v1157_v47 = vrot.slane %v1155_v25, 5  ;;  %v1163_v49 = vrot.slane %v1161_v40, 5  ;;  %v1169_v50 = vshll.u32 %v8581_v29, 16  ;;  %v11408_v61 = vld [vmem:[%s12935_s1 + $0x18] sm:$0xf] }
  0x73   : > { %v1144_v14 = vor.u32 %v1143_v7, %v1140_v6  ;;  %v2845_v38 = vor.u32 %v2844_v26, %v2841_v20  ;;  %v1175_v54 = vshll.u32 %v8582_v39, 16  ;;  %v2867_v34 = vshrl.u32 %v8788_v41, 16  ;;  %v8592_v2 = vld [vmem:[%s11131_s12 + $0x50] sm:$0xf]  ;;  %v8593_v11 = vld [vmem:[%s11131_s12 + $0x54] sm:$0x1] }
  0x74   : > { %v2859_v43 = vor.u32 %v2858_v33, %v2855_v28  ;;  %v1158_v57 = vor.u32 %v1157_v47, %v1154_v44  ;;  %v1171_v58 = vrot.slane %v1169_v50, 5  ;;  %v2870_v60 = vshll.u32 %v8788_v41, 16  ;;  %v8595_v19 = vld [vmem:[%s11131_s12 + $0x5c] sm:$0x1]  ;;  %v8792_v26 = vld [vmem:[%s11131_s12 + $0x28] sm:$0xf] }
  0x75   : > { %10008 = vmatmul.mubr.msk.bf16.vlgmr.msra.gmra.mrb[0].mxu1 %vm519_vm1, %v10887_v45  ;;  %v1145_v24 = vrot.slane %v1144_v14, 4  ;;  %v1166_v45 = vshrl.u32 %v8581_v29, 16  ;;  %v2846_v46 = vrot.slane %v2845_v38, 4  ;;  %v1177_v63 = vrot.slane %v1175_v54, 5  ;;  %v8594_v14 = vld [vmem:[%s11131_s12 + $0x58] sm:$0xf] }
  0x76   : > { %9912 = vmatmul.mubr.msk.bf16.gmra.mrb[4].mxu0 %vm519_vm1, %v10886_v52  ;;  %10011 = vmatprep.mubr.msk.bf16.mxu1 %vm519_vm1, %v10888_v53  ;;  %v2860_v52 = vrot.slane %v2859_v43, 4  ;;  %v2869_v0 = vrot.slane %v2867_v34, 4  ;;  %v2876_v1 = vshll.u32 %v8789_v51, 16  ;;  %v2872_v6 = vrot.slane %v2870_v60, 5  ;;  %v8794_v38 = vld [vmem:[%s11131_s12 + $0x30] sm:$0xf] }
  0x77   : > { %9917 = vmatprep.mubr.msk.bf16.mxu0 %vm519_vm1, %v8584_v4  ;;  %10016 = vmatpush3.bf16.msra.mxu1 %v2976_v55  ;;  %v1150_v37 = vsel %vm11166_vm4, %v1145_v24, %v1149_v12  ;;  %v1168_v53 = vrot.slane %v1166_v45, 4  ;;  %v8790_v55 = vld [vmem:[%s11131_s12 + $0x20] sm:$0xf]  ;;  %v2851_v56 = vsel %vm11166_vm4, %v2846_v46, %v2850_v27  ;;  %v1159_v4 = vrot.slane %v1158_v57, 4  ;;  %v8795_v44 = vld [vmem:[%s11131_s12 + $0x34] sm:$0x1] }
  0x78   : > { %v8586_v42 = vcombine.low %v1136_v32, %v1150_v37  ;;  %v2865_v62 = vsel %vm11166_vm4, %v2860_v52, %v2864_v35  ;;  %v2878_v7 = vrot.slane %v2876_v1, 5  ;;  %v2881_v8 = vshrl.u32 %v8790_v55, 16  ;;  %v8793_v32 = vld [vmem:[%s11131_s12 + $0x2c] sm:$0x1]  ;;  %v8596_v52 = vld [vmem:[%s11131_s12 + $0x60] sm:$0xf] }
  0x79   : > { %v8801_v3 = vcombine.low %v2851_v56, %v2865_v62  ;;  %v1172_v5 = vor.u32 %v1171_v58, %v1168_v53  ;;  %v2884_v9 = vshll.u32 %v8790_v55, 16  ;;  %v2873_v13 = vor.u32 %v2872_v6, %v2869_v0  ;;  %v8597_v56 = vld [vmem:[%s11131_s12 + $0x64] sm:$0x1]  ;;  %v8598_v57 = vld [vmem:[%s11131_s12 + $0x68] sm:$0xf] }
  0x7a   : > { %v1298_v15 = vshrl.u32 %v8592_v2, 16  ;;  %v2883_v16 = vrot.slane %v2881_v8, 4  ;;  %v1301_v20 = vshll.u32 %v8592_v2, 16  ;;  %v1307_v24 = vshll.u32 %v8593_v11, 16 }
  0x7b   : > { %v1173_v12 = vrot.slane %v1172_v5, 4  ;;  %v2886_v17 = vrot.slane %v2884_v9, 5  ;;  %v2874_v22 = vrot.slane %v2873_v13, 4  ;;  %v1315_v36 = vshll.u32 %v8594_v14, 16  ;;  %v8599_v5 = vld [vmem:[%s11131_s12 + $0x6c] sm:$0x1] }
  0x7c   : > { %v1300_v23 = vrot.slane %v1298_v15, 4  ;;  %v1303_v29 = vrot.slane %v1301_v20, 5  ;;  %v1309_v35 = vrot.slane %v1307_v24, 5  ;;  %v1321_v37 = vshll.u32 %v8595_v19, 16 }
  0x7d   : > { %10012 = vmatmul.mubr.msk.bf16.gmra.mrb[4].mxu1 %vm519_vm1, %v10889_v31  ;;  %v1178_v21 = vsel %vm11166_vm4, %v1173_v12, %v1177_v63  ;;  %v2887_v28 = vor.u32 %v2886_v17, %v2883_v16  ;;  %v1312_v31 = vshrl.u32 %v8594_v14, 16  ;;  %v2879_v33 = vsel %vm11166_vm4, %v2874_v22, %v2878_v7  ;;  %v8797_v16 = vld [vmem:[%s11131_s12 + $0x3c] sm:$0x1]  ;;  %v8798_v17 = vld [vmem:[%s11131_s12 + $0x40] sm:$0xf] }
  0x7e   : > { %9918 = vmatmul.mubr.msk.bf16.vlgmr.msra.gmra.mrb[0].mxu0 %vm519_vm1, %v8585_v10  ;;  %v2890_v10 = vshll.u32 %v8791_v59, 16  ;;  %10017 = vmatprep.mubr.msk.bf16.mxu1 %vm519_vm1, %v8801_v3  ;;  %v1304_v25 = vor.u32 %v1303_v29, %v1300_v23  ;;  %v2895_v41 = vshrl.u32 %v8792_v26, 16  ;;  %v1317_v43 = vrot.slane %v1315_v36, 5  ;;  %v8799_v22 = vld [vmem:[%s11131_s12 + $0x44] sm:$0x1] }
  0x7f   : > { %9926 = vmatpush3.bf16.msra.mxu0 %v11367_v48  ;;  %9921 = vmatprep.mubr.msk.bf16.mxu0 %vm519_vm1, %v8586_v42  ;;  %v1164_v48 = vsel %vm11166_vm4, %v1159_v4, %v1163_v49  ;;  %v2888_v39 = vrot.slane %v2887_v28, 4  ;;  %v1314_v40 = vrot.slane %v1312_v31, 4  ;;  %v11435_v42 = vld [vmem:[%s12935_s1 + $0x18] sm:$0xf]  ;;  %v2898_v45 = vshll.u32 %v8792_v26, 16 }
  0x80   : > { %10793 = vmatprep.subr.msk.bf16.mxu0 %vm532_vm0, %v11408_v61  ;;  %v2892_v18 = vrot.slane %v2890_v10, 5  ;;  %v8587_v27 = vcombine.low %v1164_v48, %v1178_v21  ;;  %v2904_v46 = vshll.u32 %v8793_v32, 16  ;;  %10802 = vmatprep.subr.msk.bf16.mxu1 %vm532_vm0, %v11435_v42  ;;  %v1305_v49 = vrot.slane %v1304_v25, 4  ;;  %v8796_v48 = vld [vmem:[%s11131_s12 + $0x38] sm:$0xf] }
  0x81   : > { %v2897_v50 = vrot.slane %v2895_v41, 4  ;;  %v2909_v51 = vshrl.u32 %v8794_v38, 16  ;;  %v1318_v54 = vor.u32 %v1317_v43, %v1314_v40  ;;  %v1323_v55 = vrot.slane %v1321_v37, 5  ;;  %v8600_v28 = vld [vmem:[%s11131_s12 + $0x70] sm:$0xf] }
  0x82   : > { %v2893_v47 = vsel %vm11166_vm4, %v2888_v39, %v2892_v18  ;;  %v2900_v34 = vrot.slane %v2898_v45, 5  ;;  %v1310_v58 = vsel %vm11166_vm4, %v1305_v49, %v1309_v35  ;;  %v2912_v60 = vshll.u32 %v8794_v38, 16  ;;  %v8602_v43 = vld [vmem:[%s11131_s12 + $0x78] sm:$0xf]  ;;  %v8603_v49 = vld [vmem:[%s11131_s12 + $0x7c] sm:$0x1] }
  0x83   : > { %v8802_v53 = vcombine.low %v2879_v33, %v2893_v47  ;;  %v2911_v59 = vrot.slane %v2909_v51, 4  ;;  %v2918_v62 = vshll.u32 %v8795_v44, 16  ;;  %v1319_v63 = vrot.slane %v1318_v54, 4  ;;  %v8601_v33 = vld [vmem:[%s11131_s12 + $0x74] sm:$0x1] }
  0x84   : > { %v2901_v0 = vor.u32 %v2900_v34, %v2897_v50  ;;  %v1326_v1 = vshrl.u32 %v8596_v52, 16  ;;  %v1329_v2 = vshll.u32 %v8596_v52, 16  ;;  %v2906_v3 = vrot.slane %v2904_v46, 5  ;;  %v8604_v54 = vld [vmem:[%s11131_s12 + $0x80] sm:$0xf] }
  0x85   : > { %10018 = vmatmul.mubr.msk.bf16.vlgmr.msra.gmra.mrb[0].mxu1 %vm519_vm1, %v8802_v53  ;;  %v2914_v4 = vrot.slane %v2912_v60, 5  ;;  %v1335_v6 = vshll.u32 %v8597_v56, 16  ;;  %v1340_v7 = vshrl.u32 %v8598_v57, 16  ;;  %v1324_v8 = vsel %vm11166_vm4, %v1319_v63, %v1323_v55  ;;  %v8605_v63 = vld [vmem:[%s11131_s12 + $0x84] sm:$0x1] }
  0x86   : > { %9922 = vmatmul.mubr.msk.bf16.gmra.mrb[4].mxu0 %vm519_vm1, %v8587_v27  ;;  %v2902_v9 = vrot.slane %v2901_v0, 4  ;;  %v1328_v10 = vrot.slane %v1326_v1, 4  ;;  %v1331_v11 = vrot.slane %v1329_v2, 5  ;;  %v8609_v12 = vcombine.low %v1310_v58, %v1324_v8  ;;  %v8606_v0 = vld [vmem:[%s11131_s12 + $0x88] sm:$0xf] }
  0x87   : > { %v2915_v13 = vor.u32 %v2914_v4, %v2911_v59  ;;  %v2920_v14 = vrot.slane %v2918_v62, 5  ;;  %v1337_v15 = vrot.slane %v1335_v6, 5  ;;  %v1342_v19 = vrot.slane %v1340_v7, 4  ;;  %v8607_v8 = vld [vmem:[%s11131_s12 + $0x8c] sm:$0x1] }
  0x88   : > { %v1332_v18 = vor.u32 %v1331_v11, %v1328_v10  ;;  %v1343_v20 = vshll.u32 %v8598_v57, 16  ;;  %v1349_v21 = vshll.u32 %v8599_v5, 16  ;;  %9927 = vmatprep.mubr.msk.bf16.mxu0 %vm519_vm1, %v8609_v12  ;;  %v2907_v23 = vsel %vm11166_vm4, %v2902_v9, %v2906_v3  ;;  %v11480_v9 = vld [vmem:[%s12935_s1 + $0x1c] sm:$0xf] }
  0x89   : > { %v2916_v24 = vrot.slane %v2915_v13, 4  ;;  %v2923_v26 = vshrl.u32 %v8796_v48, 16  ;;  %v2926_v27 = vshll.u32 %v8796_v48, 16  ;;  %v2932_v32 = vshll.u32 %v8797_v16, 16 }
  0x8a   : > { %v1333_v29 = vrot.slane %v1332_v18, 4  ;;  %v1345_v31 = vrot.slane %v1343_v20, 5  ;;  %v2937_v38 = vshrl.u32 %v8798_v17, 16  ;;  %v1351_v41 = vrot.slane %v1349_v21, 5 }
  0x8b   : > { %v2921_v35 = vsel %vm11166_vm4, %v2916_v24, %v2920_v14  ;;  %v2925_v36 = vrot.slane %v2923_v26, 4  ;;  %v2928_v37 = vrot.slane %v2926_v27, 5  ;;  %v2940_v46 = vshll.u32 %v8798_v17, 16  ;;  %v10890_v17 = vld [vmem:[%s11131_s12 + $0x98] ss:$8 sps:$4 sm:$0xff]  }
  0x8c   : > { %v8803_v39 = vcombine.low %v2907_v23, %v2921_v35  ;;  %v1338_v25 = vsel %vm11166_vm4, %v1333_v29, %v1337_v15  ;;  %v1346_v40 = vor.u32 %v1345_v31, %v1342_v19  ;;  %v2939_v45 = vrot.slane %v2937_v38, 4  ;;  %v8834_v24 = vld [vmem:[%s12935_s1 + $0x1c] sm:$0xf]  ;;  %v10891_v38 = vld [vmem:[%s11131_s12 + $0xa8] ss:$8 sps:$4 sm:$0xff]  }
  0x8d   : > { %v2929_v44 = vor.u32 %v2928_v37, %v2925_v36  ;;  %v2946_v47 = vshll.u32 %v8799_v22, 16  ;;  %v3093_v51 = vsel %vm532_vm0, %v11435_v42, 0  ;;  %v1354_v52 = vshrl.u32 %v8600_v28, 16 }
  0x8e   : > { %10021 = vmatprep.mubr.msk.bf16.mxu1 %vm519_vm1, %v8803_v39  ;;  %v1347_v50 = vrot.slane %v1346_v40, 4  ;;  %v1357_v53 = vshll.u32 %v8600_v28, 16  ;;  %v2934_v34 = vrot.slane %v2932_v32, 5  ;;  %v2942_v56 = vrot.slane %v2940_v46, 5  ;;  %10026 = vmatpush3.bf16.msra.mxu1 %v3093_v51 }
  0x8f   : > { %v2930_v55 = vrot.slane %v2929_v44, 4  ;;  %v1363_v57 = vshll.u32 %v8601_v33, 16  ;;  %v1356_v59 = vrot.slane %v1354_v52, 4  ;;  %v1368_v62 = vshrl.u32 %v8602_v43, 16  ;;  %10803 = vmatprep.subr.msk.bf16.mxu1 %vm532_vm0, %v8834_v24  ;;  %v8634_v44 = vld [vmem:[%s11131_s12 + $0x98] sm:$0xf] }
  0x90   : > { %v1352_v58 = vsel %vm11166_vm4, %v1347_v50, %v1351_v41  ;;  %v1359_v60 = vrot.slane %v1357_v53, 5  ;;  %v1555_v42 = vsel %vm532_vm0, %v11408_v61, 0  ;;  %v2943_v2 = vor.u32 %v2942_v56, %v2939_v45  ;;  %v10893_v41 = vld [vmem:[%s11131_s12 + $0xb8] ss:$8 sps:$4 sm:$0xff]   ;;  %v8635_v45 = vld [vmem:[%s11131_s12 + $0x9c] sm:$0x1] }
  0x91   : > { %v8610_v1 = vcombine.low %v1338_v25, %v1352_v58  ;;  %v2948_v3 = vrot.slane %v2946_v47, 5  ;;  %v1370_v5 = vrot.slane %v1368_v62, 4  ;;  %v1371_v6 = vshll.u32 %v8602_v43, 16  ;;  %v8637_v50 = vld [vmem:[%s11131_s12 + $0xa4] sm:$0x1] }
  0x92   : > { %v1360_v4 = vor.u32 %v1359_v60, %v1356_v59  ;;  %v1377_v7 = vshll.u32 %v8603_v49, 16  ;;  %v2935_v10 = vsel %vm11166_vm4, %v2930_v55, %v2934_v34  ;;  %v2944_v11 = vrot.slane %v2943_v2, 4  ;;  %v8636_v49 = vld [vmem:[%s11131_s12 + $0xa0] sm:$0xf]  ;;  %v8639_v2 = vld [vmem:[%s11131_s12 + $0xac] sm:$0x1] }
  0x93   : > { %9928 = vmatmul.mubr.msk.bf16.vlgmr.msra.gmra.mrb[0].mxu0 %vm519_vm1, %v8610_v1  ;;  %v1382_v61 = vshrl.u32 %v8604_v54, 16  ;;  %v1385_v48 = vshll.u32 %v8604_v54, 16  ;;  %v1365_v13 = vrot.slane %v1363_v57, 5  ;;  %v1373_v14 = vrot.slane %v1371_v6, 5  ;;  %v10892_v52 = vld [vmem:[%s11131_s12 + $0xe0] ss:$8 sps:$4 sm:$0xff]  }
  0x94   : > { %9936 = vmatpush3.bf16.msra.mxu0 %v1555_v42  ;;  %v1361_v12 = vrot.slane %v1360_v4, 4  ;;  %v1396_v15 = vshrl.u32 %v8606_v0, 16  ;;  %v2949_v16 = vsel %vm11166_vm4, %v2944_v11, %v2948_v3  ;;  %v1391_v20 = vshll.u32 %v8605_v63, 16  ;;  %v8638_v42 = vld [vmem:[%s11131_s12 + $0xa8] sm:$0xf] }
  0x95   : > { %v1384_v18 = vrot.slane %v1382_v61, 4  ;;  %v1387_v19 = vrot.slane %v1385_v48, 5  ;;  %10794 = vmatprep.subr.msk.bf16.mxu0 %vm532_vm0, %v11480_v9  ;;  %v8804_v21 = vcombine.low %v2935_v10, %v2949_v16  ;;  %v1374_v22 = vor.u32 %v1373_v14, %v1370_v5  ;;  %v10895_v3 = vld [vmem:[%s11131_s12 + $0xc8] ss:$8 sps:$4 sm:$0xff]   ;;  %v8675_v5 = vld [vmem:[%s12935_s1 + $0x20] sm:$0xf] }
  0x96   : > { %v1379_v23 = vrot.slane %v1377_v7, 5  ;;  %v1398_v27 = vrot.slane %v1396_v15, 4  ;;  %v1399_v28 = vshll.u32 %v8606_v0, 16  ;;  %v1405_v29 = vshll.u32 %v8607_v8, 16  ;;  %v8640_v6 = vld [vmem:[%s11131_s12 + $0xb0] sm:$0xf] }
  0x97   : > { %v1388_v26 = vor.u32 %v1387_v19, %v1384_v18  ;;  %10022 = vmatmul.mubr.msk.bf16.gmra.mrb[4].mxu1 %vm519_vm1, %v8804_v21  ;;  %v1366_v31 = vsel %vm11166_vm4, %v1361_v12, %v1365_v13  ;;  %v1375_v32 = vrot.slane %v1374_v22, 4  ;;  %v1393_v35 = vrot.slane %v1391_v20, 5  ;;  %v8641_v7 = vld [vmem:[%s11131_s12 + $0xb4] sm:$0x1]  ;;  %v10894_v13 = vld [vmem:[%s11131_s12 + $0xf0] ss:$8 sps:$4 sm:$0xff]  }
  0x98   : > { %10027 = vmatprep.mubr.msk.bf16.mxu1 %vm519_vm1, %v10890_v17  ;;  %v1401_v36 = vrot.slane %v1399_v28, 5  ;;  %v1407_v40 = vrot.slane %v1405_v29, 5  ;;  %v3210_v43 = vsel %vm532_vm0, %v8834_v24, 0  ;;  %v1648_v51 = vshrl.u32 %v8634_v44, 16  ;;  %v10896_v19 = vld [vmem:[%s11131_s12 + $0x100] ss:$8 sps:$4 sm:$0xff]  }
  0x99   : > { %v1389_v33 = vrot.slane %v1388_v26, 4  ;;  %v1380_v37 = vsel %vm11166_vm4, %v1375_v32, %v1379_v23  ;;  %v1651_v53 = vshll.u32 %v8634_v44, 16  ;;  %v1657_v54 = vshll.u32 %v8635_v45, 16  ;;  %v10897_v20 = vld [vmem:[%s11131_s12 + $0xe0] ss:$8 sps:$4 sm:$0xff]  }
  0x9a   : > { %v8611_v39 = vcombine.low %v1366_v31, %v1380_v37  ;;  %v1402_v25 = vor.u32 %v1401_v36, %v1398_v27  ;;  %v1662_v55 = vshrl.u32 %v8636_v49, 16  ;;  %v1665_v34 = vshll.u32 %v8636_v49, 16  ;;  %v8859_v29 = vld [vmem:[%s12935_s1 + $0x20] sm:$0xf] }
  0x9b   : > { %v1394_v46 = vsel %vm11166_vm4, %v1389_v33, %v1393_v35  ;;  %v1650_v57 = vrot.slane %v1648_v51, 4  ;;  %v1671_v58 = vshll.u32 %v8637_v50, 16  ;;  %v1653_v60 = vrot.slane %v1651_v53, 5  ;;  %v8643_v35 = vld [vmem:[%s11131_s12 + $0xbc] sm:$0x1] }
  0x9c   : > { %9931 = vmatprep.mubr.msk.bf16.mxu0 %vm519_vm1, %v8611_v39  ;;  %v1403_v47 = vrot.slane %v1402_v25, 4  ;;  %v11514_v62 = vrot.slane %v1657_v54, 5  ;;  %v1664_v63 = vrot.slane %v1662_v55, 4  ;;  %v1667_v0 = vrot.slane %v1665_v34, 5  ;;  %v8644_v36 = vld [vmem:[%s11131_s12 + $0xc0] sm:$0xf] }
  0x9d   : > { %v1673_v1 = vrot.slane %v1671_v58, 5  ;;  %v1654_v4 = vor.u32 %v1653_v60, %v1650_v57  ;;  %v1676_v8 = vshrl.u32 %v8638_v42, 16  ;;  %v1679_v10 = vshll.u32 %v8638_v42, 16  ;;  %v8645_v25 = vld [vmem:[%s11131_s12 + $0xc4] sm:$0x1] }
  0x9e   : > { %v1408_v56 = vsel %vm11166_vm4, %v1403_v47, %v1407_v40  ;;  %v1668_v11 = vor.u32 %v1667_v0, %v1664_v63  ;;  %v1685_v61 = vshll.u32 %v8639_v2, 16  ;;  %v1690_v48 = vshrl.u32 %v8640_v6, 16  ;;  %v8843_v47 = vld [vmem:[%s11131_s12 + $0x98] sm:$0xf]  ;;  %v8844_v53 = vld [vmem:[%s11131_s12 + $0x9c] sm:$0x1] }
  0x9f   : > { %v8612_v59 = vcombine.low %v1394_v46, %v1408_v56  ;;  %10028 = vmatmul.mubr.msk.bf16.vlgmr.msra.gmra.mrb[0].mxu1 %vm519_vm1, %v10891_v38  ;;  %v1693_v12 = vshll.u32 %v8640_v6, 16  ;;  %v1655_v14 = vrot.slane %v1654_v4, 4  ;;  %v1678_v15 = vrot.slane %v1676_v8, 4  ;;  %v8845_v57 = vld [vmem:[%s11131_s12 + $0xa0] sm:$0xf] }
  0xa0   : > { %10031 = vmatprep.mubr.msk.bf16.mxu1 %vm519_vm1, %v10893_v41  ;;  %10036 = vmatpush3.bf16.msra.mxu1 %v3210_v43  ;;  %v1681_v16 = vrot.slane %v1679_v10, 5  ;;  %v1699_v17 = vshll.u32 %v8641_v7, 16  ;;  %v1786_v18 = vsel %vm532_vm0, %v11480_v9, 0  ;;  %v1669_v21 = vrot.slane %v1668_v11, 4  ;;  %v8642_v9 = vld [vmem:[%s11131_s12 + $0xb8] sm:$0xf] }
  0xa1   : > { %9932 = vmatmul.mubr.msk.bf16.gmra.mrb[4].mxu0 %vm519_vm1, %v8612_v59  ;;  %v1692_v22 = vrot.slane %v1690_v48, 4  ;;  %v1695_v23 = vrot.slane %v1693_v12, 5  ;;  %v1660_v24 = vsel %vm11166_vm4, %v1655_v14, %v11514_v62  ;;  %v1687_v27 = vrot.slane %v1685_v61, 5  ;;  %10804 = vmatprep.subr.msk.bf16.mxu1 %vm532_vm0, %v8859_v29  ;;  %v8846_v58 = vld [vmem:[%s11131_s12 + $0xa4] sm:$0x1] }
  0xa2   : > { %9937 = vmatprep.mubr.msk.bf16.mxu0 %vm519_vm1, %v10892_v52  ;;  %v1682_v26 = vor.u32 %v1681_v16, %v1678_v15  ;;  %v1701_v28 = vrot.slane %v1699_v17, 5  ;;  %v1674_v31 = vsel %vm11166_vm4, %v1669_v21, %v1673_v1  ;;  %v11542_v33 = vsel %vm532_vm0, %v8675_v5, 0  ;;  %v10898_v59 = vld [vmem:[%s11131_s12 + $0x110] ss:$8 sps:$4 sm:$0xff]   ;;  %v10900_v62 = vld [vmem:[%s11131_s12 + $0x100] ss:$8 sps:$4 sm:$0xff]  }
  0xa3   : > { %v1696_v32 = vor.u32 %v1695_v23, %v1692_v22  ;;  %v1704_v37 = vshrl.u32 %v8642_v9, 16  ;;  %v3439_v39 = vsel %vm532_vm0, %v8859_v29, 0  ;;  %v1707_v40 = vshll.u32 %v8642_v9, 16  ;;  %v10899_v60 = vld [vmem:[%s11131_s12 + $0xf0] ss:$8 sps:$4 sm:$0xff]  }
  0xa4   : > { %v1683_v38 = vrot.slane %v1682_v26, 4  ;;  %v1713_v41 = vshll.u32 %v8643_v35, 16  ;;  %v1718_v45 = vshrl.u32 %v8644_v36, 16  ;;  %v1721_v46 = vshll.u32 %v8644_v36, 16  ;;  %v8646_v7 = vld [vmem:[%s11131_s12 + $0xc8] sm:$0xf] }
  0xa5   : > { %v1697_v43 = vrot.slane %v1696_v32, 4  ;;  %v1706_v44 = vrot.slane %v1704_v37, 4  ;;  %v1709_v50 = vrot.slane %v1707_v40, 5  ;;  %v1727_v52 = vshll.u32 %v8645_v25, 16  ;;  %v8647_v48 = vld [vmem:[%s11131_s12 + $0xcc] sm:$0x1] }
  0xa6   : > { %v1688_v49 = vsel %vm11166_vm4, %v1683_v38, %v1687_v27  ;;  %v1715_v51 = vrot.slane %v1713_v41, 5  ;;  %v8651_v54 = vcombine.low %v1660_v24, %v1674_v31  ;;  %v1720_v34 = vrot.slane %v1718_v45, 4  ;;  %v8648_v15 = vld [vmem:[%s11131_s12 + $0xd0] sm:$0xf]  ;;  %v8649_v22 = vld [vmem:[%s11131_s12 + $0xd4] sm:$0x1] }
  0xa7   : > { %10032 = vmatmul.mubr.msk.bf16.gmra.mrb[4].mxu1 %vm519_vm1, %v10895_v3  ;;  %v1702_v55 = vsel %vm11166_vm4, %v1697_v43, %v1701_v28  ;;  %v1723_v56 = vrot.slane %v1721_v46, 5  ;;  %v1710_v0 = vor.u32 %v1709_v50, %v1706_v44  ;;  %v1729_v1 = vrot.slane %v1727_v52, 5  ;;  %v8847_v26 = vld [vmem:[%s11131_s12 + $0xa8] sm:$0xf]  ;;  %v8848_v37 = vld [vmem:[%s11131_s12 + $0xac] sm:$0x1] }
  0xa8   : > { %10037 = vmatprep.mubr.msk.bf16.mxu1 %vm519_vm1, %v10897_v20  ;;  %v11565_v63 = vcombine.low %v1688_v49, %v1702_v55  ;;  %v3302_v42 = vshrl.u32 %v8843_v47, 16  ;;  %v3305_v3 = vshll.u32 %v8843_v47, 16  ;;  %v3311_v4 = vshll.u32 %v8844_v53, 16  ;;  %v10901_v38 = vld [vmem:[%s11131_s12 + $0x110] ss:$8 sps:$4 sm:$0xff]  }
  0xa9   : > { %9938 = vmatmul.mubr.msk.bf16.vlgmr.msra.gmra.mrb[0].mxu0 %vm519_vm1, %v10894_v13  ;;  %v1724_v2 = vor.u32 %v1723_v56, %v1720_v34  ;;  %v3316_v6 = vshrl.u32 %v8845_v57, 16  ;;  %v1711_v8 = vrot.slane %v1710_v0, 4  ;;  %v3319_v11 = vshll.u32 %v8845_v57, 16  ;;  %v8849_v46 = vld [vmem:[%s11131_s12 + $0xb0] sm:$0xf] }
  0xaa   : > { %9946 = vmatpush3.bf16.msra.mxu0 %v1786_v18  ;;  %9941 = vmatprep.mubr.msk.bf16.mxu0 %vm519_vm1, %v10896_v19  ;;  %v3304_v10 = vrot.slane %v3302_v42, 4  ;;  %v3325_v61 = vshll.u32 %v8846_v58, 16  ;;  %v3313_v13 = vrot.slane %v3311_v4, 5  ;;  %v1732_v19 = vshrl.u32 %v8646_v7, 16  ;;  %v8850_v47 = vld [vmem:[%s11131_s12 + $0xb4] sm:$0x1] }
  0xab   : > { %10795 = vmatprep.subr.msk.bf16.mxu0 %vm532_vm0, %v8675_v5  ;;  %v1725_v12 = vrot.slane %v1724_v2, 4  ;;  %v3307_v5 = vrot.slane %v3305_v3, 5  ;;  %v3318_v14 = vrot.slane %v3316_v6, 4  ;;  %v1716_v16 = vsel %vm11166_vm4, %v1711_v8, %v1715_v51  ;;  %v8660_v0 = vld [vmem:[%s11131_s12 + $0xe4] sm:$0x1] }
  0xac   : > { %v3321_v17 = vrot.slane %v3319_v11, 5  ;;  %v3327_v18 = vrot.slane %v3325_v61, 5  ;;  %v1735_v23 = vshll.u32 %v8646_v7, 16  ;;  %v1741_v24 = vshll.u32 %v8647_v48, 16  ;;  %v8661_v3 = vld [vmem:[%s11131_s12 + $0xe8] sm:$0xf] }
  0xad   : > { %v1730_v20 = vsel %vm11166_vm4, %v1725_v12, %v1729_v1  ;;  %v3308_v21 = vor.u32 %v3307_v5, %v3304_v10  ;;  %v1734_v29 = vrot.slane %v1732_v19, 4  ;;  %v1746_v9 = vshrl.u32 %v8648_v15, 16  ;;  %v11598_v6 = vld [vmem:[%s12935_s1 + $0x4] sm:$0xf]  ;;  %v8662_v11 = vld [vmem:[%s11131_s12 + $0xec] sm:$0x1] }
  0xae   : > { %v8653_v27 = vcombine.low %v1716_v16, %v1730_v20  ;;  %v3322_v28 = vor.u32 %v3321_v17, %v3318_v14  ;;  %v1737_v32 = vrot.slane %v1735_v23, 5  ;;  %v1743_v35 = vrot.slane %v1741_v24, 5  ;;  %v8851_v14 = vld [vmem:[%s11131_s12 + $0xb8] sm:$0xf] }
  0xaf   : > { %10038 = vmatmul.mubr.msk.bf16.vlgmr.msra.gmra.mrb[0].mxu1 %vm519_vm1, %v10899_v60  ;;  %v3309_v31 = vrot.slane %v3308_v21, 4  ;;  %v1749_v36 = vshll.u32 %v8648_v15, 16  ;;  %v1748_v25 = vrot.slane %v1746_v9, 4  ;;  %v1755_v40 = vshll.u32 %v8649_v22, 16  ;;  %v8853_v22 = vld [vmem:[%s11131_s12 + $0xc0] sm:$0xf] }
  0xb0   : > { %10041 = vmatprep.mubr.msk.bf16.mxu1 %vm519_vm1, %v10900_v62  ;;  %10046 = vmatpush3.bf16.msra.mxu1 %v3439_v39  ;;  %v3323_v39 = vrot.slane %v3322_v28, 4  ;;  %v3330_v41 = vshrl.u32 %v8847_v26, 16  ;;  %v1738_v44 = vor.u32 %v1737_v32, %v1734_v29  ;;  %v3333_v49 = vshll.u32 %v8847_v26, 16  ;;  %v11617_v28 = vld [vmem:[%s12935_s1 + $0x4] sm:$0xf] }
  0xb1   : > { %9942 = vmatmul.mubr.msk.bf16.gmra.mrb[4].mxu0 %vm519_vm1, %v10898_v59  ;;  %v3314_v43 = vsel %vm11166_vm4, %v3309_v31, %v3313_v13  ;;  %v1751_v45 = vrot.slane %v1749_v36, 5  ;;  %v1757_v51 = vrot.slane %v1755_v40, 5  ;;  %v3339_v53 = vshll.u32 %v8848_v37, 16  ;;  %v8854_v31 = vld [vmem:[%s11131_s12 + $0xc4] sm:$0x1]  ;;  %10814 = vmatprep.subr.msk.bf16.mxu1 %vm532_vm0, %v11617_v28 }
  0xb2   : > { %9947 = vmatprep.mubr.msk.bf16.mxu0 %vm519_vm1, %v8651_v54  ;;  %v3328_v50 = vsel %vm11166_vm4, %v3323_v39, %v3327_v18  ;;  %v3332_v52 = vrot.slane %v3330_v41, 4  ;;  %v8659_v54 = vld [vmem:[%s11131_s12 + $0xe0] sm:$0xf]  ;;  %v1739_v34 = vrot.slane %v1738_v44, 4  ;;  %v3335_v57 = vrot.slane %v3333_v49, 5 }
  0xb3   : > { %v8860_v55 = vcombine.low %v3314_v43, %v3328_v50  ;;  %v1752_v56 = vor.u32 %v1751_v45, %v1748_v25  ;;  %v3341_v58 = vrot.slane %v3339_v53, 5  ;;  %v3344_v59 = vshrl.u32 %v8849_v46, 16  ;;  %v8852_v18 = vld [vmem:[%s11131_s12 + $0xbc] sm:$0x1]  ;;  %v8663_v25 = vld [vmem:[%s11131_s12 + $0xf0] sm:$0xf] }
  0xb4   : > { %v3347_v60 = vshll.u32 %v8849_v46, 16  ;;  %v3353_v62 = vshll.u32 %v8850_v47, 16  ;;  %v1744_v1 = vsel %vm11166_vm4, %v1739_v34, %v1743_v35  ;;  %v3336_v2 = vor.u32 %v3335_v57, %v3332_v52  ;;  %v8664_v45 = vld [vmem:[%s11131_s12 + $0xf4] sm:$0x1]  ;;  %v8665_v46 = vld [vmem:[%s11131_s12 + $0xf8] sm:$0xf] }
  0xb5   : > { %v1753_v42 = vrot.slane %v1752_v56, 4  ;;  %v1878_v4 = vshrl.u32 %v8659_v54, 16  ;;  %v3346_v7 = vrot.slane %v3344_v59, 4  ;;  %v1881_v61 = vshll.u32 %v8659_v54, 16  ;;  %v8666_v52 = vld [vmem:[%s11131_s12 + $0xfc] sm:$0x1] }
  0xb6   : > { %v3349_v8 = vrot.slane %v3347_v60, 5  ;;  %v3355_v10 = vrot.slane %v3353_v62, 5  ;;  %v3337_v12 = vrot.slane %v3336_v2, 4  ;;  %v1887_v13 = vshll.u32 %v8660_v0, 16  ;;  %v8855_v60 = vld [vmem:[%s11131_s12 + $0xc8] sm:$0xf] }
  0xb7   : > { %10042 = vmatmul.mubr.msk.bf16.gmra.mrb[4].mxu1 %vm519_vm1, %v10901_v38  ;;  %v1758_v48 = vsel %vm11166_vm4, %v1753_v42, %v1757_v51  ;;  %v1880_v5 = vrot.slane %v1878_v4, 4  ;;  %v1883_v16 = vrot.slane %v1881_v61, 5  ;;  %v1892_v17 = vshrl.u32 %v8661_v3, 16  ;;  %v8856_v2 = vld [vmem:[%s11131_s12 + $0xcc] sm:$0x1] }
  0xb8   : > { %10047 = vmatprep.mubr.msk.bf16.mxu1 %vm519_vm1, %v8860_v55  ;;  %v8654_v15 = vcombine.low %v1744_v1, %v1758_v48  ;;  %v1889_v19 = vrot.slane %v1887_v13, 5  ;;  %v1895_v20 = vshll.u32 %v8661_v3, 16  ;;  %v1901_v21 = vshll.u32 %v8662_v11, 16 }
  0xb9   : > { %9948 = vmatmul.mubr.msk.bf16.vlgmr.msra.gmra.mrb[0].mxu0 %vm519_vm1, %v11565_v63  ;;  %v3350_v63 = vor.u32 %v3349_v8, %v3346_v7  ;;  %v1884_v24 = vor.u32 %v1883_v16, %v1880_v5  ;;  %v1894_v26 = vrot.slane %v1892_v17, 4  ;;  %v3361_v32 = vshll.u32 %v8851_v14, 16 }
  0xba   : > { %9956 = vmatpush3.bf16.msra.mxu0 %v11542_v33  ;;  %9951 = vmatprep.mubr.msk.bf16.mxu0 %vm519_vm1, %v8653_v27  ;;  %v3342_v33 = vsel %vm11166_vm4, %v3337_v12, %v3341_v58  ;;  %v3358_v27 = vshrl.u32 %v8851_v14, 16  ;;  %v1897_v29 = vrot.slane %v1895_v20, 5  ;;  %v1903_v9 = vrot.slane %v1901_v21, 5 }
  0xbb   : > { %10805 = vmatprep.subr.msk.bf16.mxu0 %vm532_vm0, %v11598_v6  ;;  %v3351_v23 = vrot.slane %v3350_v63, 4  ;;  %v3367_v35 = vshll.u32 %v8852_v18, 16  ;;  %v1885_v37 = vrot.slane %v1884_v24, 4  ;;  %v3372_v39 = vshrl.u32 %v8853_v22, 16  ;;  %v8858_v18 = vld [vmem:[%s11131_s12 + $0xd4] sm:$0x1] }
  0xbc   : > { %v3360_v38 = vrot.slane %v3358_v27, 4  ;;  %v1898_v41 = vor.u32 %v1897_v29, %v1894_v26  ;;  %v3363_v43 = vrot.slane %v3361_v32, 5  ;;  %v3375_v50 = vshll.u32 %v8853_v22, 16 }
  0xbd   : > { %v3356_v36 = vsel %vm11166_vm4, %v3351_v23, %v3355_v10  ;;  %v3369_v44 = vrot.slane %v3367_v35, 5  ;;  %v1890_v47 = vsel %vm11166_vm4, %v1885_v37, %v1889_v19  ;;  %v3374_v49 = vrot.slane %v3372_v39, 4  ;;  %v8857_v10 = vld [vmem:[%s11131_s12 + $0xd0] sm:$0xf]  ;;  %v8667_v23 = vld [vmem:[%s11131_s12 + $0x100] sm:$0xf] }
  0xbe   : > { %v8861_v40 = vcombine.low %v3342_v33, %v3356_v36  ;;  %v3381_v51 = vshll.u32 %v8854_v31, 16  ;;  %v1899_v53 = vrot.slane %v1898_v41, 4  ;;  %v3364_v54 = vor.u32 %v3363_v43, %v3360_v38  ;;  %v8669_v31 = vld [vmem:[%s11131_s12 + $0x108] sm:$0xf]  ;;  %v8670_v38 = vld [vmem:[%s11131_s12 + $0x10c] sm:$0x1] }
  0xbf   : > { %v1906_v55 = vshrl.u32 %v8663_v25, 16  ;;  %v1909_v34 = vshll.u32 %v8663_v25, 16  ;;  %v3377_v56 = vrot.slane %v3375_v50, 5  ;;  %v1915_v58 = vshll.u32 %v8664_v45, 16  ;;  %v8671_v43 = vld [vmem:[%s11131_s12 + $0x110] sm:$0xf] }
  0xc0   : > { %10048 = vmatmul.mubr.msk.bf16.vlgmr.msra.gmra.mrb[0].mxu1 %vm519_vm1, %v8861_v40  ;;  %v3383_v57 = vrot.slane %v3381_v51, 5  ;;  %v1920_v59 = vshrl.u32 %v8665_v46, 16  ;;  %v1904_v62 = vsel %vm11166_vm4, %v1899_v53, %v1903_v9  ;;  %v3365_v0 = vrot.slane %v3364_v54, 4  ;;  %v8668_v9 = vld [vmem:[%s11131_s12 + $0x104] sm:$0x1] }
  0xc1   : > { %9952 = vmatmul.mubr.msk.bf16.gmra.mrb[4].mxu0 %vm519_vm1, %v8654_v15  ;;  %v1908_v1 = vrot.slane %v1906_v55, 4  ;;  %v1911_v42 = vrot.slane %v1909_v34, 5  ;;  %v8676_v3 = vcombine.low %v1890_v47, %v1904_v62  ;;  %v3378_v4 = vor.u32 %v3377_v56, %v3374_v49  ;;  %v8673_v34 = vld [vmem:[%s11131_s12 + $0x118] sm:$0xf]  ;;  %v3574_v62 = vld [vmem:[%s11131_s12] sm:$0xf] }
  0xc2   : > { %v1917_v7 = vrot.slane %v1915_v58, 5  ;;  %v1922_v8 = vrot.slane %v1920_v59, 4  ;;  %v3370_v11 = vsel %vm11166_vm4, %v3365_v0, %v3369_v44  ;;  %v1923_v48 = vshll.u32 %v8665_v46, 16  ;;  %v8672_v44 = vld [vmem:[%s11131_s12 + $0x114] sm:$0x1] }
  0xc3   : > { %v1912_v61 = vor.u32 %v1911_v42, %v1908_v1  ;;  %v1929_v12 = vshll.u32 %v8666_v52, 16  ;;  %9957 = vmatprep.mubr.msk.bf16.mxu0 %vm519_vm1, %v8676_v3  ;;  %v3379_v5 = vrot.slane %v3378_v4, 4  ;;  %v3386_v13 = vshrl.u32 %v8855_v60, 16  ;;  %v11666_v0 = vld [vmem:[%s12935_s1] sm:$0xf] }
  0xc4   : > { %v3389_v14 = vshll.u32 %v8855_v60, 16  ;;  %v3395_v15 = vshll.u32 %v8856_v2, 16  ;;  %v1925_v16 = vrot.slane %v1923_v48, 5  ;;  %v3400_v33 = vshrl.u32 %v8857_v10, 16  ;;  %v8674_v60 = vld [vmem:[%s11131_s12 + $0x11c] sm:$0x1] }
  0xc5   : > { %v1913_v63 = vrot.slane %v1912_v61, 4  ;;  %v1931_v17 = vrot.slane %v1929_v12, 5  ;;  %v3384_v19 = vsel %vm11166_vm4, %v3379_v5, %v3383_v57  ;;  %v3388_v20 = vrot.slane %v3386_v13, 4  ;;  %v10902_v42 = vld [vmem:[%s11131_s12 + $0x48] ss:$8 sps:$4 sm:$0xff]  }
  0xc6   : > { %v3391_v21 = vrot.slane %v3389_v14, 5  ;;  %v3397_v22 = vrot.slane %v3395_v15, 5  ;;  %v8862_v24 = vcombine.low %v3370_v11, %v3384_v19  ;;  %v1926_v27 = vor.u32 %v1925_v16, %v1922_v8  ;;  %v3576_v48 = vld [vmem:[%s11131_s12 + $0x8] sm:$0xf] }
  0xc7   : > { %v1918_v26 = vsel %vm11166_vm4, %v1913_v63, %v1917_v7  ;;  %v3402_v29 = vrot.slane %v3400_v33, 4  ;;  %v3403_v35 = vshll.u32 %v8857_v10, 16  ;;  %v3409_v36 = vshll.u32 %v8858_v18, 16  ;;  %v3575_v7 = vld [vmem:[%s11131_s12 + $0x4] sm:$0x1] }
  0xc8   : > { %v3392_v32 = vor.u32 %v3391_v21, %v3388_v20  ;;  %v3728_v37 = vsel %vm532_vm0, %v11598_v6, 0  ;;  %10051 = vmatprep.mubr.msk.bf16.mxu1 %vm519_vm1, %v8862_v24  ;;  %v1927_v39 = vrot.slane %v1926_v27, 4  ;;  %v5373_v25 = vsel %vm532_vm0, %v11617_v28, 0  ;;  %v3577_v20 = vld [vmem:[%s11131_s12 + $0xc] sm:$0x1] }
  0xc9   : > { %v1934_v40 = vshrl.u32 %v8667_v23, 16  ;;  %v1937_v41 = vshll.u32 %v8667_v23, 16  ;;  %v3405_v46 = vrot.slane %v3403_v35, 5  ;;  %v3411_v47 = vrot.slane %v3409_v36, 5  ;;  %10146 = vmatpush3.bf16.msra.mxu1 %v5373_v25  ;;  %v3579_v36 = vld [vmem:[%s11131_s12 + $0x14] sm:$0x1] }
  0xca   : > { %v3393_v45 = vrot.slane %v3392_v32, 4  ;;  %v1943_v49 = vshll.u32 %v8668_v9, 16  ;;  %v1932_v6 = vsel %vm11166_vm4, %v1927_v39, %v1931_v17  ;;  %v1948_v52 = vshrl.u32 %v8669_v31, 16 }
  0xcb   : > { %v1936_v50 = vrot.slane %v1934_v40, 4  ;;  %v1939_v51 = vrot.slane %v1937_v41, 5  ;;  %v8677_v28 = vcombine.low %v1918_v26, %v1932_v6  ;;  %v3406_v54 = vor.u32 %v3405_v46, %v3402_v29  ;;  %v3578_v29 = vld [vmem:[%s11131_s12 + $0x10] sm:$0xf]  ;;  %v3580_v40 = vld [vmem:[%s11131_s12 + $0x18] sm:$0xf] }
  0xcc   : > { %v3398_v53 = vsel %vm11166_vm4, %v3393_v45, %v3397_v22  ;;  %v1945_v55 = vrot.slane %v1943_v49, 5  ;;  %v1950_v57 = vrot.slane %v1948_v52, 4  ;;  %v1951_v58 = vshll.u32 %v8669_v31, 16  ;;  %v5330_v22 = vld [vmem:[%s12935_s1] sm:$0xf] }
  0xcd   : > { %v1940_v56 = vor.u32 %v1939_v51, %v1936_v50  ;;  %v1957_v59 = vshll.u32 %v8670_v38, 16  ;;  %9958 = vmatmul.mubr.msk.bf16.vlgmr.msra.gmra.mrb[0].mxu0 %vm519_vm1, %v8677_v28  ;;  %v3407_v1 = vrot.slane %v3406_v54, 4  ;;  %v1962_v2 = vshrl.u32 %v8671_v43, 16  ;;  %10815 = vmatprep.subr.msk.bf16.mxu1 %vm532_vm0, %v5330_v22  ;;  %v10903_v45 = vld [vmem:[%s11131_s12 + $0x58] ss:$8 sps:$4 sm:$0xff]  }
  0xce   : > { %v1965_v3 = vshll.u32 %v8671_v43, 16  ;;  %v1971_v4 = vshll.u32 %v8672_v44, 16  ;;  %10056 = vmatpush3.bf16.msra.mxu0 %v3728_v37  ;;  %v1953_v10 = vrot.slane %v1951_v58, 5  ;;  %v1976_v61 = vshrl.u32 %v8673_v34, 16  ;;  %v10904_v28 = vld [vmem:[%s11131_s12 + $0x68] ss:$8 sps:$4 sm:$0xff]  }
  0xcf   : > { %v1941_v8 = vrot.slane %v1940_v56, 4  ;;  %v1959_v11 = vrot.slane %v1957_v59, 5  ;;  %v3412_v12 = vsel %vm11166_vm4, %v3407_v1, %v3411_v47  ;;  %v1964_v5 = vrot.slane %v1962_v2, 4  ;;  %10806 = vmatprep.subr.msk.bf16.mxu0 %vm532_vm0, %v11666_v0  ;;  %v3582_v1 = vld [vmem:[%s11131_s12 + $0x20] sm:$0xf] }
  0xd0   : > { %v1967_v13 = vrot.slane %v1965_v3, 5  ;;  %v1973_v14 = vrot.slane %v1971_v4, 5  ;;  %v8863_v15 = vcombine.low %v3398_v53, %v3412_v12  ;;  %v1954_v16 = vor.u32 %v1953_v10, %v1950_v57  ;;  %v3585_v12 = vld [vmem:[%s11131_s12 + $0x2c] sm:$0x1] }
  0xd1   : > { %v1946_v63 = vsel %vm11166_vm4, %v1941_v8, %v1945_v55  ;;  %v1978_v17 = vrot.slane %v1976_v61, 4  ;;  %v1979_v33 = vshll.u32 %v8673_v34, 16  ;;  %v1985_v19 = vshll.u32 %v8674_v60, 16  ;;  %v3581_v34 = vld [vmem:[%s11131_s12 + $0x1c] sm:$0x1] }
  0xd2   : > { %v1968_v18 = vor.u32 %v1967_v13, %v1964_v5  ;;  %v3591_v21 = vshrl.u32 %v3574_v62, 16  ;;  %10052 = vmatmul.mubr.msk.bf16.gmra.mrb[4].mxu1 %vm519_vm1, %v8863_v15  ;;  %v1955_v23 = vrot.slane %v1954_v16, 4  ;;  %v3594_v24 = vshll.u32 %v3574_v62, 16  ;;  %v3584_v8 = vld [vmem:[%s11131_s12 + $0x28] sm:$0xf] }
  0xd3   : > { %v3600_v26 = vshll.u32 %v3575_v7, 16  ;;  %v3605_v27 = vshrl.u32 %v3576_v48, 16  ;;  %10147 = vmatprep.mubr.msk.bf16.mxu1 %vm519_vm1, %v10902_v42  ;;  %v1981_v31 = vrot.slane %v1979_v33, 5  ;;  %v1987_v32 = vrot.slane %v1985_v19, 5  ;;  %v3583_v42 = vld [vmem:[%s11131_s12 + $0x24] sm:$0x1] }
  0xd4   : > { %v1969_v9 = vrot.slane %v1968_v18, 4  ;;  %v3593_v35 = vrot.slane %v3591_v21, 4  ;;  %v1960_v37 = vsel %vm11166_vm4, %v1955_v23, %v1959_v11  ;;  %v3596_v38 = vrot.slane %v3594_v24, 5  ;;  %v3586_v5 = vld [vmem:[%s11131_s12 + $0x30] sm:$0xf] }
  0xd5   : > { %v3602_v39 = vrot.slane %v3600_v26, 5  ;;  %v3607_v25 = vrot.slane %v3605_v27, 4  ;;  %v8678_v41 = vcombine.low %v1946_v63, %v1960_v37  ;;  %v1982_v44 = vor.u32 %v1981_v31, %v1978_v17  ;;  %v10905_v15 = vld [vmem:[%s11131_s12 + $0x78] ss:$8 sps:$4 sm:$0xff]   ;;  %v3587_v17 = vld [vmem:[%s11131_s12 + $0x34] sm:$0x1] }
  0xd6   : > { %v1974_v43 = vsel %vm11166_vm4, %v1969_v9, %v1973_v14  ;;  %v3608_v46 = vshll.u32 %v3576_v48, 16  ;;  %v3597_v47 = vor.u32 %v3596_v38, %v3593_v35  ;;  %v3614_v49 = vshll.u32 %v3577_v20, 16  ;;  %v10906_v21 = vld [vmem:[%s11131_s12] ss:$8 sps:$4 sm:$0xff]   ;;  %v3588_v27 = vld [vmem:[%s11131_s12 + $0x38] sm:$0xf] }
  0xd7   : > { %v3619_v6 = vshrl.u32 %v3578_v29, 16  ;;  %v3622_v50 = vshll.u32 %v3578_v29, 16  ;;  %9961 = vmatprep.mubr.msk.bf16.mxu0 %vm519_vm1, %v8678_v41  ;;  %v1983_v51 = vrot.slane %v1982_v44, 4  ;;  %v3628_v53 = vshll.u32 %v3579_v36, 16  ;;  %v3589_v35 = vld [vmem:[%s11131_s12 + $0x3c] sm:$0x1] }
  0xd8   : > { %v3610_v52 = vrot.slane %v3608_v46, 5  ;;  %v3633_v54 = vshrl.u32 %v3580_v40, 16  ;;  %v3598_v55 = vrot.slane %v3597_v47, 4  ;;  %v3616_v60 = vrot.slane %v3614_v49, 5 }
  0xd9   : > { %v3621_v56 = vrot.slane %v3619_v6, 4  ;;  %v3624_v57 = vrot.slane %v3622_v50, 5  ;;  %v1988_v58 = vsel %vm11166_vm4, %v1983_v51, %v1987_v32  ;;  %v3630_v62 = vrot.slane %v3628_v53, 5 }
  0xda   : > { %v3611_v59 = vor.u32 %v3610_v52, %v3607_v25  ;;  %v8679_v2 = vcombine.low %v1974_v43, %v1988_v58  ;;  %10148 = vmatmul.mubr.msk.bf16.vlgmr.msra.gmra.mrb[8].mxu1 %vm519_vm1, %v10903_v45  ;;  %v3635_v4 = vrot.slane %v3633_v54, 4  ;;  %v3636_v7 = vshll.u32 %v3580_v40, 16 }
  0xdb   : > { %v3625_v3 = vor.u32 %v3624_v57, %v3621_v56  ;;  %v3603_v10 = vsel %vm11166_vm4, %v3598_v55, %v3602_v39  ;;  %10151 = vmatprep.mubr.msk.bf16.mxu1 %vm519_vm1, %v10904_v28  ;;  %v3642_v61 = vshll.u32 %v3581_v34, 16  ;;  %v5473_v48 = vsel %vm532_vm0, %v5330_v22, 0 }
  0xdc   : > { %v3612_v11 = vrot.slane %v3611_v59, 4  ;;  %9962 = vmatmul.mubr.msk.bf16.gmra.mrb[4].mxu0 %vm519_vm1, %v8679_v2  ;;  %v3638_v14 = vrot.slane %v3636_v7, 5  ;;  %10156 = vmatpush3.bf16.msra.mxu1 %v5473_v48  ;;  %v3647_v63 = vshrl.u32 %v3582_v1, 16  ;;  %v3650_v16 = vshll.u32 %v3582_v1, 16  ;;  %v10907_v59 = vld [vmem:[%s11131_s12 + $0x10] ss:$8 sps:$4 sm:$0xff]  }
  0xdd   : > { %v3626_v13 = vrot.slane %v3625_v3, 4  ;;  %v3644_v33 = vrot.slane %v3642_v61, 5  ;;  %v3656_v19 = vshll.u32 %v3583_v42, 16  ;;  %v3661_v20 = vshrl.u32 %v3584_v8, 16  ;;  %v9095_v1 = vld [vmem:[%s12935_s1 + $0x8] sm:$0xf] }
  0xde   : > { %v3617_v18 = vsel %vm11166_vm4, %v3612_v11, %v3616_v60  ;;  %v3639_v24 = vor.u32 %v3638_v14, %v3635_v4  ;;  %v3649_v26 = vrot.slane %v3647_v63, 4  ;;  %v3652_v29 = vrot.slane %v3650_v16, 5  ;;  %v10909_v60 = vld [vmem:[%s11131_s12 + $0x20] ss:$8 sps:$4 sm:$0xff]   ;;  %10816 = vmatprep.subr.msk.bf16.mxu1 %vm532_vm0, %v9095_v1  ;;  %v5543_v61 = vld [vmem:[%s11131_s12 + $0xc] sm:$0x1] }
  0xdf   : > { %v8887_v22 = vcombine.low %v3603_v10, %v3617_v18  ;;  %v3631_v23 = vsel %vm11166_vm4, %v3626_v13, %v3630_v62  ;;  %v3658_v9 = vrot.slane %v3656_v19, 5  ;;  %v3663_v31 = vrot.slane %v3661_v20, 4  ;;  %v5540_v7 = vld [vmem:[%s11131_s12] sm:$0xf]  ;;  %v5541_v10 = vld [vmem:[%s11131_s12 + $0x4] sm:$0x1] }
  0xe0   : > { %v3664_v32 = vshll.u32 %v3584_v8, 16  ;;  %v3640_v36 = vrot.slane %v3639_v24, 4  ;;  %v3670_v37 = vshll.u32 %v3585_v12, 16  ;;  %v3675_v38 = vshrl.u32 %v3586_v5, 16  ;;  %v5542_v11 = vld [vmem:[%s11131_s12 + $0x8] sm:$0xf] }
  0xe1   : > { %10057 = vmatprep.mubr.msk.bf16.mxu0 %vm519_vm1, %v8887_v22  ;;  %v3678_v39 = vshll.u32 %v3586_v5, 16  ;;  %v3653_v25 = vor.u32 %v3652_v29, %v3649_v26  ;;  %v3684_v41 = vshll.u32 %v3587_v17, 16  ;;  %v3689_v43 = vshrl.u32 %v3588_v27, 16  ;;  %v10908_v12 = vld [vmem:[%s11131_s12 + $0x48] ss:$8 sps:$4 sm:$0xff]  }
  0xe2   : > { %v3666_v40 = vrot.slane %v3664_v32, 5  ;;  %v3645_v44 = vsel %vm11166_vm4, %v3640_v36, %v3644_v33  ;;  %v3828_v45 = vsel %vm532_vm0, %v11666_v0, 0  ;;  %10152 = vmatmul.mubr.msk.bf16.gmra.mrb[12].mxu1 %vm519_vm1, %v10905_v15  ;;  %v3677_v46 = vrot.slane %v3675_v38, 4  ;;  %v8919_v0 = vld [vmem:[%s12935_s1 + $0x8] sm:$0xf] }
  0xe3   : > { %v3680_v47 = vrot.slane %v3678_v39, 5  ;;  %v8888_v49 = vcombine.low %v3631_v23, %v3645_v44  ;;  %v3654_v6 = vrot.slane %v3653_v25, 4  ;;  %v3672_v51 = vrot.slane %v3670_v37, 5  ;;  %10157 = vmatprep.mubr.msk.bf16.mxu1 %vm519_vm1, %v10906_v21  ;;  %v10911_v33 = vld [vmem:[%s11131_s12 + $0x30] ss:$8 sps:$4 sm:$0xff]  }
  0xe4   : > { %v3667_v50 = vor.u32 %v3666_v40, %v3663_v31  ;;  %v3691_v28 = vrot.slane %v3689_v43, 4  ;;  %v3692_v53 = vshll.u32 %v3588_v27, 16  ;;  %v3698_v54 = vshll.u32 %v3589_v35, 16  ;;  %v5544_v27 = vld [vmem:[%s11131_s12 + $0x10] sm:$0xf] }
  0xe5   : > { %v3681_v52 = vor.u32 %v3680_v47, %v3677_v46  ;;  %10058 = vmatmul.mubr.msk.bf16.vlgmr.msra.gmra.mrb[8].mxu0 %vm519_vm1, %v8888_v49  ;;  %v3659_v55 = vsel %vm11166_vm4, %v3654_v6, %v3658_v9  ;;  %v3686_v56 = vrot.slane %v3684_v41, 5  ;;  %v5694_v4 = vsel %vm532_vm0, %v9095_v1, 0  ;;  %v5545_v9 = vld [vmem:[%s11131_s12 + $0x14] sm:$0x1]  ;;  %v5546_v31 = vld [vmem:[%s11131_s12 + $0x18] sm:$0xf] }
  0xe6   : > { %v3668_v34 = vrot.slane %v3667_v50, 4  ;;  %10066 = vmatpush3.bf16.msra.mxu0 %v3828_v45  ;;  %v3694_v58 = vrot.slane %v3692_v53, 5  ;;  %v3700_v3 = vrot.slane %v3698_v54, 5  ;;  %v5557_v5 = vshrl.u32 %v5540_v7, 16  ;;  %v5547_v32 = vld [vmem:[%s11131_s12 + $0x1c] sm:$0x1] }
  0xe7   : > { %v3682_v57 = vrot.slane %v3681_v52, 4  ;;  %10807 = vmatprep.subr.msk.bf16.mxu0 %vm532_vm0, %v8919_v0  ;;  %v5560_v13 = vshll.u32 %v5540_v7, 16  ;;  %v5566_v14 = vshll.u32 %v5541_v10, 16  ;;  %v11752_v15 = vsel %vm532_vm0, %v8919_v0, 0  ;;  %v8903_v39 = vld [vmem:[%s11131_s12 + $0x48] sm:$0xf] }
  0xe8   : > { %v3673_v62 = vsel %vm11166_vm4, %v3668_v34, %v3672_v51  ;;  %v3695_v2 = vor.u32 %v3694_v58, %v3691_v28  ;;  %v5571_v63 = vshrl.u32 %v5542_v11, 16  ;;  %v5574_v16 = vshll.u32 %v5542_v11, 16  ;;  %v8904_v44 = vld [vmem:[%s11131_s12 + $0x4c] sm:$0x1]  ;;  %v8905_v6 = vld [vmem:[%s11131_s12 + $0x50] sm:$0xf] }
  0xe9   : > { %v8889_v42 = vcombine.low %v3659_v55, %v3673_v62  ;;  %v3687_v8 = vsel %vm11166_vm4, %v3682_v57, %v3686_v56  ;;  %v5580_v17 = vshll.u32 %v5543_v61, 16  ;;  %v5559_v19 = vrot.slane %v5557_v5, 4  ;;  %v10910_v53 = vld [vmem:[%s11131_s12 + $0x58] ss:$8 sps:$4 sm:$0xff]   ;;  %v8906_v55 = vld [vmem:[%s11131_s12 + $0x54] sm:$0x1] }
  0xea   : > { %v3696_v48 = vrot.slane %v3695_v2, 4  ;;  %10158 = vmatmul.mubr.msk.bf16.vlgmr.msra.gmra.mrb[8].mxu1 %vm519_vm1, %v10907_v59  ;;  %v5562_v20 = vrot.slane %v5560_v13, 5  ;;  %v5568_v21 = vrot.slane %v5566_v14, 5  ;;  %v5573_v23 = vrot.slane %v5571_v63, 4  ;;  %v10912_v57 = vld [vmem:[%s11131_s12 + $0x68] ss:$8 sps:$4 sm:$0xff]  }
  0xeb   : > { %10061 = vmatprep.mubr.msk.bf16.mxu0 %vm519_vm1, %v8889_v42  ;;  %10161 = vmatprep.mubr.msk.bf16.mxu1 %vm519_vm1, %v10909_v60  ;;  %v5576_v24 = vrot.slane %v5574_v16, 5  ;;  %v5582_v26 = vrot.slane %v5580_v17, 5  ;;  %v5585_v36 = vshrl.u32 %v5544_v27, 16  ;;  %v5588_v37 = vshll.u32 %v5544_v27, 16  ;;  %v5548_v1 = vld [vmem:[%s11131_s12 + $0x20] sm:$0xf] }
  0xec   : > { %10166 = vmatpush3.bf16.msra.mxu1 %v5694_v4  ;;  %v3701_v18 = vsel %vm11166_vm4, %v3696_v48, %v3700_v3  ;;  %v5563_v29 = vor.u32 %v5562_v20, %v5559_v19  ;;  %v5594_v38 = vshll.u32 %v5545_v9, 16  ;;  %v5599_v40 = vshrl.u32 %v5546_v31, 16  ;;  %v5549_v7 = vld [vmem:[%s11131_s12 + $0x24] sm:$0x1]  ;;  %v8936_v48 = vld [vmem:[%s12935_s1 + $0xc] sm:$0xf] }
  0xed   : > { %v8890_v22 = vcombine.low %v3687_v8, %v3701_v18  ;;  %v5577_v35 = vor.u32 %v5576_v24, %v5573_v23  ;;  %v5602_v41 = vshll.u32 %v5546_v31, 16  ;;  %v5608_v43 = vshll.u32 %v5547_v32, 16  ;;  %v5550_v14 = vld [vmem:[%s11131_s12 + $0x28] sm:$0xf]  ;;  %v5551_v63 = vld [vmem:[%s11131_s12 + $0x2c] sm:$0x1] }
  0xee   : > { %v5564_v25 = vrot.slane %v5563_v29, 4  ;;  %v5587_v46 = vrot.slane %v5585_v36, 4  ;;  %v5590_v47 = vrot.slane %v5588_v37, 5  ;;  %v5596_v49 = vrot.slane %v5594_v38, 5  ;;  %v8907_v20 = vld [vmem:[%s11131_s12 + $0x58] sm:$0xf] }
  0xef   : > { %10062 = vmatmul.mubr.msk.bf16.gmra.mrb[12].mxu0 %vm519_vm1, %v8890_v22  ;;  %v5578_v45 = vrot.slane %v5577_v35, 4  ;;  %v5601_v51 = vrot.slane %v5599_v40, 4  ;;  %v5604_v52 = vrot.slane %v5602_v41, 5  ;;  %v5610_v28 = vrot.slane %v5608_v43, 5  ;;  %v8908_v27 = vld [vmem:[%s11131_s12 + $0x5c] sm:$0x1] }
  0xf0   : > { %10067 = vmatprep.mubr.msk.bf16.mxu0 %vm519_vm1, %v10908_v12  ;;  %v5569_v50 = vsel %vm11166_vm4, %v5564_v25, %v5568_v21  ;;  %v5591_v0 = vor.u32 %v5590_v47, %v5587_v46  ;;  %v3912_v34 = vshrl.u32 %v8903_v39, 16  ;;  %v3915_v56 = vshll.u32 %v8903_v39, 16  ;;  %v10913_v21 = vld [vmem:[%s11131_s12 + $0x78] ss:$8 sps:$4 sm:$0xff]   ;;  %v8910_v38 = vld [vmem:[%s11131_s12 + $0x64] sm:$0x1] }
  0xf1   : > { %v5583_v54 = vsel %vm11166_vm4, %v5578_v45, %v5582_v26  ;;  %v5605_v59 = vor.u32 %v5604_v52, %v5601_v51  ;;  %v3921_v60 = vshll.u32 %v8904_v44, 16  ;;  %v3926_v62 = vshrl.u32 %v8905_v6, 16  ;;  %v8909_v32 = vld [vmem:[%s11131_s12 + $0x60] sm:$0xf]  ;;  %v9112_v44 = vld [vmem:[%s12935_s1 + $0xc] sm:$0xf] }
  0xf2   : > { %10162 = vmatmul.mubr.msk.bf16.gmra.mrb[12].mxu1 %vm519_vm1, %v10911_v33  ;;  %v9096_v58 = vcombine.low %v5569_v50, %v5583_v54  ;;  %v5592_v42 = vrot.slane %v5591_v0, 4  ;;  %v3914_v2 = vrot.slane %v3912_v34, 4  ;;  %v3917_v3 = vrot.slane %v3915_v56, 5  ;;  %10817 = vmatprep.subr.msk.bf16.mxu1 %vm532_vm0, %v9112_v44  ;;  %v5554_v56 = vld [vmem:[%s11131_s12 + $0x38] sm:$0xf] }
  0xf3   : > { %v3929_v4 = vshll.u32 %v8905_v6, 16  ;;  %v5606_v8 = vrot.slane %v5605_v59, 4  ;;  %v3923_v10 = vrot.slane %v3921_v60, 5  ;;  %v3928_v11 = vrot.slane %v3926_v62, 4 }
  0xf4   : > { %10167 = vmatprep.mubr.msk.bf16.mxu1 %vm519_vm1, %v9096_v58  ;;  %v3935_v61 = vshll.u32 %v8906_v55, 16  ;;  %v5597_v12 = vsel %vm11166_vm4, %v5592_v42, %v5596_v49  ;;  %v3918_v5 = vor.u32 %v3917_v3, %v3914_v2  ;;  %v5613_v16 = vshrl.u32 %v5548_v1, 16 }
  0xf5   : > { %v3931_v13 = vrot.slane %v3929_v4, 5  ;;  %v5611_v17 = vsel %vm11166_vm4, %v5606_v8, %v5610_v28  ;;  %v5616_v33 = vshll.u32 %v5548_v1, 16  ;;  %v5622_v19 = vshll.u32 %v5549_v7, 16  ;;  %v5552_v28 = vld [vmem:[%s11131_s12 + $0x30] sm:$0xf] }
  0xf6   : > { %v3937_v18 = vrot.slane %v3935_v61, 5  ;;  %v9097_v22 = vcombine.low %v5597_v12, %v5611_v17  ;;  %v3919_v23 = vrot.slane %v3918_v5, 4  ;;  %v5615_v26 = vrot.slane %v5613_v16, 4  ;;  %v5555_v7 = vld [vmem:[%s11131_s12 + $0x3c] sm:$0x1] }
  0xf7   : > { %10068 = vmatmul.mubr.msk.bf16.vlgmr.msra.gmra.mrb[8].mxu0 %vm519_vm1, %v10910_v53  ;;  %v3932_v24 = vor.u32 %v3931_v13, %v3928_v11  ;;  %v5624_v29 = vrot.slane %v5622_v19, 5  ;;  %v5627_v9 = vshrl.u32 %v5550_v14, 16  ;;  %v5630_v31 = vshll.u32 %v5550_v14, 16  ;;  %v5553_v53 = vld [vmem:[%s11131_s12 + $0x34] sm:$0x1] }
  0xf8   : > { %10076 = vmatpush3.bf16.msra.mxu0 %v11752_v15  ;;  %10071 = vmatprep.mubr.msk.bf16.mxu0 %vm519_vm1, %v10912_v57  ;;  %v5618_v15 = vrot.slane %v5616_v33, 5  ;;  %v3924_v35 = vsel %vm11166_vm4, %v3919_v23, %v3923_v10  ;;  %v5636_v37 = vshll.u32 %v5551_v63, 16  ;;  %v3940_v39 = vshrl.u32 %v8907_v20, 16  ;;  %v8911_v13 = vld [vmem:[%s11131_s12 + $0x68] sm:$0xf] }
  0xf9   : > { %10808 = vmatprep.subr.msk.bf16.mxu0 %vm532_vm0, %v8936_v48  ;;  %v3933_v36 = vrot.slane %v3932_v24, 4  ;;  %v5629_v40 = vrot.slane %v5627_v9, 4  ;;  %v5632_v41 = vrot.slane %v5630_v31, 5  ;;  %v3943_v43 = vshll.u32 %v8907_v20, 16  ;;  %v8915_v23 = vld [vmem:[%s11131_s12 + $0x78] sm:$0xf] }
  0xfa   : > { %10168 = vmatmul.mubr.msk.bf16.vlgmr.msra.gmra.mrb[8].mxu1 %vm519_vm1, %v9097_v22  ;;  %v5619_v25 = vor.u32 %v5618_v15, %v5615_v26  ;;  %v5638_v46 = vrot.slane %v5636_v37, 5  ;;  %v3942_v47 = vrot.slane %v3940_v39, 4  ;;  %v3949_v49 = vshll.u32 %v8908_v27, 16  ;;  %v8914_v22 = vld [vmem:[%s11131_s12 + $0x74] sm:$0x1] }
  0xfb   : > { %v3938_v45 = vsel %vm11166_vm4, %v3933_v36, %v3937_v18  ;;  %v5633_v51 = vor.u32 %v5632_v41, %v5629_v40  ;;  %v3945_v52 = vrot.slane %v3943_v43, 5  ;;  %v3954_v0 = vshrl.u32 %v8909_v32, 16  ;;  %v8913_v18 = vld [vmem:[%s11131_s12 + $0x70] sm:$0xf]  ;;  %v8917_v36 = vld [vmem:[%s11131_s12 + $0x80] sm:$0xf] }
  0xfc   : > { %v8920_v6 = vcombine.low %v3924_v35, %v3938_v45  ;;  %v5620_v50 = vrot.slane %v5619_v25, 4  ;;  %v3951_v54 = vrot.slane %v3949_v49, 5  ;;  %v3957_v55 = vshll.u32 %v8909_v32, 16  ;;  %v8918_v45 = vld [vmem:[%s11131_s12 + $0x84] sm:$0x1] }
  0xfd   : > { %v3963_v34 = vshll.u32 %v8910_v38, 16  ;;  %v5634_v58 = vrot.slane %v5633_v51, 4  ;;  %v3946_v59 = vor.u32 %v3945_v52, %v3942_v47  ;;  %v4166_v60 = vsel %vm532_vm0, %v8936_v48, 0  ;;  %v8912_v48 = vld [vmem:[%s11131_s12 + $0x6c] sm:$0x1] }
  0xfe   : > { %v5625_v57 = vsel %vm11166_vm4, %v5620_v50, %v5624_v29  ;;  %v3956_v62 = vrot.slane %v3954_v0, 4  ;;  %v3959_v1 = vrot.slane %v3957_v55, 5  ;;  %v5641_v2 = vshrl.u32 %v5552_v28, 16  ;;  %v8916_v29 = vld [vmem:[%s11131_s12 + $0x7c] sm:$0x1] }
  0xff   : > { %10072 = vmatmul.mubr.msk.bf16.gmra.mrb[12].mxu0 %vm519_vm1, %v10913_v21  ;;  %v3965_v42 = vrot.slane %v3963_v34, 5  ;;  %v5639_v3 = vsel %vm11166_vm4, %v5634_v58, %v5638_v46  ;;  %v3947_v4 = vrot.slane %v3946_v59, 4  ;;  %v5644_v8 = vshll.u32 %v5552_v28, 16  ;;  %v11836_v51 = vld [vmem:[%s12935_s1 + $0x10] sm:$0xf] }
 0x100   : > { %10077 = vmatprep.mubr.msk.bf16.mxu0 %vm519_vm1, %v8920_v6  ;;  %v5650_v10 = vshll.u32 %v5553_v53, 16  ;;  %v9098_v11 = vcombine.low %v5625_v57, %v5639_v3  ;;  %v3960_v61 = vor.u32 %v3959_v1, %v3956_v62  ;;  %v5643_v12 = vrot.slane %v5641_v2, 4  ;;  %v10914_v6 = vld [vmem:[%s11131_s12 + $0x90] ss:$8 sps:$4 sm:$0xff]  }
 0x101   : > { %v5655_v5 = vshrl.u32 %v5554_v56, 16  ;;  %v3952_v14 = vsel %vm11166_vm4, %v3947_v4, %v3951_v54  ;;  %v5646_v63 = vrot.slane %v5644_v8, 5  ;;  %v5658_v17 = vshll.u32 %v5554_v56, 16 }
 0x102   : > { %v5652_v16 = vrot.slane %v5650_v10, 5  ;;  %10171 = vmatprep.mubr.msk.bf16.mxu1 %vm519_vm1, %v9098_v11  ;;  %v3961_v33 = vrot.slane %v3960_v61, 4  ;;  %v5664_v20 = vshll.u32 %v5555_v7, 16  ;;  %v5811_v21 = vsel %vm532_vm0, %v9112_v44, 0  ;;  %v9129_v61 = vld [vmem:[%s12935_s1 + $0x10] sm:$0xf] }
 0x103   : > { %v5657_v19 = vrot.slane %v5655_v5, 4  ;;  %v5647_v24 = vor.u32 %v5646_v63, %v5643_v12  ;;  %v5660_v26 = vrot.slane %v5658_v17, 5  ;;  %10176 = vmatpush3.bf16.msra.mxu1 %v5811_v21  ;;  %v3968_v27 = vshrl.u32 %v8911_v13, 16 }
 0x104   : > { %v3971_v15 = vshll.u32 %v8911_v13, 16  ;;  %v3966_v9 = vsel %vm11166_vm4, %v3961_v33, %v3965_v42  ;;  %v5666_v31 = vrot.slane %v5664_v20, 5  ;;  %v3977_v32 = vshll.u32 %v8912_v48, 16  ;;  %v10915_v48 = vld [vmem:[%s11131_s12 + $0xa0] ss:$8 sps:$4 sm:$0xff]   ;;  %10818 = vmatprep.subr.msk.bf16.mxu1 %vm532_vm0, %v9129_v61 }
 0x105   : > { %v3982_v35 = vshrl.u32 %v8913_v18, 16  ;;  %v8921_v37 = vcombine.low %v3952_v14, %v3966_v9  ;;  %v5648_v38 = vrot.slane %v5647_v24, 4  ;;  %v5661_v39 = vor.u32 %v5660_v26, %v5657_v19  ;;  %v10917_v14 = vld [vmem:[%s11131_s12 + $0xb0] ss:$8 sps:$4 sm:$0xff]   ;;  %v8946_v20 = vld [vmem:[%s11131_s12 + $0x94] sm:$0x1] }
 0x106   : > { %v3970_v25 = vrot.slane %v3968_v27, 4  ;;  %v3973_v40 = vrot.slane %v3971_v15, 5  ;;  %v3979_v41 = vrot.slane %v3977_v32, 5  ;;  %v3985_v44 = vshll.u32 %v8913_v18, 16  ;;  %v10916_v33 = vld [vmem:[%s11131_s12 + $0xd8] ss:$8 sps:$4 sm:$0xff]  }
 0x107   : > { %v3984_v43 = vrot.slane %v3982_v35, 4  ;;  %10078 = vmatmul.mubr.msk.bf16.vlgmr.msra.gmra.mrb[8].mxu0 %vm519_vm1, %v8921_v37  ;;  %v5653_v46 = vsel %vm11166_vm4, %v5648_v38, %v5652_v16  ;;  %v5662_v47 = vrot.slane %v5661_v39, 4  ;;  %v3991_v49 = vshll.u32 %v8914_v22, 16  ;;  %v8945_v19 = vld [vmem:[%s11131_s12 + $0x90] sm:$0xf] }
 0x108   : > { %v3996_v50 = vshrl.u32 %v8915_v23, 16  ;;  %10086 = vmatpush3.bf16.msra.mxu0 %v4166_v60  ;;  %v3974_v52 = vor.u32 %v3973_v40, %v3970_v25  ;;  %v3987_v28 = vrot.slane %v3985_v44, 5  ;;  %v3999_v53 = vshll.u32 %v8915_v23, 16  ;;  %v8947_v22 = vld [vmem:[%s11131_s12 + $0x98] sm:$0xf] }
 0x109   : > { %v4005_v54 = vshll.u32 %v8916_v29, 16  ;;  %v5667_v0 = vsel %vm11166_vm4, %v5662_v47, %v5666_v31  ;;  %v3993_v55 = vrot.slane %v3991_v49, 5  ;;  %v4010_v56 = vshrl.u32 %v8917_v36, 16  ;;  %10809 = vmatprep.subr.msk.bf16.mxu0 %vm532_vm0, %v11836_v51  ;;  %v8948_v23 = vld [vmem:[%s11131_s12 + $0x9c] sm:$0x1] }
 0x10a   : > { %v3998_v34 = vrot.slane %v3996_v50, 4  ;;  %v9099_v57 = vcombine.low %v5653_v46, %v5667_v0  ;;  %v3975_v58 = vrot.slane %v3974_v52, 4  ;;  %v3988_v59 = vor.u32 %v3987_v28, %v3984_v43  ;;  %v10919_v31 = vld [vmem:[%s11131_s12 + $0xc0] ss:$8 sps:$4 sm:$0xff]   ;;  %v11879_v43 = vld [vmem:[%s12935_s1 + $0x14] sm:$0xf] }
 0x10b   : > { %v4001_v62 = vrot.slane %v3999_v53, 5  ;;  %v4012_v1 = vrot.slane %v4010_v56, 4  ;;  %v4013_v60 = vshll.u32 %v8917_v36, 16  ;;  %v4019_v42 = vshll.u32 %v8918_v45, 16  ;;  %v10921_v36 = vld [vmem:[%s11131_s12 + $0xd8] ss:$8 sps:$4 sm:$0xff]  }
 0x10c   : > { %10172 = vmatmul.mubr.msk.bf16.gmra.mrb[12].mxu1 %vm519_vm1, %v9099_v57  ;;  %v3980_v2 = vsel %vm11166_vm4, %v3975_v58, %v3979_v41  ;;  %v3989_v3 = vrot.slane %v3988_v59, 4  ;;  %v4007_v7 = vrot.slane %v4005_v54, 5  ;;  %v5928_v17 = vsel %vm532_vm0, %v9129_v61, 0  ;;  %v10918_v40 = vld [vmem:[%s11131_s12 + $0xe8] ss:$8 sps:$4 sm:$0xff]  }
 0x10d   : > { %v4002_v4 = vor.u32 %v4001_v62, %v3998_v34  ;;  %10177 = vmatprep.mubr.msk.bf16.mxu1 %vm519_vm1, %v10914_v6  ;;  %v4015_v8 = vrot.slane %v4013_v60, 5  ;;  %v4021_v13 = vrot.slane %v4019_v42, 5  ;;  %v4258_v24 = vshrl.u32 %v8945_v19, 16  ;;  %v8949_v44 = vld [vmem:[%s11131_s12 + $0xa0] sm:$0xf] }
 0x10e   : > { %v3994_v10 = vsel %vm11166_vm4, %v3989_v3, %v3993_v55  ;;  %v4261_v26 = vshll.u32 %v8945_v19, 16  ;;  %v4267_v27 = vshll.u32 %v8946_v20, 16  ;;  %v4272_v15 = vshrl.u32 %v8947_v22, 16  ;;  %v8950_v45 = vld [vmem:[%s11131_s12 + $0xa4] sm:$0x1] }
 0x10f   : > { %v4003_v11 = vrot.slane %v4002_v4, 4  ;;  %v8922_v12 = vcombine.low %v3980_v2, %v3994_v10  ;;  %v4016_v5 = vor.u32 %v4015_v8, %v4012_v1  ;;  %v4275_v29 = vshll.u32 %v8947_v22, 16  ;;  %v8951_v46 = vld [vmem:[%s11131_s12 + $0xa8] sm:$0xf]  ;;  %v11885_v47 = vld [vmem:[%s11131_s12 + $0xf8] ss:$8 sps:$4 sm:$0xff]  }
 0x110   : > { %v4281_v9 = vshll.u32 %v8948_v23, 16  ;;  %v4260_v32 = vrot.slane %v4258_v24, 4  ;;  %v4263_v35 = vrot.slane %v4261_v26, 5  ;;  %v11871_v37 = vrot.slane %v4267_v27, 5  ;;  %v8952_v6 = vld [vmem:[%s11131_s12 + $0xac] sm:$0x1] }
 0x111   : > { %10081 = vmatprep.mubr.msk.bf16.mxu0 %vm519_vm1, %v8922_v12  ;;  %v4008_v63 = vsel %vm11166_vm4, %v4003_v11, %v4007_v7  ;;  %v4017_v16 = vrot.slane %v4016_v5, 4  ;;  %v4274_v38 = vrot.slane %v4272_v15, 4  ;;  %v4277_v39 = vrot.slane %v4275_v29, 5  ;;  %v9154_v3 = vld [vmem:[%s12935_s1 + $0x14] sm:$0xf] }
 0x112   : > { %v11873_v25 = vrot.slane %v4281_v9, 5  ;;  %v4264_v41 = vor.u32 %v4263_v35, %v4260_v32  ;;  %v4286_v50 = vshrl.u32 %v8949_v44, 16  ;;  %v4289_v52 = vshll.u32 %v8949_v44, 16  ;;  %v11925_v4 = vld [vmem:[%s11131_s12 + $0xb0] sm:$0xf] }
 0x113   : > { %v4022_v18 = vsel %vm11166_vm4, %v4017_v16, %v4021_v13  ;;  %v4278_v49 = vor.u32 %v4277_v39, %v4274_v38  ;;  %v4295_v28 = vshll.u32 %v8950_v45, 16  ;;  %v4300_v54 = vshrl.u32 %v8951_v46, 16  ;;  %v11929_v7 = vld [vmem:[%s11131_s12 + $0xe8] ss:$8 sps:$4 sm:$0xff]   ;;  %v11942_v61 = vld [vmem:[%s11131_s12 + $0xb4] sm:$0x1] }
 0x114   : > { %v8923_v21 = vcombine.low %v4008_v63, %v4022_v18  ;;  %10178 = vmatmul.mubr.msk.bf16.vlgmr.msra.gmra.mrb[8].mxu1 %vm519_vm1, %v10915_v48  ;;  %v11889_v53 = vrot.slane %v4264_v41, 4  ;;  %v4303_v0 = vshll.u32 %v8951_v46, 16  ;;  %v4309_v55 = vshll.u32 %v8952_v6, 16  ;;  %v11945_v12 = vld [vmem:[%s11131_s12 + $0xb8] sm:$0xf] }
 0x115   : > { %10181 = vmatprep.mubr.msk.bf16.mxu1 %vm519_vm1, %v10917_v14  ;;  %10186 = vmatpush3.bf16.msra.mxu1 %v5928_v17  ;;  %v11893_v34 = vsel %vm532_vm0, %v11836_v51, 0  ;;  %v11895_v56 = vrot.slane %v4278_v49, 4  ;;  %v11897_v57 = vrot.slane %v4286_v50, 4  ;;  %v11899_v58 = vrot.slane %v4289_v52, 5  ;;  %v10924_v48 = vld [vmem:[%s11131_s12 + $0xf8] ss:$8 sps:$4 sm:$0xff]  }
 0x116   : > { %10082 = vmatmul.mubr.msk.bf16.gmra.mrb[12].mxu0 %vm519_vm1, %v8923_v21  ;;  %v11902_v59 = vrot.slane %v4295_v28, 5  ;;  %v11904_v62 = vrot.slane %v4300_v54, 4  ;;  %v11906_v1 = vrot.slane %v4303_v0, 5  ;;  %v11908_v60 = vrot.slane %v4309_v55, 5  ;;  %10819 = vmatprep.subr.msk.bf16.mxu1 %vm532_vm0, %v9154_v3  ;;  %v8956_v63 = vld [vmem:[%s11131_s12 + $0xbc] sm:$0x1] }
 0x117   : > { %10087 = vmatprep.mubr.msk.bf16.mxu0 %vm519_vm1, %v10916_v33  ;;  %v4270_v51 = vsel %vm11166_vm4, %v11889_v53, %v11871_v37  ;;  %v4292_v42 = vor.u32 %v11899_v58, %v11897_v57  ;;  %v11919_v2 = vsel %vm532_vm0, %v11879_v43, 0  ;;  %v4284_v8 = vsel %vm11166_vm4, %v11895_v56, %v11873_v25  ;;  %v10922_v33 = vld [vmem:[%s11131_s12 + $0x108] ss:$8 sps:$4 sm:$0xff]   ;;  %v9139_v29 = vld [vmem:[%s11131_s12 + $0x94] sm:$0x1] }
 0x118   : > { %v4306_v10 = vor.u32 %v11906_v1, %v11904_v62  ;;  %v11939_v11 = vsel %vm532_vm0, %v9154_v3, 0  ;;  %v4314_v5 = vshrl.u32 %v11925_v4, 16  ;;  %v11053_v13 = vmov 0.0   ;;  %v9138_v23 = vld [vmem:[%s11131_s12 + $0x90] sm:$0xf] }
 0x119   : > { %282 = vst [vmem:[%s11948_s8] sm:$0xff] %v11053_v13  ;;  %283 = vst [vmem:[%s11948_s8 + $0x8] sm:$0x1] %v11053_v13  ;;  %v4293_v14 = vrot.slane %v4292_v42, 4  ;;  %v4317_v16 = vshll.u32 %v11925_v4, 16  ;;  %v4323_v17 = vshll.u32 %v11942_v61, 16  ;;  %v4328_v18 = vshrl.u32 %v11945_v12, 16 }
 0x11a   : > { %284 = vst [vmem:[%s11948_s8 + $0x10] sm:$0xff] %v11053_v13  ;;  %285 = vst [vmem:[%s11948_s8 + $0x18] sm:$0x1] %v11053_v13  ;;  %v4307_v19 = vrot.slane %v4306_v10, 4  ;;  %v4316_v20 = vrot.slane %v4314_v5, 4  ;;  %v4331_v21 = vshll.u32 %v11945_v12, 16  ;;  %v8962_v9 = vcombine.low %v4270_v51, %v4284_v8 }
 0x11b   : > { %286 = vst [vmem:[%s11948_s8 + $0x20] sm:$0xff] %v11053_v13  ;;  %287 = vst [vmem:[%s11948_s8 + $0x28] sm:$0x1] %v11053_v13  ;;  %v4337_v22 = vshll.u32 %v8956_v63, 16  ;;  %v4298_v24 = vsel %vm11166_vm4, %v4293_v14, %v11902_v59  ;;  %v4319_v26 = vrot.slane %v4317_v16, 5  ;;  %v4325_v27 = vrot.slane %v4323_v17, 5 }
 0x11c   : > { %10182 = vmatmul.mubr.msk.bf16.gmra.mrb[12].mxu1 %vm519_vm1, %v10919_v31  ;;  %288 = vst [vmem:[%s11948_s8 + $0x30] sm:$0xff] %v11053_v13  ;;  %289 = vst [vmem:[%s11948_s8 + $0x38] sm:$0x1] %v11053_v13  ;;  %v4330_v15 = vrot.slane %v4328_v18, 4  ;;  %v4312_v31 = vsel %vm11166_vm4, %v4307_v19, %v11908_v60  ;;  %v4333_v32 = vrot.slane %v4331_v21, 5  ;;  %v6020_v41 = vshrl.u32 %v9138_v23, 16 }
 0x11d   : > { %10187 = vmatprep.mubr.msk.bf16.mxu1 %vm519_vm1, %v10921_v36  ;;  %290 = vst [vmem:[%s11948_s8 + $0x40] sm:$0xff] %v11053_v13  ;;  %291 = vst [vmem:[%s11948_s8 + $0x48] sm:$0x1] %v11053_v13  ;;  %v4339_v35 = vrot.slane %v4337_v22, 5  ;;  %v9140_v36 = vld [vmem:[%s11131_s12 + $0x98] sm:$0xf]  ;;  %v8963_v39 = vcombine.low %v4298_v24, %v4312_v31 }
 0x11e   : > { %10088 = vmatmul.mubr.msk.bf16.vlgmr.msra.gmra.mrb[8].mxu0 %vm519_vm1, %v10918_v40  ;;  %292 = vst [vmem:[%s11948_s8 + $0x50] sm:$0xff] %v11053_v13  ;;  %293 = vst [vmem:[%s11948_s8 + $0x58] sm:$0x1] %v11053_v13  ;;  %v9141_v38 = vld [vmem:[%s11131_s12 + $0x9c] sm:$0x1]  ;;  %v4320_v40 = vor.u32 %v4319_v26, %v4316_v20  ;;  %v6023_v25 = vshll.u32 %v9138_v23, 16 }
 0x11f   : > { %294 = vst [vmem:[%s11948_s8 + $0x60] sm:$0xff] %v11053_v13  ;;  %295 = vst [vmem:[%s11948_s8 + $0x68] sm:$0x1] %v11053_v13  ;;  %10096 = vmatpush3.bf16.msra.mxu0 %v11893_v34  ;;  %10091 = vmatprep.mubr.msk.bf16.mxu0 %vm519_vm1, %v11885_v47  ;;  %v6029_v37 = vshll.u32 %v9139_v29, 16  ;;  %v6034_v44 = vshrl.u32 %v9140_v36, 16  ;;  %v6037_v45 = vshll.u32 %v9140_v36, 16 }
 0x120   : > { %296 = vst [vmem:[%s11948_s8 + $0x70] sm:$0xff] %v11053_v13  ;;  %297 = vst [vmem:[%s11948_s8 + $0x78] sm:$0x1] %v11053_v13  ;;  %10810 = vmatprep.subr.msk.bf16.mxu0 %vm532_vm0, %v11879_v43  ;;  %v4334_v43 = vor.u32 %v4333_v32, %v4330_v15  ;;  %v8957_v46 = vld [vmem:[%s11131_s12 + $0xc0] sm:$0xf]  ;;  %v4321_v47 = vrot.slane %v4320_v40, 4 }
 0x121   : > { %298 = vst [vmem:[%s11948_s8 + $0x80] sm:$0xff] %v11053_v13  ;;  %299 = vst [vmem:[%s11948_s8 + $0x88] sm:$0x1] %v11053_v13  ;;  %v6022_v49 = vrot.slane %v6020_v41, 4  ;;  %v6025_v6 = vrot.slane %v6023_v25, 5  ;;  %v6043_v50 = vshll.u32 %v9141_v38, 16 }
 0x122   : > { %8426 = vst [vmem:[%s11948_s8 + $0x90] sm:$0xff] %v11053_v13  ;;  %8427 = vst [vmem:[%s11948_s8 + $0x98] sm:$0x1] %v11053_v13  ;;  %v8958_v52 = vld [vmem:[%s11131_s12 + $0xc4] sm:$0x1]  ;;  %v4335_v28 = vrot.slane %v4334_v43, 4  ;;  %v4326_v56 = vsel %vm11166_vm4, %v4321_v47, %v4325_v27 }
 0x123   : > { %8429 = vst [vmem:[%s11948_s8 + $0xa8] sm:$0x1] %v11053_v13  ;;  %8431 = vst [vmem:[%s11948_s8 + $0xb8] sm:$0x1] %v11053_v13  ;;  %v6031_v53 = vrot.slane %v6029_v37, 5  ;;  %v6036_v54 = vrot.slane %v6034_v44, 4  ;;  %v6026_v57 = vor.u32 %v6025_v6, %v6022_v49 }
 0x124   : > { %8433 = vst [vmem:[%s11948_s8 + $0xc8] sm:$0x1] %v11053_v13  ;;  %8435 = vst [vmem:[%s11948_s8 + $0xd8] sm:$0x1] %v11053_v13  ;;  %10188 = vmatmul.mubr.msk.bf16.vlgmr.msra.gmra.mrb[8].mxu1 %vm519_vm1, %v11929_v7  ;;  %v6039_v0 = vrot.slane %v6037_v45, 5  ;;  %v6045_v58 = vrot.slane %v6043_v50, 5  ;;  %v4340_v62 = vsel %vm11166_vm4, %v4335_v28, %v4339_v35 }
 0x125   : > { %8437 = vst [vmem:[%s11948_s8 + $0xe8] sm:$0x1] %v11053_v13  ;;  %8439 = vst [vmem:[%s11948_s8 + $0xf8] sm:$0x1] %v11053_v13  ;;  %10191 = vmatprep.mubr.msk.bf16.mxu1 %vm519_vm1, %v10924_v48  ;;  %10196 = vmatpush3.bf16.msra.mxu1 %v11939_v11  ;;  %v8959_v55 = vld [vmem:[%s11131_s12 + $0xc8] sm:$0xf]  ;;  %v8964_v4 = vcombine.low %v4326_v56, %v4340_v62 }
 0x126   : > { %8441 = vst [vmem:[%s11948_s8 + $0x108] sm:$0x1] %v11053_v13  ;;  %8443 = vst [vmem:[%s11948_s8 + $0x118] sm:$0x1] %v11053_v13  ;;  %10092 = vmatmul.mubr.msk.bf16.gmra.mrb[12].mxu0 %vm519_vm1, %v10922_v33  ;;  %v10925_v34 = vld [vmem:[%s11131_s12 + $0x108] ss:$8 sps:$4 sm:$0xff]   ;;  %v6040_v1 = vor.u32 %v6039_v0, %v6036_v54 }
 0x127   : > { %8446 = vst [vmem:[%s11948_s8 + $0x120] sm:$0xff] %v11053_v13  ;;  %8447 = vst [vmem:[%s11948_s8 + $0x128] sm:$0x1] %v11053_v13  ;;  %10097 = vmatprep.mubr.msk.bf16.mxu0 %vm519_vm1, %v8962_v9  ;;  %v4342_v59 = vshrl.u32 %v8957_v46, 16  ;;  %v8960_v60 = vld [vmem:[%s11131_s12 + $0xcc] sm:$0x1] }
 0x128   : > { %8448 = vst [vmem:[%s11948_s8 + $0x130] sm:$0xff] %v11053_v13  ;;  %8449 = vst [vmem:[%s11948_s8 + $0x138] sm:$0x1] %v11053_v13  ;;  %v4345_v51 = vshll.u32 %v8957_v46, 16  ;;  %v4351_v42 = vshll.u32 %v8958_v52, 16  ;;  %v6027_v7 = vrot.slane %v6026_v57, 4 }
 0x129   : > { %8450 = vst [vmem:[%s11948_s8 + $0x140] sm:$0xff] %v11053_v13  ;;  %8451 = vst [vmem:[%s11948_s8 + $0x148] sm:$0x1] %v11053_v13  ;;  %v9142_v3 = vld [vmem:[%s11131_s12 + $0xa0] sm:$0xf]  ;;  %v4344_v8 = vrot.slane %v4342_v59, 4 }
 0x12a   : > { %8452 = vst [vmem:[%s11948_s8 + $0x150] sm:$0xff] %v11053_v13  ;;  %8453 = vst [vmem:[%s11948_s8 + $0x158] sm:$0x1] %v11053_v13  ;;  %v4356_v10 = vshrl.u32 %v8959_v55, 16  ;;  %v6041_v11 = vrot.slane %v6040_v1, 4  ;;  %v4347_v61 = vrot.slane %v4345_v51, 5  ;;  %v6032_v48 = vsel %vm11166_vm4, %v6027_v7, %v6031_v53 }
 0x12b   : > { %8454 = vst [vmem:[%s11948_s8 + $0x160] sm:$0xff] %v11053_v13  ;;  %8455 = vst [vmem:[%s11948_s8 + $0x168] sm:$0x1] %v11053_v13  ;;  %v4353_v12 = vrot.slane %v4351_v42, 5  ;;  %v4359_v5 = vshll.u32 %v8959_v55, 16  ;;  %v4365_v63 = vshll.u32 %v8960_v60, 16 }
 0x12c   : > { %8456 = vst [vmem:[%s11948_s8 + $0x170] sm:$0xff] %v11053_v13  ;;  %8457 = vst [vmem:[%s11948_s8 + $0x178] sm:$0x1] %v11053_v13  ;;  %v4358_v14 = vrot.slane %v4356_v10, 4  ;;  %v9144_v16 = vld [vmem:[%s11131_s12 + $0xa8] sm:$0xf]  ;;  %10192 = vmatmul.mubr.msk.bf16.gmra.mrb[12].mxu1 %vm519_vm1, %v10925_v34  ;;  %v6046_v18 = vsel %vm11166_vm4, %v6041_v11, %v6045_v58  ;;  %v4348_v33 = vor.u32 %v4347_v61, %v4344_v8 }
 0x12d   : > { %8458 = vst [vmem:[%s11948_s8 + $0x180] sm:$0xff] %v11053_v13  ;;  %8459 = vst [vmem:[%s11948_s8 + $0x188] sm:$0x1] %v11053_v13  ;;  %v6048_v17 = vshrl.u32 %v9142_v3, 16  ;;  %v4361_v19 = vrot.slane %v4359_v5, 5  ;;  %v6051_v21 = vshll.u32 %v9142_v3, 16  ;;  %v9155_v23 = vcombine.low %v6032_v48, %v6046_v18 }
 0x12e   : > { %8460 = vst [vmem:[%s11948_s8 + $0x190] sm:$0xff] %v11053_v13  ;;  %8461 = vst [vmem:[%s11948_s8 + $0x198] sm:$0x1] %v11053_v13  ;;  %v9145_v20 = vld [vmem:[%s11131_s12 + $0xac] sm:$0x1]  ;;  %v4367_v24 = vrot.slane %v4365_v63, 5  ;;  %10098 = vmatmul.mubr.msk.bf16.vlgmr.msra.gmra.mrb[8].mxu0 %vm519_vm1, %v8963_v39 }
 0x12f   : > { %8462 = vst [vmem:[%s11948_s8 + $0x1a0] sm:$0xff] %v11053_v13  ;;  %8463 = vst [vmem:[%s11948_s8 + $0x1a8] sm:$0x1] %v11053_v13  ;;  %v8970_v22 = vld [vmem:[%s11131_s12 + $0xd8] sm:$0xf]  ;;  %v6050_v26 = vrot.slane %v6048_v17, 4  ;;  %v4362_v9 = vor.u32 %v4361_v19, %v4358_v14  ;;  %10106 = vmatpush3.bf16.msra.mxu0 %v11919_v2  ;;  %10101 = vmatprep.mubr.msk.bf16.mxu0 %vm519_vm1, %v8964_v4 }
 0x130   : > { %8467 = vst [vmem:[%s11948_s8 + $0x1b8] sm:$0x1] %v11053_v13  ;;  %8469 = vst [vmem:[%s11948_s8 + $0x1c8] sm:$0x1] %v11053_v13  ;;  %v12074_v15 = vld [vmem:[%s12935_s1 + $0x18] sm:$0xf]  ;;  %10197 = vmatprep.mubr.msk.bf16.mxu1 %vm519_vm1, %v9155_v23 }
 0x131   : > { %8471 = vst [vmem:[%s11948_s8 + $0x1d8] sm:$0x1] %v11053_v13  ;;  %8473 = vst [vmem:[%s11948_s8 + $0x1e8] sm:$0x1] %v11053_v13  ;;  %v4349_v29 = vrot.slane %v4348_v33, 4  ;;  %v6053_v31 = vrot.slane %v6051_v21, 5  ;;  %10811 = vmatprep.subr.msk.bf16.mxu0 %vm532_vm0, %v12074_v15 }
 0x132   : > { %8475 = vst [vmem:[%s11948_s8 + $0x1f8] sm:$0x1] %v11053_v13  ;;  %8477 = vst [vmem:[%s11948_s8 + $0x208] sm:$0x1] %v11053_v13  ;;  %v6062_v32 = vshrl.u32 %v9144_v16, 16  ;;  %v6065_v38 = vshll.u32 %v9144_v16, 16 }
 0x133   : > { %8479 = vst [vmem:[%s11948_s8 + $0x218] sm:$0x1] %v11053_v13  ;;  %8481 = vst [vmem:[%s11948_s8 + $0x228] sm:$0x1] %v11053_v13  ;;  %v8971_v35 = vld [vmem:[%s11131_s12 + $0xdc] sm:$0x1]  ;;  %v4354_v39 = vsel %vm11166_vm4, %v4349_v29, %v4353_v12  ;;  %v6054_v37 = vor.u32 %v6053_v31, %v6050_v26 }
 0x134   : > { %8482 = vst [vmem:[%s11948_s8 + $0x230] sm:$0xff] %v11053_v13  ;;  %8483 = vst [vmem:[%s11948_s8 + $0x238] sm:$0x1] %v11053_v13  ;;  %v9143_v13 = vld [vmem:[%s11131_s12 + $0xa4] sm:$0x1]  ;;  %v6071_v40 = vshll.u32 %v9145_v20, 16 }
 0x135   : > { %v6057_v27 = vshll.u32 %v9143_v13, 16  ;;  %v8972_v41 = vld [vmem:[%s11131_s12 + $0xe0] sm:$0xf]  ;;  %v4487_v25 = vshrl.u32 %v8970_v22, 16  ;;  %v4363_v43 = vrot.slane %v4362_v9, 4  ;;  %v6064_v44 = vrot.slane %v6062_v32, 4 }
 0x136   : > { %v6067_v2 = vrot.slane %v6065_v38, 5  ;;  %v6073_v45 = vrot.slane %v6071_v40, 5  ;;  %v8973_v46 = vld [vmem:[%s11131_s12 + $0xe4] sm:$0x1]  ;;  %v4490_v49 = vshll.u32 %v8970_v22, 16  ;;  %v6055_v50 = vrot.slane %v6054_v37, 4 }
 0x137   : > { %v6059_v36 = vrot.slane %v6057_v27, 5  ;;  %v4489_v47 = vrot.slane %v4487_v25, 4  ;;  %v4368_v6 = vsel %vm11166_vm4, %v4363_v43, %v4367_v24  ;;  %v4496_v52 = vshll.u32 %v8971_v35, 16  ;;  %v9146_v53 = vld [vmem:[%s11131_s12 + $0xb0] sm:$0xf] }
 0x138   : > { %v4501_v28 = vshrl.u32 %v8972_v41, 16  ;;  %v8965_v54 = vcombine.low %v4354_v39, %v4368_v6  ;;  %v6068_v0 = vor.u32 %v6067_v2, %v6064_v44  ;;  %v4492_v55 = vrot.slane %v4490_v49, 5  ;;  %v9147_v56 = vld [vmem:[%s11131_s12 + $0xb4] sm:$0x1]  ;;  %v9148_v57 = vld [vmem:[%s11131_s12 + $0xb8] sm:$0xf] }
 0x139   : > { %v4504_v34 = vshll.u32 %v8972_v41, 16  ;;  %v6060_v58 = vsel %vm11166_vm4, %v6055_v50, %v6059_v36  ;;  %v4498_v59 = vrot.slane %v4496_v52, 5  ;;  %v4510_v1 = vshll.u32 %v8973_v46, 16  ;;  %v9149_v3 = vld [vmem:[%s11131_s12 + $0xbc] sm:$0x1] }
 0x13a   : > { %v4503_v62 = vrot.slane %v4501_v28, 4  ;;  %v6069_v60 = vrot.slane %v6068_v0, 4  ;;  %v4493_v51 = vor.u32 %v4492_v55, %v4489_v47  ;;  %v6076_v4 = vshrl.u32 %v9146_v53, 16  ;;  %10102 = vmatmul.mubr.msk.bf16.gmra.mrb[12].mxu0 %vm519_vm1, %v8965_v54  ;;  %v12099_v61 = vld [vmem:[%s12935_s1 + $0x18] sm:$0xf] }
 0x13b   : > { %v4506_v42 = vrot.slane %v4504_v34, 5  ;;  %v4512_v7 = vrot.slane %v4510_v1, 5  ;;  %v6079_v8 = vshll.u32 %v9146_v53, 16  ;;  %v6085_v10 = vshll.u32 %v9147_v56, 16  ;;  %v8974_v14 = vld [vmem:[%s11131_s12 + $0xe8] sm:$0xf]  ;;  %10820 = vmatprep.subr.msk.bf16.mxu1 %vm532_vm0, %v12099_v61 }
 0x13c   : > { %v6090_v11 = vshrl.u32 %v9148_v57, 16  ;;  %v6074_v12 = vsel %vm11166_vm4, %v6069_v60, %v6073_v45  ;;  %v4494_v5 = vrot.slane %v4493_v51, 4  ;;  %v6078_v48 = vrot.slane %v6076_v4, 4  ;;  %v8975_v63 = vld [vmem:[%s11131_s12 + $0xec] sm:$0x1] }
 0x13d   : > { %v4507_v13 = vor.u32 %v4506_v42, %v4503_v62  ;;  %v9156_v16 = vcombine.low %v6060_v58, %v6074_v12  ;;  %v6081_v17 = vrot.slane %v6079_v8, 5  ;;  %v6087_v18 = vrot.slane %v6085_v10, 5  ;;  %v8976_v19 = vld [vmem:[%s11131_s12 + $0xf0] sm:$0xf]  ;;  %v8977_v24 = vld [vmem:[%s11131_s12 + $0xf4] sm:$0x1] }
 0x13e   : > { %v6092_v33 = vrot.slane %v6090_v11, 4  ;;  %v4499_v20 = vsel %vm11166_vm4, %v4494_v5, %v4498_v59  ;;  %v6093_v22 = vshll.u32 %v9148_v57, 16  ;;  %v6099_v23 = vshll.u32 %v9149_v3, 16  ;;  %v9150_v31 = vld [vmem:[%s11131_s12 + $0xc0] sm:$0xf] }
 0x13f   : > { %v4508_v21 = vrot.slane %v4507_v13, 4  ;;  %10198 = vmatmul.mubr.msk.bf16.vlgmr.msra.gmra.mrb[8].mxu1 %vm519_vm1, %v9156_v16  ;;  %v6082_v26 = vor.u32 %v6081_v17, %v6078_v48  ;;  %v4515_v27 = vshrl.u32 %v8974_v14, 16  ;;  %v4518_v29 = vshll.u32 %v8974_v14, 16  ;;  %v9151_v43 = vld [vmem:[%s11131_s12 + $0xc4] sm:$0x1] }
 0x140   : > { %v4524_v9 = vshll.u32 %v8975_v63, 16  ;;  %v6095_v35 = vrot.slane %v6093_v22, 5  ;;  %v6101_v36 = vrot.slane %v6099_v23, 5  ;;  %v4529_v38 = vshrl.u32 %v8976_v19, 16  ;;  %v9152_v46 = vld [vmem:[%s11131_s12 + $0xc8] sm:$0xf] }
 0x141   : > { %v4513_v32 = vsel %vm11166_vm4, %v4508_v21, %v4512_v7  ;;  %v6083_v41 = vrot.slane %v6082_v26, 4  ;;  %v4517_v25 = vrot.slane %v4515_v27, 4  ;;  %v4520_v39 = vrot.slane %v4518_v29, 5  ;;  %v9153_v52 = vld [vmem:[%s11131_s12 + $0xcc] sm:$0x1] }
 0x142   : > { %v8987_v40 = vcombine.low %v4499_v20, %v4513_v32  ;;  %v6096_v37 = vor.u32 %v6095_v35, %v6092_v33  ;;  %v4526_v44 = vrot.slane %v4524_v9, 5  ;;  %v4531_v2 = vrot.slane %v4529_v38, 4  ;;  %v8978_v55 = vld [vmem:[%s11131_s12 + $0xf8] sm:$0xf]  ;;  %v8979_v51 = vld [vmem:[%s11131_s12 + $0xfc] sm:$0x1] }
 0x143   : > { %v4532_v45 = vshll.u32 %v8976_v19, 16  ;;  %v6088_v47 = vsel %vm11166_vm4, %v6083_v41, %v6087_v18  ;;  %v4521_v49 = vor.u32 %v4520_v39, %v4517_v25  ;;  %v4538_v6 = vshll.u32 %v8977_v24, 16  ;;  %v8980_v7 = vld [vmem:[%s11131_s12 + $0x100] sm:$0xf]  ;;  %v8981_v5 = vld [vmem:[%s11131_s12 + $0x104] sm:$0x1] }
 0x144   : > { %10107 = vmatprep.mubr.msk.bf16.mxu0 %vm519_vm1, %v8987_v40  ;;  %v4741_v50 = vsel %vm532_vm0, %v12074_v15, 0  ;;  %v6097_v28 = vrot.slane %v6096_v37, 4  ;;  %v6104_v54 = vshrl.u32 %v9150_v31, 16  ;;  %v6107_v0 = vshll.u32 %v9150_v31, 16  ;;  %v8982_v16 = vld [vmem:[%s11131_s12 + $0x108] sm:$0xf] }
 0x145   : > { %v4534_v53 = vrot.slane %v4532_v45, 5  ;;  %v4522_v34 = vrot.slane %v4521_v49, 4  ;;  %v4540_v56 = vrot.slane %v4538_v6, 5  ;;  %v6113_v57 = vshll.u32 %v9151_v43, 16  ;;  %v8983_v19 = vld [vmem:[%s11131_s12 + $0x10c] sm:$0x1] }
 0x146   : > { %v6118_v58 = vshrl.u32 %v9152_v46, 16  ;;  %v6102_v59 = vsel %vm11166_vm4, %v6097_v28, %v6101_v36  ;;  %v6106_v1 = vrot.slane %v6104_v54, 4  ;;  %v6109_v60 = vrot.slane %v6107_v0, 5  ;;  %v12141_v20 = vld [vmem:[%s12935_s1 + $0x1c] sm:$0xf] }
 0x147   : > { %v4535_v62 = vor.u32 %v4534_v53, %v4531_v2  ;;  %v9157_v15 = vcombine.low %v6088_v47, %v6102_v59  ;;  %v4527_v42 = vsel %vm11166_vm4, %v4522_v34, %v4526_v44  ;;  %v6115_v3 = vrot.slane %v6113_v57, 5  ;;  %v8984_v24 = vld [vmem:[%s11131_s12 + $0x110] sm:$0xf]  ;;  %v8985_v39 = vld [vmem:[%s11131_s12 + $0x114] sm:$0x1] }
 0x148   : > { %v6120_v4 = vrot.slane %v6118_v58, 4  ;;  %v6110_v10 = vor.u32 %v6109_v60, %v6106_v1  ;;  %v6121_v11 = vshll.u32 %v9152_v46, 16  ;;  %v6127_v12 = vshll.u32 %v9153_v52, 16  ;;  %v10926_v49 = vld [vmem:[%s11131_s12 + $0x8] ss:$8 sps:$4 sm:$0xff]  }
 0x149   : > { %v4536_v8 = vrot.slane %v4535_v62, 4  ;;  %10201 = vmatprep.mubr.msk.bf16.mxu1 %vm519_vm1, %v9157_v15  ;;  %v6274_v13 = vsel %vm532_vm0, %v12099_v61, 0  ;;  %v4543_v48 = vshrl.u32 %v8978_v55, 16  ;;  %v4546_v14 = vshll.u32 %v8978_v55, 16  ;;  %v9188_v53 = vld [vmem:[%s12935_s1 + $0x1c] sm:$0xf] }
 0x14a   : > { %v4552_v63 = vshll.u32 %v8979_v51, 16  ;;  %v6111_v18 = vrot.slane %v6110_v10, 4  ;;  %v6123_v33 = vrot.slane %v6121_v11, 5  ;;  %10206 = vmatpush3.bf16.msra.mxu1 %v6274_v13  ;;  %v6129_v22 = vrot.slane %v6127_v12, 5  ;;  %v10927_v51 = vld [vmem:[%s11131_s12 + $0x18] ss:$8 sps:$4 sm:$0xff]  }
 0x14b   : > { %v4541_v17 = vsel %vm11166_vm4, %v4536_v8, %v4540_v56  ;;  %v4545_v23 = vrot.slane %v4543_v48, 4  ;;  %v4548_v61 = vrot.slane %v4546_v14, 5  ;;  %v4557_v29 = vshrl.u32 %v8980_v7, 16  ;;  %10821 = vmatprep.subr.msk.bf16.mxu1 %vm532_vm0, %v9188_v53  ;;  %v9012_v8 = vld [vmem:[%s11131_s12 + $0x8] sm:$0xf] }
 0x14c   : > { %v8988_v21 = vcombine.low %v4527_v42, %v4541_v17  ;;  %v6124_v26 = vor.u32 %v6123_v33, %v6120_v4  ;;  %v4554_v27 = vrot.slane %v4552_v63, 5  ;;  %v4560_v9 = vshll.u32 %v8980_v7, 16  ;;  %v10929_v4 = vld [vmem:[%s11131_s12 + $0x28] ss:$8 sps:$4 sm:$0xff]   ;;  %v9013_v10 = vld [vmem:[%s11131_s12 + $0xc] sm:$0x1] }
 0x14d   : > { %v4549_v31 = vor.u32 %v4548_v61, %v4545_v23  ;;  %v4566_v32 = vshll.u32 %v8981_v5, 16  ;;  %v4571_v35 = vshrl.u32 %v8982_v16, 16  ;;  %v4574_v36 = vshll.u32 %v8982_v16, 16  ;;  %v9014_v11 = vld [vmem:[%s11131_s12 + $0x10] sm:$0xf] }
 0x14e   : > { %10108 = vmatmul.mubr.msk.bf16.vlgmr.msra.gmra.mrb[8].mxu0 %vm519_vm1, %v8988_v21  ;;  %v6116_v38 = vsel %vm11166_vm4, %v6111_v18, %v6115_v3  ;;  %v6125_v40 = vrot.slane %v6124_v26, 4  ;;  %v4559_v41 = vrot.slane %v4557_v29, 4  ;;  %v4562_v25 = vrot.slane %v4560_v9, 5  ;;  %v10928_v3 = vld [vmem:[%s11131_s12 + $0x50] ss:$8 sps:$4 sm:$0xff]  }
 0x14f   : > { %10116 = vmatpush3.bf16.msra.mxu0 %v4741_v50  ;;  %v4550_v43 = vrot.slane %v4549_v31, 4  ;;  %v4573_v37 = vrot.slane %v4571_v35, 4  ;;  %v4576_v44 = vrot.slane %v4574_v36, 5  ;;  %v4580_v2 = vshll.u32 %v8983_v19, 16  ;;  %v9015_v12 = vld [vmem:[%s11131_s12 + $0x14] sm:$0x1] }
 0x150   : > { %10812 = vmatprep.subr.msk.bf16.mxu0 %vm532_vm0, %v12141_v20  ;;  %v6130_v45 = vsel %vm11166_vm4, %v6125_v40, %v6129_v22  ;;  %v4563_v46 = vor.u32 %v4562_v25, %v4559_v41  ;;  %v4568_v47 = vrot.slane %v4566_v32, 5  ;;  %v4585_v6 = vshrl.u32 %v8984_v24, 16  ;;  %v12179_v63 = vld [vmem:[%s12935_s1 + $0x20] sm:$0xf]  ;;  %v9016_v9 = vld [vmem:[%s11131_s12 + $0x18] sm:$0xf] }
 0x151   : > { %v9158_v50 = vcombine.low %v6116_v38, %v6130_v45  ;;  %v4577_v52 = vor.u32 %v4576_v44, %v4573_v37  ;;  %v4588_v28 = vshll.u32 %v8984_v24, 16  ;;  %v4555_v54 = vsel %vm11166_vm4, %v4550_v43, %v4554_v27  ;;  %v9017_v31 = vld [vmem:[%s11131_s12 + $0x1c] sm:$0x1]  ;;  %v9018_v32 = vld [vmem:[%s11131_s12 + $0x20] sm:$0xf] }
 0x152   : > { %v4564_v0 = vrot.slane %v4563_v46, 4  ;;  %v4587_v55 = vrot.slane %v4585_v6, 4  ;;  %v4594_v34 = vshll.u32 %v8985_v39, 16  ;;  %v4582_v57 = vrot.slane %v4580_v2, 5  ;;  %v10930_v35 = vld [vmem:[%s11131_s12 + $0x60] ss:$8 sps:$4 sm:$0xff]  }
 0x153   : > { %10202 = vmatmul.mubr.msk.bf16.gmra.mrb[12].mxu1 %vm519_vm1, %v9158_v50  ;;  %v4578_v56 = vrot.slane %v4577_v52, 4  ;;  %v4590_v58 = vrot.slane %v4588_v28, 5  ;;  %v6391_v7 = vsel %vm532_vm0, %v9188_v53, 0  ;;  %v4833_v13 = vshrl.u32 %v9012_v8, 16  ;;  %v10933_v36 = vld [vmem:[%s11131_s12 + $0x50] ss:$8 sps:$4 sm:$0xff]  }
 0x154   : > { %v4569_v59 = vsel %vm11166_vm4, %v4564_v0, %v4568_v47  ;;  %10207 = vmatprep.mubr.msk.bf16.mxu1 %vm519_vm1, %v10926_v49  ;;  %v4596_v60 = vrot.slane %v4594_v34, 5  ;;  %v4836_v48 = vshll.u32 %v9012_v8, 16  ;;  %v4842_v14 = vshll.u32 %v9013_v10, 16  ;;  %v9019_v40 = vld [vmem:[%s11131_s12 + $0x24] sm:$0x1] }
 0x155   : > { %v8989_v62 = vcombine.low %v4555_v54, %v4569_v59  ;;  %v4591_v1 = vor.u32 %v4590_v58, %v4587_v55  ;;  %v4583_v15 = vsel %vm11166_vm4, %v4578_v56, %v4582_v57  ;;  %v4847_v17 = vshrl.u32 %v9014_v11, 16  ;;  %v10932_v6 = vld [vmem:[%s11131_s12 + $0x70] ss:$8 sps:$4 sm:$0xff]   ;;  %v9213_v55 = vld [vmem:[%s12935_s1 + $0x20] sm:$0xf] }
 0x156   : > { %v4850_v18 = vshll.u32 %v9014_v11, 16  ;;  %v4856_v33 = vshll.u32 %v9015_v12, 16  ;;  %v4970_v19 = vsel %vm532_vm0, %v12141_v20, 0  ;;  %v4835_v21 = vrot.slane %v4833_v13, 4  ;;  %v10931_v20 = vld [vmem:[%s11131_s12 + $0x38] ss:$8 sps:$4 sm:$0xff]  }
 0x157   : > { %10111 = vmatprep.mubr.msk.bf16.mxu0 %vm519_vm1, %v8989_v62  ;;  %v4592_v42 = vrot.slane %v4591_v1, 4  ;;  %v4838_v22 = vrot.slane %v4836_v48, 5  ;;  %v4844_v23 = vrot.slane %v4842_v14, 5  ;;  %v4849_v61 = vrot.slane %v4847_v17, 4  ;;  %v9020_v34 = vld [vmem:[%s11131_s12 + $0x28] sm:$0xf] }
 0x158   : > { %v4852_v24 = vrot.slane %v4850_v18, 5  ;;  %v4858_v26 = vrot.slane %v4856_v33, 5  ;;  %v12188_v27 = vsel %vm532_vm0, %v12179_v63, 0  ;;  %v4861_v41 = vshrl.u32 %v9016_v9, 16  ;;  %v9021_v56 = vld [vmem:[%s11131_s12 + $0x2c] sm:$0x1] }
 0x159   : > { %v4597_v5 = vsel %vm11166_vm4, %v4592_v42, %v4596_v60  ;;  %v4839_v29 = vor.u32 %v4838_v22, %v4835_v21  ;;  %v4864_v25 = vshll.u32 %v9016_v9, 16  ;;  %v4870_v39 = vshll.u32 %v9017_v31, 16  ;;  %v9022_v62 = vld [vmem:[%s11131_s12 + $0x30] sm:$0xf]  ;;  %v9023_v1 = vld [vmem:[%s11131_s12 + $0x34] sm:$0x1] }
 0x15a   : > { %v8990_v16 = vcombine.low %v4583_v15, %v4597_v5  ;;  %v4853_v38 = vor.u32 %v4852_v24, %v4849_v61  ;;  %v4875_v37 = vshrl.u32 %v9018_v32, 16  ;;  %v4878_v44 = vshll.u32 %v9018_v32, 16  ;;  %v9198_v5 = vld [vmem:[%s11131_s12 + $0xc] sm:$0x1]  ;;  %v10934_v13 = vld [vmem:[%s11131_s12 + $0x80] ss:$8 sps:$4 sm:$0xff]  }
 0x15b   : > { %10208 = vmatmul.mubr.msk.bf16.vlgmr.msra.gmra.mrb[8].mxu1 %vm519_vm1, %v10927_v51  ;;  %v4840_v43 = vrot.slane %v4839_v29, 4  ;;  %v4884_v2 = vshll.u32 %v9019_v40, 16  ;;  %v4863_v46 = vrot.slane %v4861_v41, 4  ;;  %v4866_v47 = vrot.slane %v4864_v25, 5  ;;  %v9199_v18 = vld [vmem:[%s11131_s12 + $0x10] sm:$0xf] }
 0x15c   : > { %10112 = vmatmul.mubr.msk.bf16.gmra.mrb[12].mxu0 %vm519_vm1, %v8990_v16  ;;  %10211 = vmatprep.mubr.msk.bf16.mxu1 %vm519_vm1, %v10929_v4  ;;  %v4854_v45 = vrot.slane %v4853_v38, 4  ;;  %v4872_v49 = vrot.slane %v4870_v39, 5  ;;  %v4877_v52 = vrot.slane %v4875_v37, 4  ;;  %v4880_v28 = vrot.slane %v4878_v44, 5  ;;  %v9197_v4 = vld [vmem:[%s11131_s12 + $0x8] sm:$0xf] }
 0x15d   : > { %10117 = vmatprep.mubr.msk.bf16.mxu0 %vm519_vm1, %v10928_v3  ;;  %10216 = vmatpush3.bf16.msra.mxu1 %v6391_v7  ;;  %v4845_v50 = vsel %vm11166_vm4, %v4840_v43, %v4844_v23  ;;  %v4886_v53 = vrot.slane %v4884_v2, 5  ;;  %v4867_v0 = vor.u32 %v4866_v47, %v4863_v46  ;;  %v6620_v59 = vsel %vm532_vm0, %v9213_v55, 0  ;;  %v10935_v7 = vld [vmem:[%s11131_s12 + $0x60] ss:$8 sps:$4 sm:$0xff]   ;;  %v9200_v22 = vld [vmem:[%s11131_s12 + $0x14] sm:$0x1] }
 0x15e   : > { %v4859_v54 = vsel %vm11166_vm4, %v4854_v45, %v4858_v26  ;;  %v4881_v58 = vor.u32 %v4880_v28, %v4877_v52  ;;  %10822 = vmatprep.subr.msk.bf16.mxu1 %vm532_vm0, %v9213_v55  ;;  %v4889_v60 = vshrl.u32 %v9020_v34, 16  ;;  %v4892_v15 = vshll.u32 %v9020_v34, 16  ;;  %v10936_v61 = vld [vmem:[%s11131_s12 + $0x70] ss:$8 sps:$4 sm:$0xff]   ;;  %v9025_v25 = vld [vmem:[%s11131_s12 + $0x3c] sm:$0x1] }
 0x15f   : > { %v9029_v57 = vcombine.low %v4845_v50, %v4859_v54  ;;  %v4868_v51 = vrot.slane %v4867_v0, 4  ;;  %v4898_v42 = vshll.u32 %v9021_v56, 16  ;;  %v4903_v3 = vshrl.u32 %v9022_v62, 16  ;;  %v9024_v29 = vld [vmem:[%s11131_s12 + $0x38] sm:$0xf] }
 0x160   : > { %v4882_v8 = vrot.slane %v4881_v58, 4  ;;  %v4891_v10 = vrot.slane %v4889_v60, 4  ;;  %v4906_v11 = vshll.u32 %v9022_v62, 16  ;;  %v4912_v12 = vshll.u32 %v9023_v1, 16  ;;  %v9026_v44 = vld [vmem:[%s11131_s12 + $0x40] sm:$0xf] }
 0x161   : > { %v4873_v48 = vsel %vm11166_vm4, %v4868_v51, %v4872_v49  ;;  %v4894_v14 = vrot.slane %v4892_v15, 5  ;;  %v4900_v16 = vrot.slane %v4898_v42, 5  ;;  %v4905_v17 = vrot.slane %v4903_v3, 4  ;;  %v9027_v49 = vld [vmem:[%s11131_s12 + $0x44] sm:$0x1] }
 0x162   : > { %v4887_v33 = vsel %vm11166_vm4, %v4882_v8, %v4886_v53  ;;  %v4914_v21 = vrot.slane %v4912_v12, 5  ;;  %v6483_v23 = vshrl.u32 %v9197_v4, 16  ;;  %v6486_v26 = vshll.u32 %v9197_v4, 16  ;;  %v9201_v54 = vld [vmem:[%s11131_s12 + $0x18] sm:$0xf] }
 0x163   : > { %10212 = vmatmul.mubr.msk.bf16.gmra.mrb[12].mxu1 %vm519_vm1, %v10931_v20  ;;  %v12229_v24 = vcombine.low %v4873_v48, %v4887_v33  ;;  %v6492_v20 = vshll.u32 %v9198_v5, 16  ;;  %v6497_v32 = vshrl.u32 %v9199_v18, 16  ;;  %v6506_v41 = vshll.u32 %v9200_v22, 16  ;;  %v10937_v0 = vld [vmem:[%s11131_s12 + $0x80] ss:$8 sps:$4 sm:$0xff]  }
 0x164   : > { %10118 = vmatmul.mubr.msk.bf16.vlgmr.msra.gmra.mrb[8].mxu0 %vm519_vm1, %v10930_v35  ;;  %10217 = vmatprep.mubr.msk.bf16.mxu1 %vm519_vm1, %v10933_v36  ;;  %v6485_v31 = vrot.slane %v6483_v23, 4  ;;  %v6500_v35 = vshll.u32 %v9199_v18, 16  ;;  %v6488_v38 = vrot.slane %v6486_v26, 5  ;;  %v4917_v2 = vshrl.u32 %v9024_v29, 16  ;;  %v9203_v3 = vld [vmem:[%s11131_s12 + $0x20] sm:$0xf] }
 0x165   : > { %10126 = vmatpush3.bf16.msra.mxu0 %v4970_v19  ;;  %10121 = vmatprep.mubr.msk.bf16.mxu0 %vm519_vm1, %v10932_v6  ;;  %v4908_v19 = vrot.slane %v4906_v11, 5  ;;  %v6494_v40 = vrot.slane %v6492_v20, 5  ;;  %v6499_v43 = vrot.slane %v6497_v32, 4  ;;  %v6508_v47 = vrot.slane %v6506_v41, 5  ;;  %v9204_v4 = vld [vmem:[%s11131_s12 + $0x24] sm:$0x1] }
 0x166   : > { %10813 = vmatprep.subr.msk.bf16.mxu0 %vm532_vm0, %v12179_v63  ;;  %v4895_v63 = vor.u32 %v4894_v14, %v4891_v10  ;;  %v6502_v37 = vrot.slane %v6500_v35, 5  ;;  %v6489_v46 = vor.u32 %v6488_v38, %v6485_v31  ;;  %v4920_v6 = vshll.u32 %v9024_v29, 16  ;;  %v9037_v5 = vld [vmem:[%s11131_s12 + $0x50] sm:$0xf]  ;;  %v9040_v32 = vld [vmem:[%s11131_s12 + $0x5c] sm:$0x1] }
 0x167   : > { %v4909_v9 = vor.u32 %v4908_v19, %v4905_v17  ;;  %v4919_v28 = vrot.slane %v4917_v2, 4  ;;  %v4926_v53 = vshll.u32 %v9025_v25, 16  ;;  %v4931_v58 = vshrl.u32 %v9026_v44, 16 }
 0x168   : > { %v4896_v36 = vrot.slane %v4895_v63, 4  ;;  %v6503_v52 = vor.u32 %v6502_v37, %v6499_v43  ;;  %v6490_v34 = vrot.slane %v6489_v46, 4  ;;  %v4922_v56 = vrot.slane %v4920_v6, 5  ;;  %v9039_v63 = vld [vmem:[%s11131_s12 + $0x58] sm:$0xf] }
 0x169   : > { %v4910_v39 = vrot.slane %v4909_v9, 4  ;;  %v4928_v1 = vrot.slane %v4926_v53, 5  ;;  %v4940_v60 = vshll.u32 %v9027_v49, 16  ;;  %v4933_v42 = vrot.slane %v4931_v58, 4  ;;  %v9206_v43 = vld [vmem:[%s11131_s12 + $0x2c] sm:$0x1] }
 0x16a   : > { %v4901_v45 = vsel %vm11166_vm4, %v4896_v36, %v4900_v16  ;;  %v6504_v62 = vrot.slane %v6503_v52, 4  ;;  %v6495_v51 = vsel %vm11166_vm4, %v6490_v34, %v6494_v40  ;;  %v4923_v15 = vor.u32 %v4922_v56, %v4919_v28  ;;  %v9207_v46 = vld [vmem:[%s11131_s12 + $0x30] sm:$0xf]  ;;  %v9208_v53 = vld [vmem:[%s11131_s12 + $0x34] sm:$0x1] }
 0x16b   : > { %10218 = vmatmul.mubr.msk.bf16.vlgmr.msra.gmra.mrb[8].mxu1 %vm519_vm1, %v10935_v7  ;;  %v4915_v50 = vsel %vm11166_vm4, %v4910_v39, %v4914_v21  ;;  %v6511_v7 = vshrl.u32 %v9201_v54, 16  ;;  %v4942_v11 = vrot.slane %v4940_v60, 5  ;;  %v6514_v12 = vshll.u32 %v9201_v54, 16  ;;  %v9038_v21 = vld [vmem:[%s11131_s12 + $0x54] sm:$0x1] }
 0x16c   : > { %10122 = vmatmul.mubr.msk.bf16.gmra.mrb[12].mxu0 %vm519_vm1, %v10934_v13  ;;  %10221 = vmatprep.mubr.msk.bf16.mxu1 %vm519_vm1, %v10936_v61  ;;  %v9031_v55 = vcombine.low %v4901_v45, %v4915_v50  ;;  %v6509_v8 = vsel %vm11166_vm4, %v6504_v62, %v6508_v47  ;;  %v4924_v48 = vrot.slane %v4923_v15, 4  ;;  %v6525_v33 = vshrl.u32 %v9203_v3, 16  ;;  %v9205_v39 = vld [vmem:[%s11131_s12 + $0x28] sm:$0xf]  ;;  %v9041_v62 = vld [vmem:[%s11131_s12 + $0x60] sm:$0xf] }
 0x16d   : > { %10127 = vmatprep.mubr.msk.bf16.mxu0 %vm519_vm1, %v9029_v57  ;;  %10226 = vmatpush3.bf16.msra.mxu1 %v6620_v59  ;;  %v4934_v57 = vshll.u32 %v9026_v44, 16  ;;  %v9202_v59 = vld [vmem:[%s11131_s12 + $0x1c] sm:$0x1]  ;;  %v9214_v13 = vcombine.low %v6495_v51, %v6509_v8  ;;  %v6513_v14 = vrot.slane %v6511_v7, 4  ;;  %v6516_v18 = vrot.slane %v6514_v12, 5 }
 0x16e   : > { %v6520_v16 = vshll.u32 %v9202_v59, 16  ;;  %v6528_v19 = vshll.u32 %v9203_v3, 16  ;;  %v4929_v22 = vsel %vm11166_vm4, %v4924_v48, %v4928_v1  ;;  %v6534_v61 = vshll.u32 %v9204_v4, 16  ;;  %v9042_v51 = vld [vmem:[%s11131_s12 + $0x64] sm:$0x1] }
 0x16f   : > { %v4936_v10 = vrot.slane %v4934_v57, 5  ;;  %v5062_v26 = vshrl.u32 %v9037_v5, 16  ;;  %v6517_v29 = vor.u32 %v6516_v18, %v6513_v14  ;;  %v6527_v9 = vrot.slane %v6525_v33, 4  ;;  %v9043_v7 = vld [vmem:[%s11131_s12 + $0x68] sm:$0xf] }
 0x170   : > { %v6522_v23 = vrot.slane %v6520_v16, 5  ;;  %v6530_v31 = vrot.slane %v6528_v19, 5  ;;  %v5065_v36 = vshll.u32 %v9037_v5, 16  ;;  %v5071_v38 = vshll.u32 %v9038_v21, 16  ;;  %v9044_v48 = vld [vmem:[%s11131_s12 + $0x6c] sm:$0x1] }
 0x171   : > { %v4937_v17 = vor.u32 %v4936_v10, %v4933_v42  ;;  %v5064_v35 = vrot.slane %v5062_v26, 4  ;;  %v6518_v41 = vrot.slane %v6517_v29, 4  ;;  %v5079_v45 = vshll.u32 %v9039_v63, 16  ;;  %v9209_v21 = vld [vmem:[%s11131_s12 + $0x38] sm:$0xf] }
 0x172   : > { %v6531_v25 = vor.u32 %v6530_v31, %v6527_v9  ;;  %v5067_v44 = vrot.slane %v5065_v36, 5  ;;  %v5073_v2 = vrot.slane %v5071_v38, 5  ;;  %v5085_v50 = vshll.u32 %v9040_v32, 16  ;;  %v9210_v26 = vld [vmem:[%s11131_s12 + $0x3c] sm:$0x1] }
 0x173   : > { %10222 = vmatmul.mubr.msk.bf16.gmra.mrb[12].mxu1 %vm519_vm1, %v10937_v0  ;;  %v4938_v20 = vrot.slane %v4937_v17, 4  ;;  %v6523_v47 = vsel %vm11166_vm4, %v6518_v41, %v6522_v23  ;;  %v5081_v28 = vrot.slane %v5079_v45, 5  ;;  %v6539_v54 = vshrl.u32 %v9205_v39, 16  ;;  %v9212_v41 = vld [vmem:[%s11131_s12 + $0x44] sm:$0x1] }
 0x174   : > { %10128 = vmatmul.mubr.msk.bf16.vlgmr.msra.gmra.mrb[8].mxu0 %vm519_vm1, %v12229_v24  ;;  %10227 = vmatprep.mubr.msk.bf16.mxu1 %vm519_vm1, %v9214_v13  ;;  %v6536_v24 = vrot.slane %v6534_v61, 5  ;;  %v6532_v49 = vrot.slane %v6531_v25, 4  ;;  %v5068_v52 = vor.u32 %v5067_v44, %v5064_v35  ;;  %v6542_v0 = vshll.u32 %v9205_v39, 16 }
 0x175   : > { %10136 = vmatpush3.bf16.msra.mxu0 %v12188_v27  ;;  %10131 = vmatprep.mubr.msk.bf16.mxu0 %vm519_vm1, %v9031_v55  ;;  %v4943_v40 = vsel %vm11166_vm4, %v4938_v20, %v4942_v11  ;;  %v5076_v27 = vshrl.u32 %v9039_v63, 16  ;;  %v5087_v34 = vrot.slane %v5085_v50, 5  ;;  %v6548_v56 = vshll.u32 %v9206_v43, 16  ;;  %v9047_v50 = vld [vmem:[%s11131_s12 + $0x78] sm:$0xf] }
 0x176   : > { %v9032_v37 = vcombine.low %v4929_v22, %v4943_v40  ;;  %v6537_v55 = vsel %vm11166_vm4, %v6532_v49, %v6536_v24  ;;  %v6553_v58 = vshrl.u32 %v9207_v46, 16  ;;  %v5069_v57 = vrot.slane %v5068_v52, 4  ;;  %v9211_v24 = vld [vmem:[%s11131_s12 + $0x40] sm:$0xf] }
 0x177   : > { %v5078_v6 = vrot.slane %v5076_v27, 4  ;;  %v9215_v1 = vcombine.low %v6523_v47, %v6537_v55  ;;  %v6541_v59 = vrot.slane %v6539_v54, 4  ;;  %v6544_v15 = vrot.slane %v6542_v0, 5 }
 0x178   : > { %v6550_v42 = vrot.slane %v6548_v56, 5  ;;  %v6555_v3 = vrot.slane %v6553_v58, 4  ;;  %v6556_v4 = vshll.u32 %v9207_v46, 16  ;;  %v5074_v8 = vsel %vm11166_vm4, %v5069_v57, %v5073_v2  ;;  %v9045_v2 = vld [vmem:[%s11131_s12 + $0x70] sm:$0xf] }
 0x179   : > { %v5082_v60 = vor.u32 %v5081_v28, %v5078_v6  ;;  %v6562_v11 = vshll.u32 %v9208_v53, 16  ;;  %v5090_v12 = vshrl.u32 %v9041_v62, 16  ;;  %v6545_v5 = vor.u32 %v6544_v15, %v6541_v59  ;;  %v9046_v6 = vld [vmem:[%s11131_s12 + $0x74] sm:$0x1] }
 0x17a   : > { %v6558_v13 = vrot.slane %v6556_v4, 5  ;;  %v5093_v14 = vshll.u32 %v9041_v62, 16  ;;  %v5099_v16 = vshll.u32 %v9042_v51, 16  ;;  %v5104_v19 = vshrl.u32 %v9043_v7, 16 }
 0x17b   : > { %10228 = vmatmul.mubr.msk.bf16.vlgmr.msra.gmra.mrb[8].mxu1 %vm519_vm1, %v9215_v1  ;;  %v5083_v10 = vrot.slane %v5082_v60, 4  ;;  %v6564_v18 = vrot.slane %v6562_v11, 5  ;;  %v5092_v33 = vrot.slane %v5090_v12, 4  ;;  %v6546_v23 = vrot.slane %v6545_v5, 4  ;;  %v9048_v1 = vld [vmem:[%s11131_s12 + $0x7c] sm:$0x1] }
 0x17c   : > { %10132 = vmatmul.mubr.msk.bf16.gmra.mrb[12].mxu0 %vm519_vm1, %v9032_v37  ;;  %v6559_v61 = vor.u32 %v6558_v13, %v6555_v3  ;;  %v5095_v63 = vrot.slane %v5093_v14, 5  ;;  %v5101_v20 = vrot.slane %v5099_v16, 5  ;;  %v5106_v29 = vrot.slane %v5104_v19, 4  ;;  %v9049_v3 = vld [vmem:[%s11131_s12 + $0x80] sm:$0xf] }
 0x17d   : > { %v5088_v17 = vsel %vm11166_vm4, %v5083_v10, %v5087_v34  ;;  %v5107_v9 = vshll.u32 %v9043_v7, 16  ;;  %v5113_v31 = vshll.u32 %v9044_v48, 16  ;;  %v6551_v32 = vsel %vm11166_vm4, %v6546_v23, %v6550_v42  ;;  %v9050_v11 = vld [vmem:[%s11131_s12 + $0x84] sm:$0x1]  ;;  %v9051_v12 = vld [vmem:[%s11131_s12 + $0x88] sm:$0xf] }
 0x17e   : > { %v9054_v22 = vcombine.low %v5074_v8, %v5088_v17  ;;  %v6560_v35 = vrot.slane %v6559_v61, 4  ;;  %v5096_v36 = vor.u32 %v5095_v63, %v5092_v33  ;;  %v6567_v38 = vshrl.u32 %v9209_v21, 16 }
 0x17f   : > { %v5109_v40 = vrot.slane %v5107_v9, 5  ;;  %v6570_v25 = vshll.u32 %v9209_v21, 16  ;;  %v6576_v27 = vshll.u32 %v9210_v26, 16  ;;  %v6581_v44 = vshrl.u32 %v9211_v24, 16 }
 0x180   : > { %10137 = vmatprep.mubr.msk.bf16.mxu0 %vm519_vm1, %v9054_v22  ;;  %v6565_v39 = vsel %vm11166_vm4, %v6560_v35, %v6564_v18  ;;  %v5097_v43 = vrot.slane %v5096_v36, 4  ;;  %v6569_v37 = vrot.slane %v6567_v38, 4  ;;  %v5115_v47 = vrot.slane %v5113_v31, 5  ;;  %v9052_v22 = vld [vmem:[%s11131_s12 + $0x8c] sm:$0x1] }
 0x181   : > { %v9216_v45 = vcombine.low %v6551_v32, %v6565_v39  ;;  %v5110_v46 = vor.u32 %v5109_v40, %v5106_v29  ;;  %v6572_v49 = vrot.slane %v6570_v25, 5  ;;  %v6583_v28 = vrot.slane %v6581_v44, 4 }
 0x182   : > { %v5102_v52 = vsel %vm11166_vm4, %v5097_v43, %v5101_v20  ;;  %v6584_v53 = vshll.u32 %v9211_v24, 16  ;;  %v6590_v54 = vshll.u32 %v9212_v41, 16  ;;  %v5118_v34 = vshrl.u32 %v9045_v2, 16 }
 0x183   : > { %10231 = vmatprep.mubr.msk.bf16.mxu1 %vm519_vm1, %v9216_v45  ;;  %v5111_v0 = vrot.slane %v5110_v46, 4  ;;  %v6573_v55 = vor.u32 %v6572_v49, %v6569_v37  ;;  %v5121_v56 = vshll.u32 %v9045_v2, 16  ;;  %v6578_v58 = vrot.slane %v6576_v27, 5 }
 0x184   : > { %v6586_v62 = vrot.slane %v6584_v53, 5  ;;  %v5127_v57 = vshll.u32 %v9046_v6, 16  ;;  %v5132_v60 = vshrl.u32 %v9047_v50, 16  ;;  %v5120_v15 = vrot.slane %v5118_v34, 4 }
 0x185   : > { %v5116_v59 = vsel %vm11166_vm4, %v5111_v0, %v5115_v47  ;;  %v6574_v51 = vrot.slane %v6573_v55, 4  ;;  %v5123_v42 = vrot.slane %v5121_v56, 5  ;;  %v6592_v8 = vrot.slane %v6590_v54, 5 }
 0x186   : > { %v9055_v4 = vcombine.low %v5102_v52, %v5116_v59  ;;  %v6587_v7 = vor.u32 %v6586_v62, %v6583_v28  ;;  %v5129_v10 = vrot.slane %v5127_v57, 5  ;;  %v5134_v13 = vrot.slane %v5132_v60, 4 }
 0x187   : > { %v5124_v5 = vor.u32 %v5123_v42, %v5120_v15  ;;  %v5135_v48 = vshll.u32 %v9047_v50, 16  ;;  %v5141_v14 = vshll.u32 %v9048_v1, 16  ;;  %v6579_v16 = vsel %vm11166_vm4, %v6574_v51, %v6578_v58 }
 0x188   : > { %10138 = vmatmul.mubr.msk.bf16.vlgmr.msra.gmra.mrb[8].mxu0 %vm519_vm1, %v9055_v4  ;;  %v6588_v17 = vrot.slane %v6587_v7, 4  ;;  %v5146_v18 = vshrl.u32 %v9049_v3, 16  ;;  %v5149_v33 = vshll.u32 %v9049_v3, 16  ;;  %v5155_v23 = vshll.u32 %v9050_v11, 16 }
 0x189   : > { %v5125_v19 = vrot.slane %v5124_v5, 4  ;;  %v5137_v21 = vrot.slane %v5135_v48, 5  ;;  %v5160_v61 = vshrl.u32 %v9051_v12, 16  ;;  %v5143_v31 = vrot.slane %v5141_v14, 5 }
 0x18a   : > { %v6593_v63 = vsel %vm11166_vm4, %v6588_v17, %v6592_v8  ;;  %v5148_v26 = vrot.slane %v5146_v18, 4  ;;  %v5151_v20 = vrot.slane %v5149_v33, 5  ;;  %v5163_v35 = vshll.u32 %v9051_v12, 16 }
 0x18b   : > { %v9217_v29 = vcombine.low %v6579_v16, %v6593_v63  ;;  %v5138_v9 = vor.u32 %v5137_v21, %v5134_v13  ;;  %v5162_v32 = vrot.slane %v5160_v61, 4  ;;  %v5169_v36 = vshll.u32 %v9052_v22, 16 }
 0x18c   : > { %v5152_v24 = vor.u32 %v5151_v20, %v5148_v26  ;;  %v5130_v38 = vsel %vm11166_vm4, %v5125_v19, %v5129_v10  ;;  %v5157_v41 = vrot.slane %v5155_v23, 5  ;;  %v5165_v27 = vrot.slane %v5163_v35, 5 }
 0x18d   : > { %10232 = vmatmul.mubr.msk.bf16.gmra.mrb[12].mxu1 %vm519_vm1, %v9217_v29  ;;  %v5139_v40 = vrot.slane %v5138_v9, 4  ;;  %v5171_v45 = vrot.slane %v5169_v36, 5 }
 0x18e   : > { %v5153_v25 = vrot.slane %v5152_v24, 4  ;;  %v5166_v2 = vor.u32 %v5165_v27, %v5162_v32 }
 0x18f   : > { %v5144_v43 = vsel %vm11166_vm4, %v5139_v40, %v5143_v31 }
 0x190   : > { %v9056_v44 = vcombine.low %v5130_v38, %v5144_v43  ;;  %v5158_v47 = vsel %vm11166_vm4, %v5153_v25, %v5157_v41  ;;  %v5167_v6 = vrot.slane %v5166_v2, 4 }
 0x192   : > { %10141 = vmatprep.mubr.msk.bf16.mxu0 %vm519_vm1, %v9056_v44  ;;  %v5172_v53 = vsel %vm11166_vm4, %v5167_v6, %v5171_v45 }
 0x193   : > { %v10049_v39 = vpop.f32.mrb[0].mxu1  ;;  %v9057_v34 = vcombine.low %v5158_v47, %v5172_v53 }
 0x194   : > { %8872 = vst [vmem:[%s11948_s8 + $0xc0] sm:$0xff] %v10049_v39  ;;  %v3475_v37 = vpop.f32.mrb[1].mxu1  ;;  %v3543_v54 = vmul.f32 %v10049_v39, %v10049_v39 }
 0x195   : > { %8870 = vst [vmem:[%s11948_s8 + $0xa0] sm:$0xff] %v3475_v37  ;;  %v10050_v46 = vpop.f32.mrb[2].mxu1  ;;  %v3541_v50 = vmul.f32 %v3475_v37, %v3475_v37  ;;  %10142 = vmatmul.mubr.msk.bf16.gmra.mrb[12].mxu0 %vm519_vm1, %v9057_v34  ;;  %v2101_v34 = vld [vmem:[#allocation3] sm:$0x1] }
 0x196   : > { %8873 = vst [vmem:[%s11948_s8 + $0xd0] sm:$0xff] %v10050_v46  ;;  %v3478_v49 = vpop.f32.mrb[3].mxu1  ;;  %v3544_v56 = vmul.f32 %v10050_v46, %v10050_v46 }
 0x197   : > { %8871 = vst [vmem:[%s11948_s8 + $0xb0] sm:$0xff] %v3478_v49  ;;  %v3525_v52 = vadd.f32 %v3478_v49, %v3475_v37  ;;  %v3542_v28 = vmul.f32 %v3478_v49, %v3478_v49 }
 0x199   : > { %v3526_v0 = vadd.f32 %v10049_v39, %v3525_v52  ;;  %v3549_v55 = vadd.f32 %v3542_v28, %v3541_v50 }
 0x19b   : > { %v3550_v58 = vadd.f32 %v3549_v55, %v3543_v54  ;;  %v3527_v62 = vadd.f32 %v10050_v46, %v3526_v0 }
 0x19d   : > { %v3551_v1 = vadd.f32 %v3550_v58, %v3544_v56 }
 0x1a0   : > { %v9959_v57 = vpop.f32.mrb[0].mxu0 }
 0x1a1   : > { %8686 = vst [vmem:[%s11948_s8 + $0x31] sm:$0xff] %v9959_v57  ;;  %v2052_v60 = vpop.f32.mrb[1].mxu0  ;;  %v2120_v4 = vmul.f32 %v9959_v57, %v9959_v57 }
 0x1a2   : > { %8684 = vst [vmem:[%s11948_s8 + $0x11] sm:$0xff] %v2052_v60  ;;  %v9960_v30 = vpop.f32.mrb[2].mxu0  ;;  %v2118_v51 = vmul.f32 %v2052_v60, %v2052_v60 }
 0x1a3   : > { %8687 = vst [vmem:[%s11948_s8 + $0x41] sm:$0xff] %v9960_v30  ;;  %v2055_v59 = vpop.f32.mrb[3].mxu0  ;;  %v2121_v13 = vmul.f32 %v9960_v30, %v9960_v30 }
 0x1a4   : > { %8685 = vst [vmem:[%s11948_s8 + $0x21] sm:$0xff] %v2055_v59  ;;  %v2102_v15 = vadd.f32 %v2055_v59, %v2052_v60  ;;  %v2119_v42 = vmul.f32 %v2055_v59, %v2055_v59 }
 0x1a5   : > { %v10053_v3 = vpop.f32.mrb[4].mxu1 }
 0x1a6   : > { %8876 = vst [vmem:[%s11948_s8 + $0x100] sm:$0xff] %v10053_v3  ;;  %v3491_v7 = vpop.f32.mrb[5].mxu1  ;;  %v2103_v8 = vadd.f32 %v9959_v57, %v2102_v15  ;;  %v2126_v10 = vadd.f32 %v2119_v42, %v2118_v51  ;;  %v3547_v21 = vmul.f32 %v10053_v3, %v10053_v3 }
 0x1a7   : > { %8874 = vst [vmem:[%s11948_s8 + $0xe0] sm:$0xff] %v3491_v7  ;;  %v3528_v11 = vadd.f32 %v3527_v62, %v3491_v7  ;;  %v3545_v12 = vmul.f32 %v3491_v7, %v3491_v7  ;;  %v10054_v5 = vpop.f32.mrb[6].mxu1 }
 0x1a8   : > { %8877 = vst [vmem:[%s11948_s8 + $0x110] sm:$0xff] %v10054_v5  ;;  %v2127_v48 = vadd.f32 %v2126_v10, %v2120_v4  ;;  %v3494_v14 = vpop.f32.mrb[7].mxu1  ;;  %v2104_v16 = vadd.f32 %v9960_v30, %v2103_v8  ;;  %v3548_v61 = vmul.f32 %v10054_v5, %v10054_v5  ;;  %v2117_v30 = vld [vmem:[#allocation4] sm:$0x1] }
 0x1a9   : > { %v3552_v17 = vadd.f32 %v3551_v1, %v3545_v12  ;;  %8875 = vst [vmem:[%s11948_s8 + $0xf0] sm:$0xff] %v3494_v14  ;;  %v3529_v18 = vadd.f32 %v3528_v11, %v3494_v14  ;;  %v3546_v33 = vmul.f32 %v3494_v14, %v3494_v14 }
 0x1aa   : > { %v2128_v19 = vadd.f32 %v2127_v48, %v2121_v13 }
 0x1ab   : > { %v3530_v22 = vadd.f32 %v10053_v3, %v3529_v18  ;;  %v3553_v23 = vadd.f32 %v3552_v17, %v3546_v33 }
 0x1ad   : > { %v3531_v63 = vadd.f32 %v10054_v5, %v3530_v22  ;;  %v3554_v26 = vadd.f32 %v3553_v23, %v3547_v21 }
 0x1af   : > { %v3555_v20 = vadd.f32 %v3554_v26, %v3548_v61  ;;  %v9963_v29 = vpop.f32.mrb[4].mxu0  ;;  %v3532_v44 = vrot.slane %v3531_v63, 4 }
 0x1b0   : > { %8690 = vst [vmem:[%s11948_s8 + $0x71] sm:$0xff] %v9963_v29  ;;  %v2068_v9 = vpop.f32.mrb[5].mxu0  ;;  %v2124_v25 = vmul.f32 %v9963_v29, %v9963_v29 }
 0x1b1   : > { %8688 = vst [vmem:[%s11948_s8 + $0x51] sm:$0xff] %v2068_v9  ;;  %v2105_v31 = vadd.f32 %v2104_v16, %v2068_v9  ;;  %v2122_v24 = vmul.f32 %v2068_v9, %v2068_v9  ;;  %v9964_v32 = vpop.f32.mrb[6].mxu0  ;;  %v3556_v47 = vrot.slane %v3555_v20, 4  ;;  %v3533_v6 = vadd.f32 %v3532_v44, %v3531_v63 }
 0x1b2   : > { %8691 = vst [vmem:[%s11948_s8 + $0x81] sm:$0xff] %v9964_v32  ;;  %v2071_v35 = vpop.f32.mrb[7].mxu0  ;;  %v2125_v43 = vmul.f32 %v9964_v32, %v9964_v32 }
 0x1b3   : > { %v2129_v36 = vadd.f32 %v2128_v19, %v2122_v24  ;;  %8689 = vst [vmem:[%s11948_s8 + $0x61] sm:$0xff] %v2071_v35  ;;  %v2106_v38 = vadd.f32 %v2105_v31, %v2071_v35  ;;  %v2123_v40 = vmul.f32 %v2071_v35, %v2071_v35  ;;  %v3557_v53 = vadd.f32 %v3556_v47, %v3555_v20 }
 0x1b4   : > { %v3534_v0 = vrot.slane %v3533_v6, 2 }
 0x1b5   : > { %v2107_v41 = vadd.f32 %v9963_v29, %v2106_v38  ;;  %v2130_v27 = vadd.f32 %v2129_v36, %v2123_v40  ;;  %v3558_v62 = vrot.slane %v3557_v53, 2 }
 0x1b6   : > { %v3535_v57 = vadd.f32 %v3534_v0, %v3533_v6 }
 0x1b7   : > { %v2108_v39 = vadd.f32 %v9964_v32, %v2107_v41  ;;  %v2131_v37 = vadd.f32 %v2130_v27, %v2124_v25  ;;  %v3559_v51 = vadd.f32 %v3558_v62, %v3557_v53 }
 0x1b8   : > { %v3536_v42 = vrot.slane %v3535_v57, 1 }
 0x1b9   : > { %v2109_v2 = vrot.slane %v2108_v39, 4  ;;  %v2132_v45 = vadd.f32 %v2131_v37, %v2125_v43  ;;  %v3560_v3 = vrot.slane %v3559_v51, 1 }
 0x1ba   : > { %v3537_v4 = vadd.f32 %v3536_v42, %v3535_v57 }
 0x1bb   : > { %v2110_v46 = vadd.f32 %v2109_v2, %v2108_v39  ;;  %v2133_v49 = vrot.slane %v2132_v45, 4  ;;  %v3561_v10 = vadd.f32 %v3560_v3, %v3559_v51 }
 0x1bd   : > { %v2111_v50 = vrot.slane %v2110_v46, 2  ;;  %v2134_v52 = vadd.f32 %v2133_v49, %v2132_v45 }
 0x1bf   : > { %v2112_v28 = vadd.f32 %v2111_v50, %v2110_v46  ;;  %v2135_v54 = vrot.slane %v2134_v52, 2 }
 0x1c1   : > { %v2113_v55 = vrot.slane %v2112_v28, 1  ;;  %v2136_v56 = vadd.f32 %v2135_v54, %v2134_v52 }
 0x1c3   : > { %v2114_v58 = vadd.f32 %v2113_v55, %v2112_v28  ;;  %v2137_v1 = vrot.slane %v2136_v56, 1 }
 0x1c5   : > { %v2115_v60 = vadd.f32 %v2114_v58, %v2101_v34  ;;  %v2138_v59 = vadd.f32 %v2137_v1, %v2136_v56 }
 0x1c7   : > { %2116 = vst [vmem:[#allocation3] sm:$0x1] %v2115_v60  ;;  %v2139_v15 = vadd.f32 %v2138_v59, %v2117_v30 }
 0x1c9   : > { %2140 = vst [vmem:[#allocation4] sm:$0x1] %v2139_v15 }
 0x1ce   : > { %v3524_v7 = vld [vmem:[#allocation3] sm:$0x1] }
 0x1cf   : > { %v3538_v8 = vadd.f32 %v3537_v4, %v3524_v7 }
 0x1d0   : > { %v3540_v11 = vld [vmem:[#allocation4] sm:$0x1] }
 0x1d1   : > { %3539 = vst [vmem:[#allocation3] sm:$0x1] %v3538_v8  ;;  %v3562_v12 = vadd.f32 %v3561_v10, %v3540_v11 }
 0x1d3   : > { %3563 = vst [vmem:[#allocation4] sm:$0x1] %v3562_v12 }
 0x24e   : > { %v10229_v5 = vpop.f32.mrb[8].mxu1 }
 0x24f   : > { %9224 = vst [vmem:[%s11948_s8 + $0x1d0] sm:$0xff] %v10229_v5  ;;  %v6656_v13 = vpop.f32.mrb[9].mxu1  ;;  %v6722_v33 = vmul.f32 %v10229_v5, %v10229_v5 }
 0x250   : > { %9222 = vst [vmem:[%s11948_s8 + $0x1b0] sm:$0xff] %v6656_v13  ;;  %v10230_v48 = vpop.f32.mrb[10].mxu1  ;;  %v6720_v16 = vmul.f32 %v6656_v13, %v6656_v13 }
 0x251   : > { %9225 = vst [vmem:[%s11948_s8 + $0x1e0] sm:$0xff] %v10230_v48  ;;  %v6659_v14 = vpop.f32.mrb[11].mxu1  ;;  %v6723_v22 = vmul.f32 %v10230_v48, %v10230_v48 }
 0x252   : > { %9223 = vst [vmem:[%s11948_s8 + $0x1c0] sm:$0xff] %v6659_v14  ;;  %v6704_v17 = vadd.f32 %v6659_v14, %v6656_v13  ;;  %v6721_v18 = vmul.f32 %v6659_v14, %v6659_v14 }
 0x254   : > { %v6705_v19 = vadd.f32 %v10229_v5, %v6704_v17  ;;  %v6728_v21 = vadd.f32 %v6721_v18, %v6720_v16 }
 0x256   : > { %v6729_v23 = vadd.f32 %v6728_v21, %v6722_v33  ;;  %v6706_v61 = vadd.f32 %v10230_v48, %v6705_v19 }
 0x258   : > { %v6730_v63 = vadd.f32 %v6729_v23, %v6723_v22 }
 0x25b   : > { %v10139_v26 = vpop.f32.mrb[8].mxu0 }
 0x25c   : > { %9064 = vst [vmem:[%s11948_s8 + $0x141] sm:$0xff] %v10139_v26  ;;  %v5235_v20 = vpop.f32.mrb[9].mxu0  ;;  %v5301_v36 = vmul.f32 %v10139_v26, %v10139_v26 }
 0x25d   : > { %9062 = vst [vmem:[%s11948_s8 + $0x121] sm:$0xff] %v5235_v20  ;;  %v10140_v29 = vpop.f32.mrb[10].mxu0  ;;  %v5299_v31 = vmul.f32 %v5235_v20, %v5235_v20 }
 0x25e   : > { %9065 = vst [vmem:[%s11948_s8 + $0x151] sm:$0xff] %v10140_v29  ;;  %v5238_v9 = vpop.f32.mrb[11].mxu0  ;;  %v5302_v43 = vmul.f32 %v10140_v29, %v10140_v29 }
 0x25f   : > { %9063 = vst [vmem:[%s11948_s8 + $0x131] sm:$0xff] %v5238_v9  ;;  %v5283_v24 = vadd.f32 %v5238_v9, %v5235_v20  ;;  %v5300_v32 = vmul.f32 %v5238_v9, %v5238_v9  ;;  %v5298_v9 = vld [vmem:[#allocation4] sm:$0x1] }
 0x260   : > { %v10233_v35 = vpop.f32.mrb[12].mxu1 }
 0x261   : > { %9228 = vst [vmem:[%s11948_s8 + $0x210] sm:$0xff] %v10233_v35  ;;  %v6672_v38 = vpop.f32.mrb[13].mxu1  ;;  %v5284_v40 = vadd.f32 %v10139_v26, %v5283_v24  ;;  %v5307_v41 = vadd.f32 %v5300_v32, %v5299_v31  ;;  %v6726_v6 = vmul.f32 %v10233_v35, %v10233_v35 }
 0x262   : > { %9226 = vst [vmem:[%s11948_s8 + $0x1f0] sm:$0xff] %v6672_v38  ;;  %v6707_v25 = vadd.f32 %v6706_v61, %v6672_v38  ;;  %v6724_v27 = vmul.f32 %v6672_v38, %v6672_v38  ;;  %v10234_v39 = vpop.f32.mrb[14].mxu1  ;;  %v5282_v61 = vld [vmem:[#allocation3] sm:$0x1] }
 0x263   : > { %9229 = vst [vmem:[%s11948_s8 + $0x220] sm:$0xff] %v10234_v39  ;;  %v5308_v37 = vadd.f32 %v5307_v41, %v5301_v36  ;;  %v6675_v44 = vpop.f32.mrb[15].mxu1  ;;  %v5285_v2 = vadd.f32 %v10140_v29, %v5284_v40  ;;  %v6727_v28 = vmul.f32 %v10234_v39, %v10234_v39 }
 0x264   : > { %v6731_v45 = vadd.f32 %v6730_v63, %v6724_v27  ;;  %9227 = vst [vmem:[%s11948_s8 + $0x200] sm:$0xff] %v6675_v44  ;;  %v6708_v46 = vadd.f32 %v6707_v25, %v6675_v44  ;;  %v6725_v47 = vmul.f32 %v6675_v44, %v6675_v44 }
 0x265   : > { %v5309_v49 = vadd.f32 %v5308_v37, %v5302_v43 }
 0x266   : > { %v6709_v50 = vadd.f32 %v10233_v35, %v6708_v46  ;;  %v6732_v52 = vadd.f32 %v6731_v45, %v6725_v47 }
 0x268   : > { %v6710_v53 = vadd.f32 %v10234_v39, %v6709_v50  ;;  %v6733_v54 = vadd.f32 %v6732_v52, %v6726_v6  ;;  %v10143_v55 = vpop.f32.mrb[12].mxu0 }
 0x269   : > { %9068 = vst [vmem:[%s11948_s8 + $0x181] sm:$0xff] %v10143_v55  ;;  %v5251_v34 = vpop.f32.mrb[13].mxu0  ;;  %v5305_v51 = vmul.f32 %v10143_v55, %v10143_v55 }
 0x26a   : > { %v6734_v0 = vadd.f32 %v6733_v54, %v6727_v28  ;;  %9066 = vst [vmem:[%s11948_s8 + $0x161] sm:$0xff] %v5251_v34  ;;  %v5286_v56 = vadd.f32 %v5285_v2, %v5251_v34  ;;  %v5303_v58 = vmul.f32 %v5251_v34, %v5251_v34  ;;  %v10144_v62 = vpop.f32.mrb[14].mxu0  ;;  %v6711_v7 = vrot.slane %v6710_v53, 4 }
 0x26b   : > { %9069 = vst [vmem:[%s11948_s8 + $0x191] sm:$0xff] %v10144_v62  ;;  %v5254_v1 = vpop.f32.mrb[15].mxu0  ;;  %v5306_v3 = vmul.f32 %v10144_v62, %v10144_v62 }
 0x26c   : > { %v5310_v57 = vadd.f32 %v5309_v49, %v5303_v58  ;;  %9067 = vst [vmem:[%s11948_s8 + $0x171] sm:$0xff] %v5254_v1  ;;  %v5287_v60 = vadd.f32 %v5286_v56, %v5254_v1  ;;  %v5304_v30 = vmul.f32 %v5254_v1, %v5254_v1  ;;  %v6735_v12 = vrot.slane %v6734_v0, 4 }
 0x26d   : > { %v6712_v13 = vadd.f32 %v6711_v7, %v6710_v53 }
 0x26e   : > { %v5288_v59 = vadd.f32 %v10143_v55, %v5287_v60  ;;  %v5311_v15 = vadd.f32 %v5310_v57, %v5304_v30  ;;  %v6736_v17 = vadd.f32 %v6735_v12, %v6734_v0 }
 0x26f   : > { %v6713_v33 = vrot.slane %v6712_v13, 2 }
 0x270   : > { %v5289_v42 = vadd.f32 %v10144_v62, %v5288_v59  ;;  %v5312_v4 = vadd.f32 %v5311_v15, %v5305_v51  ;;  %v6737_v23 = vrot.slane %v6736_v17, 2 }
 0x271   : > { %v6714_v26 = vadd.f32 %v6713_v33, %v6712_v13 }
 0x272   : > { %v5290_v8 = vrot.slane %v5289_v42, 4  ;;  %v5313_v10 = vadd.f32 %v5312_v4, %v5306_v3  ;;  %v6738_v31 = vadd.f32 %v6737_v23, %v6736_v17 }
 0x273   : > { %v6715_v32 = vrot.slane %v6714_v26, 1 }
 0x274   : > { %v5291_v11 = vadd.f32 %v5290_v8, %v5289_v42  ;;  %v5314_v5 = vrot.slane %v5313_v10, 4  ;;  %v6739_v35 = vrot.slane %v6738_v31, 1 }
 0x275   : > { %v6716_v36 = vadd.f32 %v6715_v32, %v6714_v26 }
 0x276   : > { %v5292_v48 = vrot.slane %v5291_v11, 2  ;;  %v5315_v14 = vadd.f32 %v5314_v5, %v5313_v10  ;;  %v6740_v41 = vadd.f32 %v6739_v35, %v6738_v31 }
 0x278   : > { %v5293_v16 = vadd.f32 %v5292_v48, %v5291_v11  ;;  %v5316_v18 = vrot.slane %v5315_v14, 2 }
 0x27a   : > { %v5294_v19 = vrot.slane %v5293_v16, 1  ;;  %v5317_v21 = vadd.f32 %v5316_v18, %v5315_v14 }
 0x27c   : > { %v5295_v22 = vadd.f32 %v5294_v19, %v5293_v16  ;;  %v5318_v63 = vrot.slane %v5317_v21, 1 }
 0x27e   : > { %v5296_v20 = vadd.f32 %v5295_v22, %v5282_v61  ;;  %v5319_v29 = vadd.f32 %v5318_v63, %v5317_v21 }
 0x280   : > { %5297 = vst [vmem:[#allocation3] sm:$0x1] %v5296_v20  ;;  %v5320_v24 = vadd.f32 %v5319_v29, %v5298_v9 }
 0x282   : > { %5321 = vst [vmem:[#allocation4] sm:$0x1] %v5320_v24 }
 0x287   : > { %v6703_v38 = vld [vmem:[#allocation3] sm:$0x1] }
 0x288   : > { %v6717_v40 = vadd.f32 %v6716_v36, %v6703_v38 }
 0x289   : > { %v6719_v25 = vld [vmem:[#allocation4] sm:$0x1] }
 0x28a   : > { %6718 = vst [vmem:[#allocation3] sm:$0x1] %v6717_v40  ;;  %v6741_v27 = vadd.f32 %v6740_v41, %v6719_v25 }
 0x28c   : > { %6742 = vst [vmem:[#allocation4] sm:$0x1] %v6741_v27 }
 0x28d PF: > { %p9230_p9 = scmp.ne.s32.totalorder %s11038_s19, 1 }
 0x28e   : > { %v10938_v39 = vld [vmem:[%s12936_s2 + $0x40] sm:$0xff] (!%p9230_p9)   ;;  %v10940_v37 = vld [vmem:[%s12936_s2 + $0x48] sm:$0xff] (!%p9230_p9)   ;;  %v10942_v2 = vld [vmem:[%s12936_s2 + $0x50] sm:$0xff] (!%p9230_p9)   ;;  %v6775_v30 = vlaneseq (!%p9230_p9)  ;;  %s9232_s12 = smul.u32 (!%p9230_p9), 576, %s11034_s18 }
 0x28f   : > { %6746 = sbr.rel (%p9230_p9) target bundleno = 1045 (0x415), region = 52  ;;  %v10939_v43 = vld [vmem:[%s12936_s2 + $0x100] sm:$0xff] (!%p9230_p9)   ;;  %10235 = vmatprep.subr.bf16.mxu1 (!%p9230_p9), %v10938_v39  ;;  %v10941_v44 = vld [vmem:[%s12936_s2 + $0x108] sm:$0xff] (!%p9230_p9)   ;;  %v10943_v45 = vld [vmem:[%s12936_s2 + $0x110] sm:$0xff] (!%p9230_p9)  }
 0x290   : > { %10331 = vmatprep.subr.bf16.mxu0 (!%p9230_p9), %v10939_v43  ;;  %10236 = vmatpush3.bf16.msra.mxu1 (!%p9230_p9), %v10938_v39  ;;  %v10944_v46 = vld [vmem:[%s12936_s2 + $0x58] sm:$0xff] (!%p9230_p9)   ;;  %v10946_v49 = vld [vmem:[%s12936_s2 + $0x60] sm:$0xff] (!%p9230_p9)   ;;  %v10948_v50 = vld [vmem:[%s12936_s2 + $0x68] sm:$0xff] (!%p9230_p9)   ;;  %v6776_v15 = vshrl.u32 (!%p9230_p9), %v6775_v30, 7  ;;  %s12422_s10 = scalar_lea.vmem (!%p9230_p9), [#allocation2], %s9232_s12 }
 0x291   : > { %10332 = vmatpush3.bf16.msra.mxu0 (!%p9230_p9), %v10939_v43  ;;  %10237 = vmatprep.subr.bf16.mxu1 (!%p9230_p9), %v10940_v37  ;;  %v10945_v47 = vld [vmem:[%s12936_s2 + $0x118] sm:$0xff] (!%p9230_p9)   ;;  %v10947_v6 = vld [vmem:[%s12936_s2 + $0x120] sm:$0xff] (!%p9230_p9)   ;;  %v10949_v53 = vld [vmem:[%s12936_s2 + $0x128] sm:$0xff] (!%p9230_p9)  }
 0x292   : > { %10333 = vmatprep.subr.bf16.mxu0 (!%p9230_p9), %v10941_v44  ;;  %v6747_v52 = vld [vmem:[#allocation3] sm:$0x1] (!%p9230_p9)  ;;  %v10950_v34 = vld [vmem:[%s12936_s2 + $0x70] sm:$0xff] (!%p9230_p9)   ;;  %v10952_v62 = vld [vmem:[%s12936_s2 + $0x78] sm:$0xff] (!%p9230_p9)   ;;  %v6777_v3 = vsub.s32 (!%p9230_p9), 0, %v6776_v15 }
 0x293   : > { %v6750_v28 = vld [vmem:[#allocation4] sm:$0x1] (!%p9230_p9)  ;;  %v6749_v54 = vmul.f32 (!%p9230_p9), 0.001953125, %v6747_v52  ;;  %v10951_v56 = vld [vmem:[%s12936_s2 + $0x130] sm:$0xff] (!%p9230_p9)   ;;  %v10953_v57 = vld [vmem:[%s12936_s2 + $0x138] sm:$0xff] (!%p9230_p9)  }
 0x294   : > { %10238 = vmatpush3.bf16.msra.mxu1 (!%p9230_p9), %v10940_v37  ;;  %v6751_v0 = vmul.f32 (!%p9230_p9), 0.001953125, %v6750_v28  ;;  %v12406_v59 = vld [vmem:[%s12936_s2] sm:$0xff] (!%p9230_p9)   ;;  %v9287_v10 = vld [vmem:[%s12422_s10 + $0x1b0] sm:$0xff] (!%p9230_p9) }
 0x295   : > { %10334 = vmatpush3.bf16.msra.mxu0 (!%p9230_p9), %v10941_v44  ;;  %10239 = vmatprep.subr.bf16.mxu1 (!%p9230_p9), %v10942_v2  ;;  %v6752_v55 = vmul.f32 (!%p9230_p9), %v6749_v54, %v6749_v54  ;;  %v12411_v51 = vld [vmem:[%s12936_s2 + $0x140] sm:$0xff] (!%p9230_p9)   ;;  %v9252_v5 = vld [vmem:[%s12422_s10 + $0xb0] sm:$0xff] (!%p9230_p9) }
 0x296   : > { %10335 = vmatprep.subr.bf16.mxu0 %v10943_v45  ;;  %v6755_v42 = vld [vmem:[%s12937_s3] sm:$0x1]  ;;  %v9289_v48 = vld [vmem:[%s12422_s10 + $0x1d0] sm:$0xff] }
 0x297   : > { %v6753_v58 = vsub.f32 %v6751_v0, %v6752_v55  ;;  %v6759_v7 = vld [vmem:[%s12938_s4] sm:$0x1]  ;;  %v9254_v16 = vld [vmem:[%s12422_s10 + $0xd0] sm:$0xff] }
 0x298   : > { %10240 = vmatpush3.bf16.msra.mxu1 %v10942_v2  ;;  %v9251_v8 = vld [vmem:[%s12422_s10 + $0xa0] sm:$0xff]  ;;  %v9291_v19 = vld [vmem:[%s12422_s10 + $0x1f0] sm:$0xff] }
 0x299   : > { %10336 = vmatpush3.bf16.msra.mxu0 %v10943_v45  ;;  %10241 = vmatprep.subr.bf16.mxu1 %v10944_v46  ;;  %v6754_v1 = vmax.f32 %v6753_v58, 0.0  ;;  %v9288_v11 = vld [vmem:[%s12422_s10 + $0x1c0] sm:$0xff]  ;;  %v9256_v26 = vld [vmem:[%s12422_s10 + $0xf0] sm:$0xff] }
 0x29a   : > { %10337 = vmatprep.subr.bf16.mxu0 %v10945_v47  ;;  %v9253_v13 = vld [vmem:[%s12422_s10 + $0xc0] sm:$0xff]  ;;  %v9293_v29 = vld [vmem:[%s12422_s10 + $0x210] sm:$0xff] }
 0x29b   : > { %v6756_v60 = vadd.f32 1e-05, %v6754_v1  ;;  %v9290_v14 = vld [vmem:[%s12422_s10 + $0x1e0] sm:$0xff]  ;;  %v9305_v45 = vld [vmem:[%s12422_s10 + $0x90] sm:$0xff] }
 0x29c   : > { %10242 = vmatpush3.bf16.msra.mxu1 %v10944_v46  ;;  %v9255_v33 = vld [vmem:[%s12422_s10 + $0xe0] sm:$0xff]  ;;  %v9233_v15 = vld [vmem:[%s12422_s10 + $0x11] sm:$0xff] }
 0x29d   : > { %10338 = vmatpush3.bf16.msra.mxu0 %v10945_v47  ;;  %10243 = vmatprep.subr.bf16.mxu1 %v10946_v49  ;;  %11010 = vrsqrt.f32 %v6756_v60  ;;  %v9292_v21 = vld [vmem:[%s12422_s10 + $0x200] sm:$0xff] }
 0x29e   : > { %10339 = vmatprep.subr.bf16.mxu0 %v10947_v6  ;;  %v9257_v20 = vld [vmem:[%s12422_s10 + $0x100] sm:$0xff] }
 0x2a0   : > { %10244 = vmatpush3.bf16.msra.mxu1 %v10946_v49 }
 0x2a1   : > { %10340 = vmatpush3.bf16.msra.mxu0 %v10947_v6  ;;  %10245 = vmatprep.subr.bf16.mxu1 %v10948_v50 }
 0x2a2   : > { %10341 = vmatprep.subr.bf16.mxu0 %v10949_v53 }
 0x2a4   : > { %10246 = vmatpush3.bf16.msra.mxu1 %v10948_v50 }
 0x2a5   : > { %10342 = vmatpush3.bf16.msra.mxu0 %v10949_v53  ;;  %10247 = vmatprep.subr.bf16.mxu1 %v10950_v34 }
 0x2a6   : > { %10343 = vmatprep.subr.bf16.mxu0 %v10951_v56 }
 0x2a7   : > { %v11011_v4 = vpop.eup %11010 }
 0x2a8   : > { %10248 = vmatpush3.bf16.msra.mxu1 %v10950_v34  ;;  %v6758_v12 = vmul.f32 %v11011_v4, %v6755_v42  ;;  %v12474_v34 = vld [vmem:[%s12936_s2 + $0x8] sm:$0xff]  }
 0x2a9   : > { %10344 = vmatpush3.bf16.msra.mxu0 %v10951_v56  ;;  %10249 = vmatprep.subr.bf16.mxu1 %v10952_v62  ;;  %v12479_v56 = vld [vmem:[%s12936_s2 + $0x148] sm:$0xff]  }
 0x2aa   : > { %10345 = vmatprep.subr.bf16.mxu0 %v10953_v57  ;;  %v6760_v17 = vmul.f32 %v6758_v12, %v6749_v54  ;;  %v12432_v18 = vrot.slane %v6758_v12, %v6777_v3 }
 0x2ac   : > { %10250 = vmatpush3.bf16.msra.mxu1 %v10952_v62  ;;  %v6761_v22 = vsub.f32 %v6759_v7, %v6760_v17  ;;  %v6830_v23 = vmul.f32 %v9251_v8, %v12432_v18  ;;  %v6916_v61 = vmul.f32 %v9287_v10, %v12432_v18  ;;  %v6917_v63 = vmul.f32 %v9288_v11, %v12432_v18  ;;  %v9294_v62 = vld [vmem:[%s12422_s10 + $0x220] sm:$0xff] }
 0x2ad   : > { %10346 = vmatpush3.bf16.msra.mxu0 %v10953_v57  ;;  %10259 = vmatprep.subr.bf16.mxu1 %v12406_v59  ;;  %v6831_v9 = vmul.f32 %v9252_v5, %v12432_v18  ;;  %v6832_v31 = vmul.f32 %v9253_v13, %v12432_v18  ;;  %v6918_v24 = vmul.f32 %v9289_v48, %v12432_v18  ;;  %v9269_v8 = vld [vmem:[%s12422_s10 + $0x121] sm:$0xff]  ;;  %v9270_v13 = vld [vmem:[%s12422_s10 + $0x131] sm:$0xff] }
 0x2ae   : > { %10355 = vmatprep.subr.bf16.mxu0 %v12411_v51  ;;  %v6919_v32 = vmul.f32 %v9290_v14, %v12432_v18  ;;  %v12447_v35 = vrot.slane %v6761_v22, %v6777_v3  ;;  %v6833_v36 = vmul.f32 %v9254_v16, %v12432_v18  ;;  %v6834_v38 = vmul.f32 %v9255_v33, %v12432_v18  ;;  %v12513_v48 = vld [vmem:[%s12936_s2 + $0x10] sm:$0xff]  }
 0x2af   : > { %v6920_v40 = vmul.f32 %v9291_v19, %v12432_v18  ;;  %v6921_v41 = vmul.f32 %v9292_v21, %v12432_v18  ;;  %v6835_v25 = vmul.f32 %v9256_v26, %v12432_v18  ;;  %v6836_v27 = vmul.f32 %v9257_v20, %v12432_v18  ;;  %v12518_v14 = vld [vmem:[%s12936_s2 + $0x150] sm:$0xff]   ;;  %v9234_v21 = vld [vmem:[%s12422_s10 + $0x21] sm:$0xff] }
 0x2b0   : > { %v6922_v39 = vmul.f32 %v9293_v29, %v12432_v18  ;;  %v6838_v43 = vadd.f32 %v6830_v23, %v12447_v35  ;;  %v6924_v37 = vadd.f32 %v6916_v61, %v12447_v35  ;;  %v6925_v44 = vadd.f32 %v6917_v63, %v12447_v35  ;;  %v9235_v26 = vld [vmem:[%s12422_s10 + $0x31] sm:$0xff]  ;;  %v9271_v20 = vld [vmem:[%s12422_s10 + $0x141] sm:$0xff] }
 0x2b1   : > { %v6839_v2 = vadd.f32 %v6831_v9, %v12447_v35  ;;  %v6840_v46 = vadd.f32 %v6832_v31, %v12447_v35  ;;  %v6926_v47 = vadd.f32 %v6918_v24, %v12447_v35  ;;  %v6927_v49 = vadd.f32 %v6919_v32, %v12447_v35  ;;  %v9272_v31 = vld [vmem:[%s12422_s10 + $0x151] sm:$0xff] }
 0x2b2   : > { %v6841_v6 = vadd.f32 %v6833_v36, %v12447_v35  ;;  %v12465_v50 = vmax.f32 %v6838_v43, 0.0  ;;  %v6932_v52 = vmax.f32 %v6924_v37, 0.0  ;;  %v6933_v28 = vmax.f32 %v6925_v44, 0.0  ;;  %v9273_v44 = vld [vmem:[%s12422_s10 + $0x161] sm:$0xff] }
 0x2b3   : > { %v12467_v53 = vmax.f32 %v6839_v2, 0.0  ;;  %v12469_v54 = vmax.f32 %v6840_v46, 0.0  ;;  %v6934_v0 = vmax.f32 %v6926_v47, 0.0  ;;  %v6935_v55 = vmax.f32 %v6927_v49, 0.0  ;;  %v10961_v2 = vld [vmem:[%s12936_s2 + $0x158] sm:$0xff]  }
 0x2b4   : > { %v6842_v58 = vadd.f32 %v6834_v38, %v12447_v35  ;;  %9259 = vst [vmem:[%s12422_s10 + $0xa0] sm:$0xff] %v12465_v50  ;;  %v6986_v1 = vpack.c.bf16 %v12465_v50, %v9305_v45  ;;  %9295 = vst [vmem:[%s12422_s10 + $0x1b0] sm:$0xff] %v6932_v52  ;;  %v7541_v57 = vpack.c.bf16 %v6933_v28, %v6932_v52  ;;  %v12490_v60 = vmax.f32 %v6841_v6, 0.0  ;;  %v9274_v6 = vld [vmem:[%s12422_s10 + $0x171] sm:$0xff]  ;;  %v9238_v52 = vld [vmem:[%s12422_s10 + $0x61] sm:$0xff] }
 0x2b5   : > { %9296 = vst [vmem:[%s12422_s10 + $0x1c0] sm:$0xff] %v6933_v28  ;;  %9260 = vst [vmem:[%s12422_s10 + $0xb0] sm:$0xff] %v12467_v53  ;;  %v6928_v30 = vadd.f32 %v6920_v40, %v12447_v35  ;;  %v6987_v42 = vpack.c.bf16 %v12469_v54, %v12467_v53  ;;  %v7542_v3 = vpack.c.bf16 %v6935_v55, %v6934_v0  ;;  %v9236_v40 = vld [vmem:[%s12422_s10 + $0x41] sm:$0xff] }
 0x2b6   : > { %9261 = vst [vmem:[%s12422_s10 + $0xc0] sm:$0xff] %v12469_v54  ;;  %9297 = vst [vmem:[%s12422_s10 + $0x1d0] sm:$0xff] %v6934_v0  ;;  %v12500_v4 = vmax.f32 %v6842_v58, 0.0  ;;  %v6929_v7 = vadd.f32 %v6921_v41, %v12447_v35  ;;  %10251 = vmatprep.mubr.bf16.mxu1 %v6986_v1  ;;  %10347 = vmatprep.mubr.bf16.mxu0 %v7541_v57  ;;  %v6843_v11 = vadd.f32 %v6835_v25, %v12447_v35  ;;  %v9237_v41 = vld [vmem:[%s12422_s10 + $0x51] sm:$0xff] }
 0x2b7   : > { %9298 = vst [vmem:[%s12422_s10 + $0x1e0] sm:$0xff] %v6935_v55  ;;  %9262 = vst [vmem:[%s12422_s10 + $0xd0] sm:$0xff] %v12490_v60  ;;  %v6936_v10 = vmax.f32 %v6928_v30, 0.0  ;;  %v6844_v12 = vadd.f32 %v6836_v27, %v12447_v35  ;;  %v6923_v5 = vmul.f32 %v9294_v62, %v12432_v18  ;;  %10252 = vmatmul.mubr.bf16.vlgmr.msra.gmra.mrb[0].mxu1 %v6987_v42  ;;  %10348 = vmatmul.mubr.bf16.vlgmr.msra.gmra.mrb[0].mxu0 %v7542_v3  ;;  %v12557_v25 = vld [vmem:[%s12936_s2 + $0x18] sm:$0xff]   ;;  %v9275_v30 = vld [vmem:[%s12422_s10 + $0x181] sm:$0xff] }
 0x2b8   : > { %9263 = vst [vmem:[%s12422_s10 + $0xe0] sm:$0xff] %v12500_v4  ;;  %v6988_v16 = vpack.c.bf16 %v12500_v4, %v12490_v60  ;;  %v6937_v17 = vmax.f32 %v6929_v7, 0.0  ;;  %v6930_v33 = vadd.f32 %v6922_v39, %v12447_v35  ;;  %v6780_v19 = vmul.f32 %v9233_v15, %v12432_v18  ;;  %10260 = vmatpush3.bf16.msra.mxu1 %v12406_v59  ;;  %v10962_v15 = vld [vmem:[%s12936_s2 + $0x20] sm:$0xff]  }
 0x2b9   : > { %10356 = vmatpush3.bf16.msra.mxu0 %v12411_v51  ;;  %9299 = vst [vmem:[%s12422_s10 + $0x1f0] sm:$0xff] %v6936_v10  ;;  %v12530_v22 = vmax.f32 %v6843_v11, 0.0  ;;  %v12532_v23 = vmax.f32 %v6844_v12, 0.0  ;;  %v6931_v61 = vadd.f32 %v6923_v5, %v12447_v35  ;;  %v6873_v63 = vmul.f32 %v9269_v8, %v12432_v18  ;;  %10261 = vmatprep.subr.bf16.mxu1 %v12474_v34 }
 0x2ba   : > { %10357 = vmatprep.subr.bf16.mxu0 %v12479_v56  ;;  %9300 = vst [vmem:[%s12422_s10 + $0x200] sm:$0xff] %v6937_v17  ;;  %v7543_v59 = vpack.c.bf16 %v6937_v17, %v6936_v10  ;;  %v6938_v51 = vmax.f32 %v6930_v33, 0.0  ;;  %v6794_v29 = vadd.f32 %v12447_v35, %v6780_v19  ;;  %v6874_v9 = vmul.f32 %v9270_v13, %v12432_v18  ;;  %v9276_v13 = vld [vmem:[%s12422_s10 + $0x191] sm:$0xff]  ;;  %v6949_v19 = vld [vmem:[%s12422_s10] sm:$0xff] }
 0x2bb   : > { %10255 = vmatprep.mubr.bf16.mxu1 %v6988_v16  ;;  %9264 = vst [vmem:[%s12422_s10 + $0xf0] sm:$0xff] %v12530_v22  ;;  %9265 = vst [vmem:[%s12422_s10 + $0x100] sm:$0xff] %v12532_v23  ;;  %v6989_v24 = vpack.c.bf16 %v12532_v23, %v12530_v22  ;;  %v6939_v32 = vmax.f32 %v6931_v61, 0.0  ;;  %v6881_v36 = vadd.f32 %v6873_v63, %v12447_v35 }
 0x2bc   : > { %v6781_v38 = vmul.f32 %v9234_v21, %v12432_v18  ;;  %10351 = vmatprep.mubr.bf16.mxu0 %v7543_v59  ;;  %9301 = vst [vmem:[%s12422_s10 + $0x210] sm:$0xff] %v6938_v51  ;;  %v12560_v27 = vmax.f32 %v6794_v29, 0.0  ;;  %v6882_v39 = vadd.f32 %v6874_v9, %v12447_v35  ;;  %v6782_v43 = vmul.f32 %v9235_v26, %v12432_v18  ;;  %v10964_v26 = vld [vmem:[%s12936_s2 + $0x28] sm:$0xff]  }
 0x2bd   : > { %v6875_v37 = vmul.f32 %v9271_v20, %v12432_v18  ;;  %10262 = vmatpush3.bf16.msra.mxu1 %v12474_v34  ;;  %10358 = vmatpush3.bf16.msra.mxu0 %v12479_v56  ;;  %9302 = vst [vmem:[%s12422_s10 + $0x220] sm:$0xff] %v6939_v32  ;;  %v7544_v45 = vpack.c.bf16 %v6939_v32, %v6938_v51  ;;  %v6889_v46 = vmax.f32 %v6881_v36, 0.0  ;;  %v9239_v56 = vld [vmem:[%s12422_s10 + $0x71] sm:$0xff]  ;;  %v10965_v9 = vld [vmem:[%s12936_s2 + $0x168] sm:$0xff]  }
 0x2be   : > { %v6795_v47 = vadd.f32 %v12447_v35, %v6781_v38  ;;  %v6876_v49 = vmul.f32 %v9272_v31, %v12432_v18  ;;  %10263 = vmatprep.subr.bf16.mxu1 %v12513_v48  ;;  %10359 = vmatprep.subr.bf16.mxu0 %v12518_v14  ;;  %9241 = vst [vmem:[%s12422_s10 + $0x11] sm:$0xff] %v12560_v27  ;;  %v6890_v28 = vmax.f32 %v6882_v39, 0.0 }
 0x2bf   : > { %v6796_v0 = vadd.f32 %v12447_v35, %v6782_v43  ;;  %v12582_v55 = vadd.f32 %v6875_v37, %v12447_v35  ;;  %v6783_v34 = vmul.f32 %v9236_v40, %v12432_v18  ;;  %9277 = vst [vmem:[%s12422_s10 + $0x121] sm:$0xff] %v6889_v46  ;;  %v6784_v1 = vmul.f32 %v9237_v41, %v12432_v18 }
 0x2c0   : > { %v12587_v58 = vmax.f32 %v6795_v47, 0.0  ;;  %v12590_v62 = vadd.f32 %v6876_v49, %v12447_v35  ;;  %v6877_v57 = vmul.f32 %v9273_v44, %v12432_v18  ;;  %10256 = vmatmul.mubr.bf16.gmra.mrb[4].mxu1 %v6989_v24  ;;  %10352 = vmatmul.mubr.bf16.gmra.mrb[4].mxu0 %v7544_v45  ;;  %9278 = vst [vmem:[%s12422_s10 + $0x131] sm:$0xff] %v6890_v28  ;;  %v10967_v47 = vld [vmem:[%s12936_s2 + $0x170] sm:$0xff]   ;;  %v10968_v49 = vld [vmem:[%s12936_s2 + $0x38] sm:$0xff]  }
 0x2c1   : > { %v7691_v42 = vpack.c.bf16 %v6890_v28, %v6889_v46  ;;  %v12599_v3 = vmax.f32 %v6796_v0, 0.0  ;;  %v6891_v7 = vmax.f32 %v12582_v55, 0.0  ;;  %v6797_v8 = vadd.f32 %v12447_v35, %v6783_v34  ;;  %10264 = vmatpush3.bf16.msra.mxu1 %v12513_v48  ;;  %10360 = vmatpush3.bf16.msra.mxu0 %v12518_v14  ;;  %v10963_v48 = vld [vmem:[%s12936_s2 + $0x160] sm:$0xff]   ;;  %v10973_v55 = vld [vmem:[%s12936_s2 + $0x188] sm:$0xff]  }
 0x2c2   : > { %9242 = vst [vmem:[%s12422_s10 + $0x21] sm:$0xff] %v12587_v58  ;;  %v6892_v10 = vmax.f32 %v12590_v62, 0.0  ;;  %v6798_v11 = vadd.f32 %v12447_v35, %v6784_v1  ;;  %v6878_v12 = vmul.f32 %v9274_v6, %v12432_v18  ;;  %v12611_v5 = vadd.f32 %v6877_v57, %v12447_v35  ;;  %10265 = vmatprep.subr.bf16.mxu1 %v12557_v25  ;;  %v10969_v6 = vld [vmem:[%s12936_s2 + $0x178] sm:$0xff]   ;;  %v9240_v0 = vld [vmem:[%s12422_s10 + $0x81] sm:$0xff] }
 0x2c3   : > { %10361 = vmatprep.subr.bf16.mxu0 %v10961_v2  ;;  %9243 = vst [vmem:[%s12422_s10 + $0x31] sm:$0xff] %v12599_v3  ;;  %9279 = vst [vmem:[%s12422_s10 + $0x141] sm:$0xff] %v6891_v7  ;;  %v12623_v14 = vmax.f32 %v6797_v8, 0.0  ;;  %v6785_v16 = vmul.f32 %v9238_v52, %v12432_v18  ;;  %v6786_v17 = vmul.f32 %v9239_v56, %v12432_v18  ;;  %10371 = vmatprep.mubr.bf16.mxu0 %v7691_v42  ;;  %v10970_v52 = vld [vmem:[%s12936_s2 + $0x80] sm:$0xff]  }
 0x2c4   : > { %v6879_v33 = vmul.f32 %v9275_v30, %v12432_v18  ;;  %9280 = vst [vmem:[%s12422_s10 + $0x151] sm:$0xff] %v6892_v10  ;;  %v12632_v21 = vmax.f32 %v6798_v11, 0.0  ;;  %v12635_v61 = vadd.f32 %v6878_v12, %v12447_v35  ;;  %v6893_v63 = vmax.f32 %v12611_v5, 0.0  ;;  %v10971_v1 = vld [vmem:[%s12936_s2 + $0x180] sm:$0xff]   ;;  %v10972_v11 = vld [vmem:[%s12936_s2 + $0x88] sm:$0xff]  }
 0x2c5   : > { %9244 = vst [vmem:[%s12422_s10 + $0x41] sm:$0xff] %v12623_v14  ;;  %v6799_v20 = vadd.f32 %v12447_v35, %v6785_v16  ;;  %v6800_v59 = vadd.f32 %v12447_v35, %v6786_v17  ;;  %v6880_v51 = vmul.f32 %v9276_v13, %v12432_v18  ;;  %10266 = vmatpush3.bf16.msra.mxu1 %v12557_v25  ;;  %v12654_v31 = vld [vmem:[%s12422_s10 + $0x10] sm:$0xff] }
 0x2c6   : > { %v12647_v29 = vadd.f32 %v6879_v33, %v12447_v35  ;;  %10362 = vmatpush3.bf16.msra.mxu0 %v10961_v2  ;;  %9245 = vst [vmem:[%s12422_s10 + $0x51] sm:$0xff] %v12632_v21  ;;  %v6894_v24 = vmax.f32 %v12635_v61, 0.0  ;;  %9281 = vst [vmem:[%s12422_s10 + $0x161] sm:$0xff] %v6893_v63  ;;  %10267 = vmatprep.subr.bf16.mxu1 %v10962_v15  ;;  %v6957_v32 = vpack.c.bf16 %v12654_v31, %v6949_v19  ;;  %v10966_v2 = vld [vmem:[%s12936_s2 + $0x30] sm:$0xff]  }
 0x2c7   : > { %10363 = vmatprep.subr.bf16.mxu0 %v10963_v48  ;;  %v12663_v36 = vmax.f32 %v6799_v20, 0.0  ;;  %v12665_v38 = vmax.f32 %v6800_v59, 0.0  ;;  %v12668_v40 = vadd.f32 %v6880_v51, %v12447_v35  ;;  %v7991_v25 = vpack.c.bf16 %v12467_v53, %v12465_v50  ;;  %v10974_v13 = vld [vmem:[%s12936_s2 + $0x90] sm:$0xff]   ;;  %v10976_v20 = vld [vmem:[%s12936_s2 + $0x98] sm:$0xff]  }
 0x2c8   : > { %9282 = vst [vmem:[%s12422_s10 + $0x171] sm:$0xff] %v6894_v24  ;;  %v6895_v41 = vmax.f32 %v12647_v29, 0.0  ;;  %v7992_v39 = vpack.c.bf16 %v12490_v60, %v12469_v54  ;;  %10275 = vmatprep.mubr.bf16.mxu1 %v6957_v32  ;;  %v7993_v37 = vpack.c.bf16 %v12530_v22, %v12500_v4  ;;  %v8141_v44 = vpack.c.bf16 %v12587_v58, %v12560_v27  ;;  %v9258_v16 = vld [vmem:[%s12422_s10 + $0x110] sm:$0xff]  ;;  %v11005_v54 = vld [vmem:[%s12936_s2 + $0x218] sm:$0xff]   ;;  %v11006_v60 = vld [vmem:[%s12936_s2 + $0x220] sm:$0xff]  }
 0x2c9   : > { %9246 = vst [vmem:[%s12422_s10 + $0x61] sm:$0xff] %v12663_v36  ;;  %9247 = vst [vmem:[%s12422_s10 + $0x71] sm:$0xff] %v12665_v38  ;;  %v6896_v43 = vmax.f32 %v12668_v40, 0.0  ;;  %10268 = vmatpush3.bf16.msra.mxu1 %v10962_v15  ;;  %v8143_v45 = vpack.c.bf16 %v12663_v36, %v12632_v21  ;;  %v8142_v46 = vpack.c.bf16 %v12623_v14, %v12599_v3  ;;  %v12709_v28 = vld [vmem:[%s12422_s10 + $0x20] sm:$0xff]  ;;  %v10975_v33 = vld [vmem:[%s12936_s2 + $0x190] sm:$0xff]  }
 0x2ca   : > { %10364 = vmatpush3.bf16.msra.mxu0 %v10963_v48  ;;  %9283 = vst [vmem:[%s12422_s10 + $0x181] sm:$0xff] %v6895_v41  ;;  %10269 = vmatprep.subr.bf16.mxu1 %v10964_v26  ;;  %v12713_v34 = vld [vmem:[%s12422_s10 + $0x30] sm:$0xff]  ;;  %v6787_v56 = vmul.f32 %v9240_v0, %v12432_v18  ;;  %v7692_v15 = vpack.c.bf16 %v6892_v10, %v6891_v7  ;;  %v11007_v4 = vld [vmem:[%s12936_s2 + $0x228] sm:$0xff]  }
 0x2cb   : > { %10365 = vmatprep.subr.bf16.mxu0 %v10965_v9  ;;  %9284 = vst [vmem:[%s12422_s10 + $0x191] sm:$0xff] %v6896_v43  ;;  %v6958_v30 = vpack.c.bf16 %v12713_v34, %v12709_v28  ;;  %v7693_v7 = vpack.c.bf16 %v6894_v24, %v6893_v63  ;;  %v6837_v5 = vmul.f32 %v9258_v16, %v12432_v18  ;;  %v10979_v24 = vld [vmem:[%s12936_s2 + $0x1a0] sm:$0xff]   ;;  %v10982_v32 = vld [vmem:[%s12936_s2 + $0xb0] sm:$0xff]  }
 0x2cc   : > { %v6801_v57 = vadd.f32 %v12447_v35, %v6787_v56  ;;  %v12727_v42 = vld [vmem:[%s12422_s10 + $0x40] sm:$0xff]  ;;  %v7694_v63 = vpack.c.bf16 %v6896_v43, %v6895_v41  ;;  %v7841_v51 = vpack.c.bf16 %v12709_v28, %v12654_v31  ;;  %v10981_v31 = vld [vmem:[%s12936_s2 + $0x1a8] sm:$0xff]   ;;  %v10983_v40 = vld [vmem:[%s12936_s2 + $0x1b0] sm:$0xff]   ;;  %v7243_v0 = vpack.c.bf16 %v12632_v21, %v12623_v14 }
 0x2cd   : > { %10270 = vmatpush3.bf16.msra.mxu1 %v10964_v26  ;;  %v12730_v8 = vld [vmem:[%s12422_s10 + $0x50] sm:$0xff]  ;;  %v6845_v19 = vadd.f32 %v6837_v5, %v12447_v35  ;;  %v7233_v26 = vld [vmem:[%s12422_s10 + $0x1] sm:$0xff]  ;;  %v10977_v35 = vld [vmem:[%s12936_s2 + $0x198] sm:$0xff]  }
 0x2ce   : > { %10366 = vmatpush3.bf16.msra.mxu0 %v10965_v9  ;;  %10271 = vmatprep.subr.bf16.mxu1 %v10966_v2  ;;  %v6809_v12 = vmax.f32 %v6801_v57, 0.0  ;;  %v6959_v62 = vpack.c.bf16 %v12730_v8, %v12727_v42  ;;  %v7241_v59 = vpack.c.bf16 %v12560_v27, %v7233_v26  ;;  %v10978_v9 = vld [vmem:[%s12936_s2 + $0xa0] sm:$0xff]   ;;  %v10984_v41 = vld [vmem:[%s12936_s2 + $0xb8] sm:$0xff]   ;;  %v10989_v28 = vld [vmem:[%s12936_s2 + $0x1c8] sm:$0xff]  }
 0x2cf   : > { %10367 = vmatprep.subr.bf16.mxu0 %v10967_v47  ;;  %v6853_v18 = vmax.f32 %v6845_v19, 0.0  ;;  %v10985_v43 = vld [vmem:[%s12936_s2 + $0x1b8] sm:$0xff]   ;;  %v10991_v57 = vld [vmem:[%s12936_s2 + $0x1d0] sm:$0xff]   ;;  %v9371_v16 = vld [vmem:[%s12422_s10 + $0x140] sm:$0xff] }
 0x2d0   : > { %9248 = vst [vmem:[%s12422_s10 + $0x81] sm:$0xff] %v6809_v12  ;;  %v12744_v10 = vpack.c.bf16 %v6809_v12, %v12665_v38  ;;  %v12750_v48 = vld [vmem:[%s12422_s10 + $0x60] sm:$0xff]  ;;  %v12754_v17 = vld [vmem:[%s12422_s10 + $0x70] sm:$0xff]  ;;  %v10993_v12 = vld [vmem:[%s12936_s2 + $0x1d8] sm:$0xff]  }
 0x2d1   : > { %10272 = vmatpush3.bf16.msra.mxu1 %v10966_v2  ;;  %v6960_v61 = vpack.c.bf16 %v12754_v17, %v12750_v48  ;;  %9266 = vst [vmem:[%s12422_s10 + $0x110] sm:$0xff] %v6853_v18  ;;  %v12777_v29 = vpack.c.bf16 %v6853_v18, %v12532_v23  ;;  %v10980_v23 = vld [vmem:[%s12936_s2 + $0xa8] sm:$0xff]   ;;  %v10986_v2 = vld [vmem:[%s12936_s2 + $0xc0] sm:$0xff]   ;;  %v10998_v50 = vld [vmem:[%s12936_s2 + $0xf0] sm:$0xff]  }
 0x2d2   : > { %10368 = vmatpush3.bf16.msra.mxu0 %v10967_v47  ;;  %10273 = vmatprep.subr.bf16.mxu1 %v10968_v49  ;;  %v10987_v47 = vld [vmem:[%s12936_s2 + $0x1c0] sm:$0xff]   ;;  %v10999_v53 = vld [vmem:[%s12936_s2 + $0x1f0] sm:$0xff]   ;;  %v11009_v27 = vld [vmem:[%s12936_s2 + $0x238] sm:$0xff]  }
 0x2d3   : > { %10369 = vmatprep.subr.bf16.mxu0 %v10969_v6  ;;  %v11002_v5 = vld [vmem:[%s12936_s2 + $0x200] sm:$0xff]   ;;  %v11008_v22 = vld [vmem:[%s12936_s2 + $0x230] sm:$0xff]  }
 0x2d4   : > { %v9373_v19 = vld [vmem:[%s12422_s10 + $0x160] sm:$0xff] }
 0x2d5   : > { %10274 = vmatpush3.bf16.msra.mxu1 %v10968_v49  ;;  %v7242_v49 = vpack.c.bf16 %v12599_v3, %v12587_v58  ;;  %v9375_v18 = vld [vmem:[%s12422_s10 + $0x180] sm:$0xff] }
 0x2d6   : > { %10370 = vmatpush3.bf16.msra.mxu0 %v10969_v6  ;;  %10283 = vmatprep.subr.bf16.mxu1 %v10970_v52  ;;  %v7842_v6 = vpack.c.bf16 %v12727_v42, %v12713_v34  ;;  %v7843_v34 = vpack.c.bf16 %v12750_v48, %v12730_v8  ;;  %v9369_v42 = vld [vmem:[%s12422_s10 + $0x120] sm:$0xff]  ;;  %v9370_v8 = vld [vmem:[%s12422_s10 + $0x130] sm:$0xff]  ;;  %v11001_v48 = vld [vmem:[%s12936_s2 + $0x1f8] sm:$0xff]  }
 0x2d7   : > { %10379 = vmatprep.subr.bf16.mxu0 %v10971_v1  ;;  %v9472_v56 = vld [vmem:[%s12422_s10 + $0x80] sm:$0xff] }
 0x2d8   : > { %10276 = vmatmul.mubr.bf16.vlgmr.msra.gmra.mrb[0].mxu1 %v6958_v30  ;;  %v7244_v30 = vpack.c.bf16 %v12665_v38, %v12663_v36  ;;  %v10994_v38 = vld [vmem:[%s12936_s2 + $0xe0] sm:$0xff]  }
 0x2d9   : > { %10372 = vmatmul.mubr.bf16.vlgmr.msra.gmra.mrb[0].mxu0 %v7692_v15  ;;  %10284 = vmatpush3.bf16.msra.mxu1 %v10970_v52  ;;  %v10988_v52 = vld [vmem:[%s12936_s2 + $0xc8] sm:$0xff]   ;;  %v7844_v15 = vpack.c.bf16 %v9472_v56, %v12754_v17  ;;  %v9372_v17 = vld [vmem:[%s12422_s10 + $0x150] sm:$0xff] }
 0x2da   : > { %10380 = vmatpush3.bf16.msra.mxu0 %v10971_v1  ;;  %10285 = vmatprep.subr.bf16.mxu1 %v10972_v11  ;;  %v10990_v1 = vld [vmem:[%s12936_s2 + $0xd0] sm:$0xff]  }
 0x2db   : > { %10381 = vmatprep.subr.bf16.mxu0 %v10973_v55  ;;  %10279 = vmatprep.mubr.bf16.mxu1 %v6959_v62  ;;  %v10995_v62 = vld [vmem:[%s12936_s2 + $0x1e0] sm:$0xff]  }
 0x2dc   : > { %10375 = vmatprep.mubr.bf16.mxu0 %v7693_v7  ;;  %v10996_v7 = vld [vmem:[%s12936_s2 + $0xe8] sm:$0xff]  }
 0x2dd   : > { %10286 = vmatpush3.bf16.msra.mxu1 %v10972_v11  ;;  %v10992_v11 = vld [vmem:[%s12936_s2 + $0xd8] sm:$0xff]  }
 0x2de   : > { %10382 = vmatpush3.bf16.msra.mxu0 %v10973_v55  ;;  %10287 = vmatprep.subr.bf16.mxu1 %v10974_v13  ;;  %v7391_v55 = vpack.c.bf16 %v9370_v8, %v9369_v42 }
 0x2df   : > { %10383 = vmatprep.subr.bf16.mxu0 %v10975_v33 }
 0x2e0   : > { %10280 = vmatmul.mubr.bf16.gmra.mrb[4].mxu1 %v6960_v61  ;;  %v9374_v61 = vld [vmem:[%s12422_s10 + $0x170] sm:$0xff] }
 0x2e1   : > { %10376 = vmatmul.mubr.bf16.gmra.mrb[4].mxu0 %v7694_v63  ;;  %10288 = vmatpush3.bf16.msra.mxu1 %v10974_v13  ;;  %v10997_v13 = vld [vmem:[%s12936_s2 + $0x1e8] sm:$0xff]   ;;  %v7393_v26 = vpack.c.bf16 %v9374_v61, %v9373_v19 }
 0x2e2   : > { %10384 = vmatpush3.bf16.msra.mxu0 %v10975_v33  ;;  %10289 = vmatprep.subr.bf16.mxu1 %v10976_v20  ;;  %v7392_v33 = vpack.c.bf16 %v9372_v17, %v9371_v16  ;;  %v11003_v63 = vld [vmem:[%s12936_s2 + $0x208] sm:$0xff]  }
 0x2e3   : > { %10385 = vmatprep.subr.bf16.mxu0 %v10977_v35  ;;  %10299 = vmatprep.mubr.bf16.mxu1 %v7241_v59 }
 0x2e4   : > { %10395 = vmatprep.mubr.bf16.mxu0 %v7841_v51 }
 0x2e5   : > { %10290 = vmatpush3.bf16.msra.mxu1 %v10976_v20  ;;  %v9376_v20 = vld [vmem:[%s12422_s10 + $0x190] sm:$0xff] }
 0x2e6   : > { %10386 = vmatpush3.bf16.msra.mxu0 %v10977_v35  ;;  %10291 = vmatprep.subr.bf16.mxu1 %v10978_v9  ;;  %v11004_v35 = vld [vmem:[%s12936_s2 + $0x210] sm:$0xff]   ;;  %v7394_v59 = vpack.c.bf16 %v9376_v20, %v9375_v18 }
 0x2e7   : > { %10387 = vmatprep.subr.bf16.mxu0 %v10979_v24 }
 0x2e9   : > { %10292 = vmatpush3.bf16.msra.mxu1 %v10978_v9 }
 0x2ea   : > { %10388 = vmatpush3.bf16.msra.mxu0 %v10979_v24  ;;  %10293 = vmatprep.subr.bf16.mxu1 %v10980_v23 }
 0x2eb   : > { %10389 = vmatprep.subr.bf16.mxu0 %v10981_v31 }
 0x2ed   : > { %10294 = vmatpush3.bf16.msra.mxu1 %v10980_v23 }
 0x2ee   : > { %10390 = vmatpush3.bf16.msra.mxu0 %v10981_v31  ;;  %10295 = vmatprep.subr.bf16.mxu1 %v10982_v32 }
 0x2ef   : > { %10391 = vmatprep.subr.bf16.mxu0 %v10983_v40 }
 0x2f1   : > { %10296 = vmatpush3.bf16.msra.mxu1 %v10982_v32 }
 0x2f2   : > { %10392 = vmatpush3.bf16.msra.mxu0 %v10983_v40  ;;  %10297 = vmatprep.subr.bf16.mxu1 %v10984_v41 }
 0x2f3   : > { %10393 = vmatprep.subr.bf16.mxu0 %v10985_v43 }
 0x2f5   : > { %10298 = vmatpush3.bf16.msra.mxu1 %v10984_v41 }
 0x2f6   : > { %10394 = vmatpush3.bf16.msra.mxu0 %v10985_v43  ;;  %10307 = vmatprep.subr.bf16.mxu1 %v10986_v2 }
 0x2f7   : > { %10403 = vmatprep.subr.bf16.mxu0 %v10987_v47 }
 0x2f8   : > { %10300 = vmatmul.mubr.bf16.vlgmr.msra.gmra.mrb[0].mxu1 %v7242_v49 }
 0x2f9   : > { %10396 = vmatmul.mubr.bf16.vlgmr.msra.gmra.mrb[0].mxu0 %v7842_v6  ;;  %10308 = vmatpush3.bf16.msra.mxu1 %v10986_v2 }
 0x2fa   : > { %10404 = vmatpush3.bf16.msra.mxu0 %v10987_v47  ;;  %10309 = vmatprep.subr.bf16.mxu1 %v10988_v52 }
 0x2fb   : > { %10405 = vmatprep.subr.bf16.mxu0 %v10989_v28  ;;  %10303 = vmatprep.mubr.bf16.mxu1 %v7243_v0 }
 0x2fc   : > { %10399 = vmatprep.mubr.bf16.mxu0 %v7843_v34 }
 0x2fd   : > { %10310 = vmatpush3.bf16.msra.mxu1 %v10988_v52 }
 0x2fe   : > { %10406 = vmatpush3.bf16.msra.mxu0 %v10989_v28  ;;  %10311 = vmatprep.subr.bf16.mxu1 %v10990_v1 }
 0x2ff   : > { %10407 = vmatprep.subr.bf16.mxu0 %v10991_v57 }
 0x300   : > { %10304 = vmatmul.mubr.bf16.gmra.mrb[4].mxu1 %v7244_v30 }
 0x301   : > { %10400 = vmatmul.mubr.bf16.gmra.mrb[4].mxu0 %v7844_v15  ;;  %10312 = vmatpush3.bf16.msra.mxu1 %v10990_v1 }
 0x302   : > { %10408 = vmatpush3.bf16.msra.mxu0 %v10991_v57  ;;  %10313 = vmatprep.subr.bf16.mxu1 %v10992_v11 }
 0x303   : > { %10409 = vmatprep.subr.bf16.mxu0 %v10993_v12  ;;  %10323 = vmatprep.mubr.bf16.mxu1 %v7391_v55 }
 0x304   : > { %10419 = vmatprep.mubr.bf16.mxu0 %v7991_v25  ;;  %v11000_v25 = vld [vmem:[%s12936_s2 + $0xf8] sm:$0xff]  }
 0x305   : > { %10314 = vmatpush3.bf16.msra.mxu1 %v10992_v11 }
 0x306   : > { %10410 = vmatpush3.bf16.msra.mxu0 %v10993_v12  ;;  %10315 = vmatprep.subr.bf16.mxu1 %v10994_v38 }
 0x307   : > { %10411 = vmatprep.subr.bf16.mxu0 %v10995_v62 }
 0x309   : > { %10316 = vmatpush3.bf16.msra.mxu1 %v10994_v38 }
 0x30a   : > { %10412 = vmatpush3.bf16.msra.mxu0 %v10995_v62  ;;  %10317 = vmatprep.subr.bf16.mxu1 %v10996_v7 }
 0x30b   : > { %10413 = vmatprep.subr.bf16.mxu0 %v10997_v13 }
 0x30d   : > { %10318 = vmatpush3.bf16.msra.mxu1 %v10996_v7 }
 0x30e   : > { %10414 = vmatpush3.bf16.msra.mxu0 %v10997_v13  ;;  %10319 = vmatprep.subr.bf16.mxu1 %v10998_v50 }
 0x30f   : > { %10415 = vmatprep.subr.bf16.mxu0 %v10999_v53 }
 0x311   : > { %10320 = vmatpush3.bf16.msra.mxu1 %v10998_v50 }
 0x312   : > { %10416 = vmatpush3.bf16.msra.mxu0 %v10999_v53  ;;  %10321 = vmatprep.subr.bf16.mxu1 %v11000_v25 }
 0x313   : > { %10417 = vmatprep.subr.bf16.mxu0 %v11001_v48 }
 0x315   : > { %10322 = vmatpush3.bf16.msra.mxu1 %v11000_v25 }
 0x316   : > { %10418 = vmatpush3.bf16.msra.mxu0 %v11001_v48  ;;  %10707 = vmatprep.subr.bf16.mxu1 %v11002_v5 }
 0x317   : > { %10427 = vmatprep.subr.bf16.mxu0 %v11002_v5 }
 0x318   : > { %10324 = vmatmul.mubr.bf16.vlgmr.msra.gmra.mrb[0].mxu1 %v7392_v33 }
 0x319   : > { %10420 = vmatmul.mubr.bf16.vlgmr.msra.gmra.mrb[0].mxu0 %v7992_v39  ;;  %10715 = vmatpush3.bf16.msra.mxu1 %v11002_v5 }
 0x31a   : > { %10428 = vmatpush3.bf16.msra.mxu0 %v11002_v5  ;;  %10708 = vmatprep.subr.bf16.mxu1 %v11003_v63 }
 0x31b   : > { %10429 = vmatprep.subr.bf16.mxu0 %v11003_v63  ;;  %10327 = vmatprep.mubr.bf16.mxu1 %v7393_v26 }
 0x31c   : > { %10423 = vmatprep.mubr.bf16.mxu0 %v7993_v37 }
 0x31d   : > { %10716 = vmatpush3.bf16.msra.mxu1 %v11003_v63 }
 0x31e   : > { %10430 = vmatpush3.bf16.msra.mxu0 %v11003_v63  ;;  %10709 = vmatprep.subr.bf16.mxu1 %v11004_v35 }
 0x31f   : > { %10431 = vmatprep.subr.bf16.mxu0 %v11004_v35 }
 0x320   : > { %10328 = vmatmul.mubr.bf16.gmra.mrb[4].mxu1 %v7394_v59 }
 0x321   : > { %10424 = vmatmul.mubr.bf16.gmra.mrb[4].mxu0 %v12777_v29  ;;  %10717 = vmatpush3.bf16.msra.mxu1 %v11004_v35 }
 0x322   : > { %10432 = vmatpush3.bf16.msra.mxu0 %v11004_v35  ;;  %10710 = vmatprep.subr.bf16.mxu1 %v11005_v54 }
 0x323   : > { %10433 = vmatprep.subr.bf16.mxu0 %v11005_v54  ;;  %10443 = vmatprep.mubr.bf16.mxu0 %v8141_v44 }
 0x324   : > { %10447 = vmatprep.mubr.bf16.mxu1 %v8143_v45 }
 0x325   : > { %10718 = vmatpush3.bf16.msra.mxu1 %v11005_v54 }
 0x326   : > { %10434 = vmatpush3.bf16.msra.mxu0 %v11005_v54  ;;  %10711 = vmatprep.subr.bf16.mxu1 %v11006_v60 }
 0x327   : > { %10435 = vmatprep.subr.bf16.mxu0 %v11006_v60 }
 0x329   : > { %10719 = vmatpush3.bf16.msra.mxu1 %v11006_v60 }
 0x32a   : > { %10436 = vmatpush3.bf16.msra.mxu0 %v11006_v60  ;;  %10712 = vmatprep.subr.bf16.mxu1 %v11007_v4 }
 0x32b   : > { %10437 = vmatprep.subr.bf16.mxu0 %v11007_v4 }
 0x32d   : > { %10720 = vmatpush3.bf16.msra.mxu1 %v11007_v4 }
 0x32e   : > { %10438 = vmatpush3.bf16.msra.mxu0 %v11007_v4  ;;  %10713 = vmatprep.subr.bf16.mxu1 %v11008_v22 }
 0x32f   : > { %10439 = vmatprep.subr.bf16.mxu0 %v11008_v22 }
 0x331   : > { %10721 = vmatpush3.bf16.msra.mxu1 %v11008_v22 }
 0x332   : > { %10440 = vmatpush3.bf16.msra.mxu0 %v11008_v22  ;;  %10714 = vmatprep.subr.bf16.mxu1 %v11009_v27 }
 0x333   : > { %10441 = vmatprep.subr.bf16.mxu0 %v11009_v27 }
 0x335   : > { %10722 = vmatpush3.bf16.msra.mxu1 %v11009_v27 }
 0x336   : > { %10442 = vmatpush3.bf16.msra.mxu0 %v11009_v27 }
 0x338   : > { %10448 = vmatmul.mubr.bf16.vlgmr.msra.gmra.mrb[8].mxu1 %v12744_v10 }
 0x339   : > { %10444 = vmatmul.mubr.bf16.vlgmr.msra.gmra.mrb[0].mxu0 %v8142_v46 }
 0x3eb   : > { %v10325_v58 = vpop.f32.mrb[0].mxu1 }
 0x3ec   : > { %v7494_v21 = vpop.f32.mrb[1].mxu1 }
 0x3ed   : > { %v10326_v36 = vpop.f32.mrb[2].mxu1 }
 0x3ee   : > { %v7497_v39 = vpop.f32.mrb[3].mxu1 }
 0x3f3   : > { %v10329_v37 = vpop.f32.mrb[4].mxu1 }
 0x3f4   : > { %v10425_v44 = vpop.f32.mrb[4].mxu0  ;;  %v7510_v51 = vpop.f32.mrb[5].mxu1 }
 0x3f5   : > { %v10727_v45 = vadd.f32 %v10425_v44, %v10329_v37  ;;  %v8110_v29 = vpop.f32.mrb[5].mxu0  ;;  %v10330_v24 = vpop.f32.mrb[6].mxu1 }
 0x3f6   : > { %v10729_v9 = vadd.f32 %v8110_v29, %v7510_v51  ;;  %v10426_v23 = vpop.f32.mrb[6].mxu0  ;;  %v7513_v32 = vpop.f32.mrb[7].mxu1 }
 0x3f7   : > { %v10731_v31 = vadd.f32 %v10426_v23, %v10330_v24  ;;  %v8113_v40 = vpop.f32.mrb[7].mxu0 }
 0x3f8   : > { %v10733_v41 = vadd.f32 %v8113_v40, %v7513_v32 }
 0x40b   : > { %v10449_v14 = vpop.f32.mrb[8].mxu1 }
 0x40c   : > { %v10445_v3 = vpop.f32.mrb[0].mxu0  ;;  %v10728_v10 = vadd.f32 %v10727_v45, %v10449_v14  ;;  %v8260_v2 = vpop.f32.mrb[9].mxu1 }
 0x40d   : > { %v10723_v46 = vadd.f32 %v10445_v3, %v10325_v58  ;;  %v8244_v43 = vpop.f32.mrb[1].mxu0  ;;  %v10730_v49 = vadd.f32 %v10729_v9, %v8260_v2  ;;  %v10450_v52 = vpop.f32.mrb[10].mxu1 }
 0x40e   : > { %v10724_v47 = vadd.f32 %v8244_v43, %v7494_v21  ;;  %v10446_v6 = vpop.f32.mrb[2].mxu0  ;;  %v10732_v0 = vadd.f32 %v10731_v31, %v10450_v52  ;;  %v8263_v56 = vpop.f32.mrb[11].mxu1 }
 0x40f   : > { %v10725_v28 = vadd.f32 %v10446_v6, %v10326_v36  ;;  %v8247_v34 = vpop.f32.mrb[3].mxu0  ;;  %v10734_v57 = vadd.f32 %v10733_v41, %v8263_v56 }
 0x410   : > { %v10726_v1 = vadd.f32 %v8247_v34, %v7497_v39  ;;  %v9582_v15 = vpack.c.bf16 %v10732_v0, %v10728_v10 }
 0x411   : > { %v9572_v30 = vpack.c.bf16 %v10725_v28, %v10723_v46  ;;  %v9577_v8 = vpack.c.bf16 %v10734_v57, %v10730_v49 }
 0x412   : > { %v9567_v42 = vpack.c.bf16 %v10726_v1, %v10724_v47  ;;  %9586 = vst [vmem:[%s11126_s9 + $0x18] sm:$0xff] %v9582_v15  }
 0x413   : > { %9584 = vst [vmem:[%s11126_s9 + $0x8] sm:$0xff] %v9572_v30   ;;  %9585 = vst [vmem:[%s11126_s9 + $0x10] sm:$0xff] %v9577_v8  }
 0x414   : > { %9568 = vst [vmem:[%s11126_s9] sm:$0xff] %v9567_v42  }
 0x415 PF: > { %s15_s22 = sadd.s32 1, %s11050_s22   ;;  %s12942_s18 = smov %s11042_s20 }
 0x416   : > { %p12_p10 = scmp.ge.s32.totalorder %s15_s22, 6   ;;  %s12943_s19 = smov %s11046_s21 }
 0x417   : > { %s12944_s20 = smov %s12947_s23  ;;  %s12945_s21 = smov %s12951_s24 }
 0x418   :  { %14 = sbr.rel (!%p12_p10) target bundleno = 3 (0x3), region = 117 }

</bundles_post_ra>
